<compile_context>
chip_gen: v7x
topology: tpu7x:2x2x1
jax: 0.10.0
libtpu: 0.0.40
codegen_flags: <defaults>
</compile_context>

<pallas_src>
import functools

import jax
import jax.numpy as jnp
from jax.experimental import pallas as pl
from jax.experimental.pallas import tpu as pltpu

# f32-accurate matmuls on TPU for both the in-kernel dots and the reference.
jax.config.update("jax_default_matmul_precision", "highest")

LN_EPS = 1e-12

CONFIG = dict(
    vocab_size=25,                # 20 amino acids + specials
    type_vocab_size=2,
    max_position_embeddings=32,
    hidden_size=32,
    num_attention_heads=4,
    num_hidden_layers=2,
    intermediate_size=64,
)


# -----------------------------------------------------------------------------
# Fused forward kernel (whole AntiEncoder_T forward in one pallas_call)
# -----------------------------------------------------------------------------

def _fused_forward_kernel(x_ref, embln_ref, bias_ref, wqkv_ref, wo_ref,
                          w1_ref, w2_ref, lvec_ref, o_ref,
                          qkvp_ref, ctx_ref, *, Bb, S, H, nH, L, I):
    dH = H // nH

    def layer_norm(x, g, b):
        mean = jnp.mean(x, axis=-1, keepdims=True)
        var = jnp.mean(jnp.square(x - mean), axis=-1, keepdims=True)
        return (x - mean) * jax.lax.rsqrt(var + LN_EPS) * g + b

    # ---- AntiEmbeddings: (word + position + type summed in glue) + LayerNorm
    embln = embln_ref[...]                                     # [2, H]
    x = layer_norm(x_ref[...], embln[0:1, :], embln[1:2, :])   # [Bb*S, H]

    # Combined attention bias: key padding on diagonal (batch, head) blocks,
    # -1e9 on off-diagonal blocks (exp underflows to exactly 0).
    bias = bias_ref[0]                                         # [N, N]

    # ---- AntiEncoder: statically-unrolled transformer layers ----
    for l in range(L):
        vecs = lvec_ref[l]                                     # [8, VMAX]
        bqkv = vecs[0:1, :3 * H]
        bo = vecs[1:2, :H]
        b1 = vecs[2:3, :I]
        b2 = vecs[3:4, :H]
        ln1g, ln1b = vecs[4:5, :H], vecs[5:6, :H]
        ln2g, ln2b = vecs[6:7, :H], vecs[7:8, :H]

        # fused QKV projection (Wq pre-scaled by 1/sqrt(dH); columns are
        # interleaved per head as [q_h | k_h | v_h])
        qkv = jnp.dot(x, wqkv_ref[l],
                      preferred_element_type=jnp.float32) + bqkv    # [Bb*S, 3H]

        # pack each (batch, head) q|k|v triple onto the sublane axis
        for b in range(Bb):
            for h in range(nH):
                qkvp_ref[(b * nH + h) * S:(b * nH + h + 1) * S, :] = \
                    qkv[b * S:(b + 1) * S, h * 3 * dH:(h + 1) * 3 * dH]

        qkvp = qkvp_ref[...]                                   # [N, 3*dH]
        qp = qkvp[:, :dH]
        kp = qkvp[:, dH:2 * dH]
        vp = qkvp[:, 2 * dH:]

        # single block-diagonal score matmul (NT, no explicit transpose)
        s = jax.lax.dot_general(qp, kp, (((1,), (1,)), ((), ())),
                                preferred_element_type=jnp.float32) + bias
        s = s - jnp.max(s, axis=-1, keepdims=True)
        p = jnp.exp(s)
        p = p / jnp.sum(p, axis=-1, keepdims=True)             # exact divide
        ctxp = jnp.dot(p, vp, preferred_element_type=jnp.float32)   # [N, dH]

        # unpack heads back to [Bb*S, H] via static stores (no concatenates)
        for b in range(Bb):
            for h in range(nH):
                ctx_ref[b * S:(b + 1) * S, h * dH:(h + 1) * dH] = \
                    ctxp[(b * nH + h) * S:(b * nH + h + 1) * S, :]

        attn = jnp.dot(ctx_ref[...], wo_ref[l],
                       preferred_element_type=jnp.float32) + bo
        x = layer_norm(attn + x, ln1g, ln1b)

        ff = jnp.dot(x, w1_ref[l], preferred_element_type=jnp.float32) + b1
        # exact (erf) GELU, matching torch.nn.functional.gelu default
        ff = 0.5 * ff * (1.0 + jax.lax.erf(ff * 0.7071067811865476))
        ff = jnp.dot(ff, w2_ref[l], preferred_element_type=jnp.float32) + b2
        x = layer_norm(ff + x, ln2g, ln2b)

    o_ref[...] = x


def _full_spec(shape):
    n = len(shape)
    return pl.BlockSpec(shape, lambda i, _n=n: (0,) * _n)


def _tensorcores_per_chip():
    # v7x exposes 2 TensorCores per chip; v5e/v6e have 1.
    try:
        kind = jax.devices()[0].device_kind.lower()
    except Exception:
        return 1
    return 2 if "v7" in kind else 1


# -----------------------------------------------------------------------------
# Parameter init (deterministic, standard per-layer layout for the reference)
# -----------------------------------------------------------------------------

def init_params(key, cfg):
    H = cfg["hidden_size"]
    I = cfg["intermediate_size"]
    L = cfg["num_hidden_layers"]

    def normal(k, shape, s=0.02):
        return (s * jax.random.normal(k, shape)).astype(jnp.float32)

    keys = jax.random.split(key, 24)
    return {
        "word_emb": normal(keys[0], (cfg["vocab_size"], H)),
        "pos_emb": normal(keys[1], (cfg["max_position_embeddings"], H)),
        "type_emb": normal(keys[2], (cfg["type_vocab_size"], H)),
        "emb_ln_g": 1.0 + normal(keys[3], (H,)),
        "emb_ln_b": normal(keys[4], (H,)),
        "stacked": {
            "wq": normal(keys[5], (L, H, H)), "bq": normal(keys[6], (L, H)),
            "wk": normal(keys[7], (L, H, H)), "bk": normal(keys[8], (L, H)),
            "wv": normal(keys[9], (L, H, H)), "bv": normal(keys[10], (L, H)),
            "wo": normal(keys[11], (L, H, H)), "bo": normal(keys[12], (L, H)),
            "ln1_g": 1.0 + normal(keys[13], (L, H)), "ln1_b": normal(keys[14], (L, H)),
            "w1": normal(keys[15], (L, H, I)), "b1": normal(keys[16], (L, I)),
            "w2": normal(keys[17], (L, I, H)), "b2": normal(keys[18], (L, H)),
            "ln2_g": 1.0 + normal(keys[19], (L, H)), "ln2_b": normal(keys[20], (L, H)),
        },
    }


def pack_params_for_kernel(params, cfg):
    """One-time weight transform for the kernel: interleave Q/K/V per head,
    fold 1/sqrt(dH) into Wq/bq, pack all small per-layer vectors into one
    [L, 8, VMAX] operand."""
    H = cfg["hidden_size"]
    I = cfg["intermediate_size"]
    L = cfg["num_hidden_layers"]
    nH = cfg["num_attention_heads"]
    dH = H // nH
    scale = 1.0 / (dH ** 0.5)
    s = params["stacked"]

    wq = s["wq"] * scale
    bq = s["bq"] * scale
    wqkv = jnp.stack([wq.reshape(L, H, nH, dH),
                      s["wk"].reshape(L, H, nH, dH),
                      s["wv"].reshape(L, H, nH, dH)], axis=3).reshape(L, H, 3 * H)
    bqkv = jnp.stack([bq.reshape(L, nH, dH),
                      s["bk"].reshape(L, nH, dH),
                      s["bv"].reshape(L, nH, dH)], axis=2).reshape(L, 3 * H)

    vmax = max(3 * H, I, H)
    pad = lambda v: jnp.pad(v, ((0, 0), (0, vmax - v.shape[-1])))
    lvecs = jnp.stack([pad(bqkv), pad(s["bo"]), pad(s["b1"]), pad(s["b2"]),
                       pad(s["ln1_g"]), pad(s["ln1_b"]),
                       pad(s["ln2_g"]), pad(s["ln2_b"])], axis=1)   # [L, 8, vmax]

    return {
        "word_emb": params["word_emb"],
        "pos_emb": params["pos_emb"],
        "type_emb": params["type_emb"],
        "emb_ln": jnp.stack([params["emb_ln_g"], params["emb_ln_b"]]),  # [2, H]
        "wqkv": wqkv, "wo": s["wo"], "w1": s["w1"], "w2": s["w2"],
        "lvecs": lvecs,
    }


# -----------------------------------------------------------------------------
# Forward pass (AntiEncoder_T.forward) — one fused pallas_call
# -----------------------------------------------------------------------------

def anti_encoder_t_forward(kparams, cfg, antibodies, type_token, mask):
    B, S = antibodies.shape
    H = cfg["hidden_size"]
    I = cfg["intermediate_size"]
    nH = cfg["num_attention_heads"]
    L = cfg["num_hidden_layers"]

    # JAX glue: embedding gathers summed into ONE activation operand.
    x_in = (jnp.take(kparams["word_emb"], antibodies, axis=0)
            + kparams["pos_emb"][:S][None, :, :]
            + jnp.take(kparams["type_emb"], type_token, axis=0))
    x_in = x_in.reshape(B * S, H).astype(jnp.float32)

    # One batch-block per grid step: B steps on 2-TC chips (v7x), one step on
    # 1-TC chips (v5e/v6e) to avoid per-step overhead.
    Bb = 1 if (_tensorcores_per_chip() >= 2 and B > 1) else B
    G = B // Bb
    N = Bb * nH * S

    # Combined block-diagonal + key-padding attention bias (one per grid step).
    grp = jnp.arange(N) // S                                   # (batch, head) id
    same = grp[:, None] == grp[None, :]                        # [N, N]
    pad_bias = (1.0 - mask.astype(jnp.float32)) * (-10000.0)   # [B, S]
    pad_cols = jnp.broadcast_to(pad_bias.reshape(G, Bb, 1, S),
                                (G, Bb, nH, S)).reshape(G, N)
    attn_bias = jnp.where(same[None, :, :], pad_cols[:, None, :],
                          -1e9).astype(jnp.float32)            # [G, N, N]

    operands = (x_in, kparams["emb_ln"], attn_bias, kparams["wqkv"],
                kparams["wo"], kparams["w1"], kparams["w2"], kparams["lvecs"])
    vmax = kparams["lvecs"].shape[-1]

    kernel = functools.partial(_fused_forward_kernel,
                               Bb=Bb, S=S, H=H, nH=nH, L=L, I=I)
    out_flat = pl.pallas_call(
        kernel,
        out_shape=jax.ShapeDtypeStruct((B * S, H), jnp.float32),
        grid=(G,),
        in_specs=[
            pl.BlockSpec((Bb * S, H), lambda i: (i, 0)),       # activations
            _full_spec((2, H)),                                # embedding LN
            pl.BlockSpec((1, N, N), lambda i: (i, 0, 0)),      # attention bias
            _full_spec((L, H, 3 * H)),                         # Wqkv (interleaved)
            _full_spec((L, H, H)),                             # Wo
            _full_spec((L, H, I)),                             # W1
            _full_spec((L, I, H)),                             # W2
            _full_spec((L, 8, vmax)),                          # packed vectors
        ],
        out_specs=pl.BlockSpec((Bb * S, H), lambda i: (i, 0)),
        scratch_shapes=[pltpu.VMEM((N, 3 * (H // nH)), jnp.float32),  # packed QKV
                        pltpu.VMEM((Bb * S, H), jnp.float32)],        # attn context
        compiler_params=pltpu.CompilerParams(
            dimension_semantics=("parallel",)),
    )(*operands)
    return out_flat.reshape(B, S, H)


# -----------------------------------------------------------------------------
# Pure-JAX reference (for correctness check only)
# -----------------------------------------------------------------------------

def _reference_forward(params, cfg, antibodies, type_token, mask):
    B, S = antibodies.shape
    H = cfg["hidden_size"]
    nH = cfg["num_attention_heads"]
    dH = H // nH
    L = cfg["num_hidden_layers"]

    def ln(x, g, b):
        m = jnp.mean(x, -1, keepdims=True)
        v = jnp.mean((x - m) ** 2, -1, keepdims=True)
        return (x - m) / jnp.sqrt(v + LN_EPS) * g + b

    we = jnp.take(params["word_emb"], antibodies, axis=0)
    pe = jnp.broadcast_to(params["pos_emb"][:S][None], (B, S, H))
    te = jnp.take(params["type_emb"], type_token, axis=0)
    x = ln(we + pe + te, params["emb_ln_g"], params["emb_ln_b"])

    bias = ((1.0 - mask.astype(jnp.float32)) * -10000.0)[:, None, None, :]
    s = params["stacked"]
    heads = lambda t: t.reshape(B, S, nH, dH).transpose(0, 2, 1, 3)
    for l in range(L):
        q = heads(x @ s["wq"][l] + s["bq"][l])
        k = heads(x @ s["wk"][l] + s["bk"][l])
        v = heads(x @ s["wv"][l] + s["bv"][l])
        sc = jnp.einsum("bhqd,bhkd->bhqk", q, k) / (dH ** 0.5) + bias
        p = jax.nn.softmax(sc, axis=-1)
        ctx = jnp.einsum("bhqk,bhkd->bhqd", p, v).transpose(0, 2, 1, 3).reshape(B, S, H)
        x = ln(ctx @ s["wo"][l] + s["bo"][l] + x, s["ln1_g"][l], s["ln1_b"][l])
        ff = x @ s["w1"][l] + s["b1"][l]
        ff = 0.5 * ff * (1.0 + jax.lax.erf(ff * 0.7071067811865476))
        x = ln(ff @ s["w2"][l] + s["b2"][l] + x, s["ln2_g"][l], s["ln2_b"][l])
    return x


# -----------------------------------------------------------------------------
# Main
# -----------------------------------------------------------------------------

if __name__ == "__main__":
    B, S = 2, 8
    cfg = CONFIG

    key = jax.random.PRNGKey(0)
    k_par, k_tok, k_typ = jax.random.split(key, 3)

    params = init_params(k_par, cfg)
    packed = pack_params_for_kernel(params, cfg)   # one-time weight transform

    antibodies = jax.random.randint(k_tok, (B, S), 0, cfg["vocab_size"], dtype=jnp.int32)
    type_token = jax.random.randint(k_typ, (B, S), 0, cfg["type_vocab_size"], dtype=jnp.int32)
    # attention mask: 1 = valid token, 0 = padding (pad last 2 positions of seq 1)
    mask = jnp.ones((B, S), jnp.float32).at[1, -2:].set(0.0)

    out = anti_encoder_t_forward(packed, cfg, antibodies, type_token, mask)
    out = jax.block_until_ready(out)

    assert out.shape == (B, S, cfg["hidden_size"])
    assert bool(jnp.all(jnp.isfinite(out)))

    ref = _reference_forward(params, cfg, antibodies, type_token, mask)
    assert bool(jnp.allclose(out, ref, atol=2e-3, rtol=2e-3))

    print("KERNEL_OK")
</pallas_src>

<mosaic_0001>
module attributes {stable_mosaic.version = 11 : i64} {
  func.func @_fused_forward_kernel(%arg0: i32, %arg1: memref<16x32xf32, #tpu.memory_space<vmem>>, %arg2: memref<2x32xf32, #tpu.memory_space<vmem>>, %arg3: memref<1x64x64xf32, #tpu.memory_space<vmem>>, %arg4: memref<2x32x96xf32, #tpu.memory_space<vmem>>, %arg5: memref<2x32x32xf32, #tpu.memory_space<vmem>>, %arg6: memref<2x32x64xf32, #tpu.memory_space<vmem>>, %arg7: memref<2x64x32xf32, #tpu.memory_space<vmem>>, %arg8: memref<2x8x96xf32, #tpu.memory_space<vmem>>, %arg9: memref<16x32xf32, #tpu.memory_space<vmem>>, %arg10: memref<64x24xf32, #tpu.memory_space<vmem>>, %arg11: memref<16x32xf32, #tpu.memory_space<vmem>>) attributes {dimension_semantics = [#tpu.dimension_semantics<parallel>], iteration_bounds = array<i64: 1>, scalar_prefetch = 0 : i64, scratch_operands = 2 : i64, tpu.core_type = #tpu.core_type<tc>, window_params = [{transform_indices = @transform_0, window_bounds = array<i64: 16, 32>}, {pipeline_mode = #tpu.pipeline_mode<synchronous>, transform_indices = @transform_1, window_bounds = array<i64: 2, 32>}, {transform_indices = @transform_2, window_bounds = array<i64: 1, 64, 64>}, {pipeline_mode = #tpu.pipeline_mode<synchronous>, transform_indices = @transform_3, window_bounds = array<i64: 2, 32, 96>}, {pipeline_mode = #tpu.pipeline_mode<synchronous>, transform_indices = @transform_4, window_bounds = array<i64: 2, 32, 32>}, {pipeline_mode = #tpu.pipeline_mode<synchronous>, transform_indices = @transform_5, window_bounds = array<i64: 2, 32, 64>}, {pipeline_mode = #tpu.pipeline_mode<synchronous>, transform_indices = @transform_6, window_bounds = array<i64: 2, 64, 32>}, {pipeline_mode = #tpu.pipeline_mode<synchronous>, transform_indices = @transform_7, window_bounds = array<i64: 2, 8, 96>}, {transform_indices = @transform_8, window_bounds = array<i64: 16, 32>}]} {
    %c0 = arith.constant 0 : index
    %c0_0 = arith.constant 0 : index
    %0 = vector.load %arg2[%c0, %c0_0] : memref<2x32xf32, #tpu.memory_space<vmem>>, vector<2x32xf32>
    %c0_1 = arith.constant 0 : index
    %c0_2 = arith.constant 0 : index
    %1 = vector.load %arg1[%c0_1, %c0_2] : memref<16x32xf32, #tpu.memory_space<vmem>>, vector<16x32xf32>
    %2 = vector.extract_strided_slice %0 {offsets = [0, 0], sizes = [1, 32], strides = [1, 1]} : vector<2x32xf32> to vector<1x32xf32>
    %3 = vector.extract_strided_slice %0 {offsets = [1, 0], sizes = [1, 32], strides = [1, 1]} : vector<2x32xf32> to vector<1x32xf32>
    %cst = arith.constant dense<0.000000e+00> : vector<16xf32>
    %4 = vector.multi_reduction <add>, %1, %cst [1] : vector<16x32xf32> to vector<16xf32>
    %5 = vector.shape_cast %4 : vector<16xf32> to vector<16x1xf32>
    %cst_3 = arith.constant 3.200000e+01 : f32
    %6 = vector.broadcast %cst_3 : f32 to vector<16x1xf32>
    %7 = arith.divf %5, %6 : vector<16x1xf32>
    %8 = vector.broadcast %7 : vector<16x1xf32> to vector<16x32xf32>
    %9 = arith.subf %1, %8 : vector<16x32xf32>
    %10 = arith.mulf %9, %9 : vector<16x32xf32>
    %cst_4 = arith.constant dense<0.000000e+00> : vector<16xf32>
    %11 = vector.multi_reduction <add>, %10, %cst_4 [1] : vector<16x32xf32> to vector<16xf32>
    %12 = vector.shape_cast %11 : vector<16xf32> to vector<16x1xf32>
    %cst_5 = arith.constant 3.200000e+01 : f32
    %13 = vector.broadcast %cst_5 : f32 to vector<16x1xf32>
    %14 = arith.divf %12, %13 : vector<16x1xf32>
    %15 = vector.broadcast %7 : vector<16x1xf32> to vector<16x32xf32>
    %16 = arith.subf %1, %15 : vector<16x32xf32>
    %cst_6 = arith.constant 9.99999996E-13 : f32
    %17 = vector.broadcast %cst_6 : f32 to vector<16x1xf32>
    %18 = arith.addf %14, %17 : vector<16x1xf32>
    %19 = math.rsqrt %18 : vector<16x1xf32>
    %20 = vector.broadcast %19 : vector<16x1xf32> to vector<16x32xf32>
    %21 = arith.mulf %16, %20 : vector<16x32xf32>
    %22 = vector.broadcast %2 : vector<1x32xf32> to vector<16x32xf32>
    %23 = arith.mulf %21, %22 : vector<16x32xf32>
    %24 = vector.broadcast %3 : vector<1x32xf32> to vector<16x32xf32>
    %25 = arith.addf %23, %24 : vector<16x32xf32>
    %c0_7 = arith.constant 0 : index
    %c0_8 = arith.constant 0 : index
    %c0_9 = arith.constant 0 : index
    %26 = vector.load %arg3[%c0_7, %c0_8, %c0_9] : memref<1x64x64xf32, #tpu.memory_space<vmem>>, vector<1x64x64xf32>
    %27 = vector.shape_cast %26 : vector<1x64x64xf32> to vector<64x64xf32>
    %c0_10 = arith.constant 0 : index
    %c0_11 = arith.constant 0 : index
    %c0_12 = arith.constant 0 : index
    %28 = vector.load %arg8[%c0_10, %c0_11, %c0_12] : memref<2x8x96xf32, #tpu.memory_space<vmem>>, vector<1x8x96xf32>
    %29 = vector.shape_cast %28 : vector<1x8x96xf32> to vector<8x96xf32>
    %30 = vector.extract_strided_slice %29 {offsets = [0, 0], sizes = [1, 96], strides = [1, 1]} : vector<8x96xf32> to vector<1x96xf32>
    %31 = vector.extract_strided_slice %29 {offsets = [1, 0], sizes = [1, 32], strides = [1, 1]} : vector<8x96xf32> to vector<1x32xf32>
    %32 = vector.extract_strided_slice %29 {offsets = [2, 0], sizes = [1, 64], strides = [1, 1]} : vector<8x96xf32> to vector<1x64xf32>
    %33 = vector.extract_strided_slice %29 {offsets = [3, 0], sizes = [1, 32], strides = [1, 1]} : vector<8x96xf32> to vector<1x32xf32>
    %34 = vector.extract_strided_slice %29 {offsets = [4, 0], sizes = [1, 32], strides = [1, 1]} : vector<8x96xf32> to vector<1x32xf32>
    %35 = vector.extract_strided_slice %29 {offsets = [5, 0], sizes = [1, 32], strides = [1, 1]} : vector<8x96xf32> to vector<1x32xf32>
    %36 = vector.extract_strided_slice %29 {offsets = [6, 0], sizes = [1, 32], strides = [1, 1]} : vector<8x96xf32> to vector<1x32xf32>
    %37 = vector.extract_strided_slice %29 {offsets = [7, 0], sizes = [1, 32], strides = [1, 1]} : vector<8x96xf32> to vector<1x32xf32>
    %c0_13 = arith.constant 0 : index
    %c0_14 = arith.constant 0 : index
    %c0_15 = arith.constant 0 : index
    %38 = vector.load %arg4[%c0_13, %c0_14, %c0_15] : memref<2x32x96xf32, #tpu.memory_space<vmem>>, vector<1x32x96xf32>
    %39 = vector.shape_cast %38 : vector<1x32x96xf32> to vector<32x96xf32>
    %cst_16 = arith.constant dense<0.000000e+00> : vector<16x96xf32>
    %40 = tpu.matmul %25, %39, %cst_16 {dimension_numbers = #tpu.dot_dimension_numbers<[1], [0], [0], [1], [0, 0, 1, 1], [], []>, precision = #tpu.contract_precision<fp32>} : vector<16x32xf32>, vector<32x96xf32>, vector<16x96xf32> -> vector<16x96xf32>
    %41 = vector.broadcast %30 : vector<1x96xf32> to vector<16x96xf32>
    %42 = arith.addf %40, %41 : vector<16x96xf32>
    %43 = vector.extract_strided_slice %42 {offsets = [0, 0], sizes = [8, 24], strides = [1, 1]} : vector<16x96xf32> to vector<8x24xf32>
    %c0_17 = arith.constant 0 : index
    %c0_18 = arith.constant 0 : index
    %44 = vector.load %arg10[%c0_17, %c0_18] : memref<64x24xf32, #tpu.memory_space<vmem>>, vector<8x24xf32>
    tpu.vector_store %arg10[%c0_17, %c0_18], %43 {strides = array<i32>} : memref<64x24xf32, #tpu.memory_space<vmem>>, vector<8x24xf32>,
    %45 = vector.extract_strided_slice %42 {offsets = [0, 24], sizes = [8, 24], strides = [1, 1]} : vector<16x96xf32> to vector<8x24xf32>
    %c8 = arith.constant 8 : index
    %c0_19 = arith.constant 0 : index
    %46 = vector.load %arg10[%c8, %c0_19] : memref<64x24xf32, #tpu.memory_space<vmem>>, vector<8x24xf32>
    tpu.vector_store %arg10[%c8, %c0_19], %45 {strides = array<i32>} : memref<64x24xf32, #tpu.memory_space<vmem>>, vector<8x24xf32>,
    %47 = vector.extract_strided_slice %42 {offsets = [0, 48], sizes = [8, 24], strides = [1, 1]} : vector<16x96xf32> to vector<8x24xf32>
    %c16 = arith.constant 16 : index
    %c0_20 = arith.constant 0 : index
    %48 = vector.load %arg10[%c16, %c0_20] : memref<64x24xf32, #tpu.memory_space<vmem>>, vector<8x24xf32>
    tpu.vector_store %arg10[%c16, %c0_20], %47 {strides = array<i32>} : memref<64x24xf32, #tpu.memory_space<vmem>>, vector<8x24xf32>,
    %49 = vector.extract_strided_slice %42 {offsets = [0, 72], sizes = [8, 24], strides = [1, 1]} : vector<16x96xf32> to vector<8x24xf32>
    %c24 = arith.constant 24 : index
    %c0_21 = arith.constant 0 : index
    %50 = vector.load %arg10[%c24, %c0_21] : memref<64x24xf32, #tpu.memory_space<vmem>>, vector<8x24xf32>
    tpu.vector_store %arg10[%c24, %c0_21], %49 {strides = array<i32>} : memref<64x24xf32, #tpu.memory_space<vmem>>, vector<8x24xf32>,
    %51 = vector.extract_strided_slice %42 {offsets = [8, 0], sizes = [8, 24], strides = [1, 1]} : vector<16x96xf32> to vector<8x24xf32>
    %c32 = arith.constant 32 : index
    %c0_22 = arith.constant 0 : index
    %52 = vector.load %arg10[%c32, %c0_22] : memref<64x24xf32, #tpu.memory_space<vmem>>, vector<8x24xf32>
    tpu.vector_store %arg10[%c32, %c0_22], %51 {strides = array<i32>} : memref<64x24xf32, #tpu.memory_space<vmem>>, vector<8x24xf32>,
    %53 = vector.extract_strided_slice %42 {offsets = [8, 24], sizes = [8, 24], strides = [1, 1]} : vector<16x96xf32> to vector<8x24xf32>
    %c40 = arith.constant 40 : index
    %c0_23 = arith.constant 0 : index
    %54 = vector.load %arg10[%c40, %c0_23] : memref<64x24xf32, #tpu.memory_space<vmem>>, vector<8x24xf32>
    tpu.vector_store %arg10[%c40, %c0_23], %53 {strides = array<i32>} : memref<64x24xf32, #tpu.memory_space<vmem>>, vector<8x24xf32>,
    %55 = vector.extract_strided_slice %42 {offsets = [8, 48], sizes = [8, 24], strides = [1, 1]} : vector<16x96xf32> to vector<8x24xf32>
    %c48 = arith.constant 48 : index
    %c0_24 = arith.constant 0 : index
    %56 = vector.load %arg10[%c48, %c0_24] : memref<64x24xf32, #tpu.memory_space<vmem>>, vector<8x24xf32>
    tpu.vector_store %arg10[%c48, %c0_24], %55 {strides = array<i32>} : memref<64x24xf32, #tpu.memory_space<vmem>>, vector<8x24xf32>,
    %57 = vector.extract_strided_slice %42 {offsets = [8, 72], sizes = [8, 24], strides = [1, 1]} : vector<16x96xf32> to vector<8x24xf32>
    %c56 = arith.constant 56 : index
    %c0_25 = arith.constant 0 : index
    %58 = vector.load %arg10[%c56, %c0_25] : memref<64x24xf32, #tpu.memory_space<vmem>>, vector<8x24xf32>
    tpu.vector_store %arg10[%c56, %c0_25], %57 {strides = array<i32>} : memref<64x24xf32, #tpu.memory_space<vmem>>, vector<8x24xf32>,
    %c0_26 = arith.constant 0 : index
    %c0_27 = arith.constant 0 : index
    %59 = vector.load %arg10[%c0_26, %c0_27] : memref<64x24xf32, #tpu.memory_space<vmem>>, vector<64x24xf32>
    %60 = vector.extract_strided_slice %59 {offsets = [0, 0], sizes = [64, 8], strides = [1, 1]} : vector<64x24xf32> to vector<64x8xf32>
    %61 = vector.extract_strided_slice %59 {offsets = [0, 8], sizes = [64, 8], strides = [1, 1]} : vector<64x24xf32> to vector<64x8xf32>
    %62 = vector.extract_strided_slice %59 {offsets = [0, 16], sizes = [64, 8], strides = [1, 1]} : vector<64x24xf32> to vector<64x8xf32>
    %cst_28 = arith.constant dense<0.000000e+00> : vector<64x64xf32>
    %63 = tpu.matmul %60, %61, %cst_28 {dimension_numbers = #tpu.dot_dimension_numbers<[1], [1], [0], [0], [0, 0, 1, 0], [], []>, precision = #tpu.contract_precision<fp32>} : vector<64x8xf32>, vector<64x8xf32>, vector<64x64xf32> -> vector<64x64xf32>
    %64 = arith.addf %63, %27 : vector<64x64xf32>
    %cst_29 = arith.constant dense<0xFF800000> : vector<64xf32>
    %65 = vector.multi_reduction <maximumf>, %64, %cst_29 [1] : vector<64x64xf32> to vector<64xf32>
    %66 = vector.shape_cast %65 : vector<64xf32> to vector<64x1xf32>
    %67 = vector.broadcast %66 : vector<64x1xf32> to vector<64x64xf32>
    %68 = arith.subf %64, %67 : vector<64x64xf32>
    %69 = math.exp %68 : vector<64x64xf32>
    %cst_30 = arith.constant dense<0.000000e+00> : vector<64xf32>
    %70 = vector.multi_reduction <add>, %69, %cst_30 [1] : vector<64x64xf32> to vector<64xf32>
    %71 = vector.shape_cast %70 : vector<64xf32> to vector<64x1xf32>
    %72 = vector.broadcast %71 : vector<64x1xf32> to vector<64x64xf32>
    %73 = arith.divf %69, %72 : vector<64x64xf32>
    %cst_31 = arith.constant dense<0.000000e+00> : vector<64x8xf32>
    %74 = tpu.matmul %73, %62, %cst_31 {dimension_numbers = #tpu.dot_dimension_numbers<[1], [0], [0], [1], [0, 0, 1, 1], [], []>, precision = #tpu.contract_precision<fp32>} : vector<64x64xf32>, vector<64x8xf32>, vector<64x8xf32> -> vector<64x8xf32>
    %75 = vector.extract_strided_slice %74 {offsets = [0, 0], sizes = [8, 8], strides = [1, 1]} : vector<64x8xf32> to vector<8x8xf32>
    %c0_32 = arith.constant 0 : index
    %c0_33 = arith.constant 0 : index
    %76 = vector.load %arg11[%c0_32, %c0_33] : memref<16x32xf32, #tpu.memory_space<vmem>>, vector<8x8xf32>
    tpu.vector_store %arg11[%c0_32, %c0_33], %75 {strides = array<i32>} : memref<16x32xf32, #tpu.memory_space<vmem>>, vector<8x8xf32>,
    %77 = vector.extract_strided_slice %74 {offsets = [8, 0], sizes = [8, 8], strides = [1, 1]} : vector<64x8xf32> to vector<8x8xf32>
    %c0_34 = arith.constant 0 : index
    %c8_35 = arith.constant 8 : index
    %78 = vector.load %arg11[%c0_34, %c8_35] : memref<16x32xf32, #tpu.memory_space<vmem>>, vector<8x8xf32>
    tpu.vector_store %arg11[%c0_34, %c8_35], %77 {strides = array<i32>} : memref<16x32xf32, #tpu.memory_space<vmem>>, vector<8x8xf32>,
    %79 = vector.extract_strided_slice %74 {offsets = [16, 0], sizes = [8, 8], strides = [1, 1]} : vector<64x8xf32> to vector<8x8xf32>
    %c0_36 = arith.constant 0 : index
    %c16_37 = arith.constant 16 : index
    %80 = vector.load %arg11[%c0_36, %c16_37] : memref<16x32xf32, #tpu.memory_space<vmem>>, vector<8x8xf32>
    tpu.vector_store %arg11[%c0_36, %c16_37], %79 {strides = array<i32>} : memref<16x32xf32, #tpu.memory_space<vmem>>, vector<8x8xf32>,
    %81 = vector.extract_strided_slice %74 {offsets = [24, 0], sizes = [8, 8], strides = [1, 1]} : vector<64x8xf32> to vector<8x8xf32>
    %c0_38 = arith.constant 0 : index
    %c24_39 = arith.constant 24 : index
    %82 = vector.load %arg11[%c0_38, %c24_39] : memref<16x32xf32, #tpu.memory_space<vmem>>, vector<8x8xf32>
    tpu.vector_store %arg11[%c0_38, %c24_39], %81 {strides = array<i32>} : memref<16x32xf32, #tpu.memory_space<vmem>>, vector<8x8xf32>,
    %83 = vector.extract_strided_slice %74 {offsets = [32, 0], sizes = [8, 8], strides = [1, 1]} : vector<64x8xf32> to vector<8x8xf32>
    %c8_40 = arith.constant 8 : index
    %c0_41 = arith.constant 0 : index
    %84 = vector.load %arg11[%c8_40, %c0_41] : memref<16x32xf32, #tpu.memory_space<vmem>>, vector<8x8xf32>
    tpu.vector_store %arg11[%c8_40, %c0_41], %83 {strides = array<i32>} : memref<16x32xf32, #tpu.memory_space<vmem>>, vector<8x8xf32>,
    %85 = vector.extract_strided_slice %74 {offsets = [40, 0], sizes = [8, 8], strides = [1, 1]} : vector<64x8xf32> to vector<8x8xf32>
    %c8_42 = arith.constant 8 : index
    %c8_43 = arith.constant 8 : index
    %86 = vector.load %arg11[%c8_42, %c8_43] : memref<16x32xf32, #tpu.memory_space<vmem>>, vector<8x8xf32>
    tpu.vector_store %arg11[%c8_42, %c8_43], %85 {strides = array<i32>} : memref<16x32xf32, #tpu.memory_space<vmem>>, vector<8x8xf32>,
    %87 = vector.extract_strided_slice %74 {offsets = [48, 0], sizes = [8, 8], strides = [1, 1]} : vector<64x8xf32> to vector<8x8xf32>
    %c8_44 = arith.constant 8 : index
    %c16_45 = arith.constant 16 : index
    %88 = vector.load %arg11[%c8_44, %c16_45] : memref<16x32xf32, #tpu.memory_space<vmem>>, vector<8x8xf32>
    tpu.vector_store %arg11[%c8_44, %c16_45], %87 {strides = array<i32>} : memref<16x32xf32, #tpu.memory_space<vmem>>, vector<8x8xf32>,
    %89 = vector.extract_strided_slice %74 {offsets = [56, 0], sizes = [8, 8], strides = [1, 1]} : vector<64x8xf32> to vector<8x8xf32>
    %c8_46 = arith.constant 8 : index
    %c24_47 = arith.constant 24 : index
    %90 = vector.load %arg11[%c8_46, %c24_47] : memref<16x32xf32, #tpu.memory_space<vmem>>, vector<8x8xf32>
    tpu.vector_store %arg11[%c8_46, %c24_47], %89 {strides = array<i32>} : memref<16x32xf32, #tpu.memory_space<vmem>>, vector<8x8xf32>,
    %c0_48 = arith.constant 0 : index
    %c0_49 = arith.constant 0 : index
    %91 = vector.load %arg11[%c0_48, %c0_49] : memref<16x32xf32, #tpu.memory_space<vmem>>, vector<16x32xf32>
    %c0_50 = arith.constant 0 : index
    %c0_51 = arith.constant 0 : index
    %c0_52 = arith.constant 0 : index
    %92 = vector.load %arg5[%c0_50, %c0_51, %c0_52] : memref<2x32x32xf32, #tpu.memory_space<vmem>>, vector<1x32x32xf32>
    %93 = vector.shape_cast %92 : vector<1x32x32xf32> to vector<32x32xf32>
    %cst_53 = arith.constant dense<0.000000e+00> : vector<16x32xf32>
    %94 = tpu.matmul %91, %93, %cst_53 {dimension_numbers = #tpu.dot_dimension_numbers<[1], [0], [0], [1], [0, 0, 1, 1], [], []>, precision = #tpu.contract_precision<fp32>} : vector<16x32xf32>, vector<32x32xf32>, vector<16x32xf32> -> vector<16x32xf32>
    %95 = vector.broadcast %31 : vector<1x32xf32> to vector<16x32xf32>
    %96 = arith.addf %94, %95 : vector<16x32xf32>
    %97 = arith.addf %96, %25 : vector<16x32xf32>
    %cst_54 = arith.constant dense<0.000000e+00> : vector<16xf32>
    %98 = vector.multi_reduction <add>, %97, %cst_54 [1] : vector<16x32xf32> to vector<16xf32>
    %99 = vector.shape_cast %98 : vector<16xf32> to vector<16x1xf32>
    %cst_55 = arith.constant 3.200000e+01 : f32
    %100 = vector.broadcast %cst_55 : f32 to vector<16x1xf32>
    %101 = arith.divf %99, %100 : vector<16x1xf32>
    %102 = vector.broadcast %101 : vector<16x1xf32> to vector<16x32xf32>
    %103 = arith.subf %97, %102 : vector<16x32xf32>
    %104 = arith.mulf %103, %103 : vector<16x32xf32>
    %cst_56 = arith.constant dense<0.000000e+00> : vector<16xf32>
    %105 = vector.multi_reduction <add>, %104, %cst_56 [1] : vector<16x32xf32> to vector<16xf32>
    %106 = vector.shape_cast %105 : vector<16xf32> to vector<16x1xf32>
    %cst_57 = arith.constant 3.200000e+01 : f32
    %107 = vector.broadcast %cst_57 : f32 to vector<16x1xf32>
    %108 = arith.divf %106, %107 : vector<16x1xf32>
    %109 = vector.broadcast %101 : vector<16x1xf32> to vector<16x32xf32>
    %110 = arith.subf %97, %109 : vector<16x32xf32>
    %cst_58 = arith.constant 9.99999996E-13 : f32
    %111 = vector.broadcast %cst_58 : f32 to vector<16x1xf32>
    %112 = arith.addf %108, %111 : vector<16x1xf32>
    %113 = math.rsqrt %112 : vector<16x1xf32>
    %114 = vector.broadcast %113 : vector<16x1xf32> to vector<16x32xf32>
    %115 = arith.mulf %110, %114 : vector<16x32xf32>
    %116 = vector.broadcast %34 : vector<1x32xf32> to vector<16x32xf32>
    %117 = arith.mulf %115, %116 : vector<16x32xf32>
    %118 = vector.broadcast %35 : vector<1x32xf32> to vector<16x32xf32>
    %119 = arith.addf %117, %118 : vector<16x32xf32>
    %c0_59 = arith.constant 0 : index
    %c0_60 = arith.constant 0 : index
    %c0_61 = arith.constant 0 : index
    %120 = vector.load %arg6[%c0_59, %c0_60, %c0_61] : memref<2x32x64xf32, #tpu.memory_space<vmem>>, vector<1x32x64xf32>
    %121 = vector.shape_cast %120 : vector<1x32x64xf32> to vector<32x64xf32>
    %cst_62 = arith.constant dense<0.000000e+00> : vector<16x64xf32>
    %122 = tpu.matmul %119, %121, %cst_62 {dimension_numbers = #tpu.dot_dimension_numbers<[1], [0], [0], [1], [0, 0, 1, 1], [], []>, precision = #tpu.contract_precision<fp32>} : vector<16x32xf32>, vector<32x64xf32>, vector<16x64xf32> -> vector<16x64xf32>
    %123 = vector.broadcast %32 : vector<1x64xf32> to vector<16x64xf32>
    %124 = arith.addf %122, %123 : vector<16x64xf32>
    %cst_63 = arith.constant 5.000000e-01 : f32
    %125 = vector.broadcast %cst_63 : f32 to vector<16x64xf32>
    %126 = arith.mulf %125, %124 : vector<16x64xf32>
    %cst_64 = arith.constant 0.707106769 : f32
    %127 = vector.broadcast %cst_64 : f32 to vector<16x64xf32>
    %128 = arith.mulf %124, %127 : vector<16x64xf32>
    %129 = math.erf %128 : vector<16x64xf32>
    %cst_65 = arith.constant 1.000000e+00 : f32
    %130 = vector.broadcast %cst_65 : f32 to vector<16x64xf32>
    %131 = arith.addf %130, %129 : vector<16x64xf32>
    %132 = arith.mulf %126, %131 : vector<16x64xf32>
    %c0_66 = arith.constant 0 : index
    %c0_67 = arith.constant 0 : index
    %c0_68 = arith.constant 0 : index
    %133 = vector.load %arg7[%c0_66, %c0_67, %c0_68] : memref<2x64x32xf32, #tpu.memory_space<vmem>>, vector<1x64x32xf32>
    %134 = vector.shape_cast %133 : vector<1x64x32xf32> to vector<64x32xf32>
    %cst_69 = arith.constant dense<0.000000e+00> : vector<16x32xf32>
    %135 = tpu.matmul %132, %134, %cst_69 {dimension_numbers = #tpu.dot_dimension_numbers<[1], [0], [0], [1], [0, 0, 1, 1], [], []>, precision = #tpu.contract_precision<fp32>} : vector<16x64xf32>, vector<64x32xf32>, vector<16x32xf32> -> vector<16x32xf32>
    %136 = vector.broadcast %33 : vector<1x32xf32> to vector<16x32xf32>
    %137 = arith.addf %135, %136 : vector<16x32xf32>
    %138 = arith.addf %137, %119 : vector<16x32xf32>
    %cst_70 = arith.constant dense<0.000000e+00> : vector<16xf32>
    %139 = vector.multi_reduction <add>, %138, %cst_70 [1] : vector<16x32xf32> to vector<16xf32>
    %140 = vector.shape_cast %139 : vector<16xf32> to vector<16x1xf32>
    %cst_71 = arith.constant 3.200000e+01 : f32
    %141 = vector.broadcast %cst_71 : f32 to vector<16x1xf32>
    %142 = arith.divf %140, %141 : vector<16x1xf32>
    %143 = vector.broadcast %142 : vector<16x1xf32> to vector<16x32xf32>
    %144 = arith.subf %138, %143 : vector<16x32xf32>
    %145 = arith.mulf %144, %144 : vector<16x32xf32>
    %cst_72 = arith.constant dense<0.000000e+00> : vector<16xf32>
    %146 = vector.multi_reduction <add>, %145, %cst_72 [1] : vector<16x32xf32> to vector<16xf32>
    %147 = vector.shape_cast %146 : vector<16xf32> to vector<16x1xf32>
    %cst_73 = arith.constant 3.200000e+01 : f32
    %148 = vector.broadcast %cst_73 : f32 to vector<16x1xf32>
    %149 = arith.divf %147, %148 : vector<16x1xf32>
    %150 = vector.broadcast %142 : vector<16x1xf32> to vector<16x32xf32>
    %151 = arith.subf %138, %150 : vector<16x32xf32>
    %cst_74 = arith.constant 9.99999996E-13 : f32
    %152 = vector.broadcast %cst_74 : f32 to vector<16x1xf32>
    %153 = arith.addf %149, %152 : vector<16x1xf32>
    %154 = math.rsqrt %153 : vector<16x1xf32>
    %155 = vector.broadcast %154 : vector<16x1xf32> to vector<16x32xf32>
    %156 = arith.mulf %151, %155 : vector<16x32xf32>
    %157 = vector.broadcast %36 : vector<1x32xf32> to vector<16x32xf32>
    %158 = arith.mulf %156, %157 : vector<16x32xf32>
    %159 = vector.broadcast %37 : vector<1x32xf32> to vector<16x32xf32>
    %160 = arith.addf %158, %159 : vector<16x32xf32>
    %c1 = arith.constant 1 : index
    %c0_75 = arith.constant 0 : index
    %c0_76 = arith.constant 0 : index
    %161 = vector.load %arg8[%c1, %c0_75, %c0_76] : memref<2x8x96xf32, #tpu.memory_space<vmem>>, vector<1x8x96xf32>
    %162 = vector.shape_cast %161 : vector<1x8x96xf32> to vector<8x96xf32>
    %163 = vector.extract_strided_slice %162 {offsets = [0, 0], sizes = [1, 96], strides = [1, 1]} : vector<8x96xf32> to vector<1x96xf32>
    %164 = vector.extract_strided_slice %162 {offsets = [1, 0], sizes = [1, 32], strides = [1, 1]} : vector<8x96xf32> to vector<1x32xf32>
    %165 = vector.extract_strided_slice %162 {offsets = [2, 0], sizes = [1, 64], strides = [1, 1]} : vector<8x96xf32> to vector<1x64xf32>
    %166 = vector.extract_strided_slice %162 {offsets = [3, 0], sizes = [1, 32], strides = [1, 1]} : vector<8x96xf32> to vector<1x32xf32>
    %167 = vector.extract_strided_slice %162 {offsets = [4, 0], sizes = [1, 32], strides = [1, 1]} : vector<8x96xf32> to vector<1x32xf32>
    %168 = vector.extract_strided_slice %162 {offsets = [5, 0], sizes = [1, 32], strides = [1, 1]} : vector<8x96xf32> to vector<1x32xf32>
    %169 = vector.extract_strided_slice %162 {offsets = [6, 0], sizes = [1, 32], strides = [1, 1]} : vector<8x96xf32> to vector<1x32xf32>
    %170 = vector.extract_strided_slice %162 {offsets = [7, 0], sizes = [1, 32], strides = [1, 1]} : vector<8x96xf32> to vector<1x32xf32>
    %c1_77 = arith.constant 1 : index
    %c0_78 = arith.constant 0 : index
    %c0_79 = arith.constant 0 : index
    %171 = vector.load %arg4[%c1_77, %c0_78, %c0_79] : memref<2x32x96xf32, #tpu.memory_space<vmem>>, vector<1x32x96xf32>
    %172 = vector.shape_cast %171 : vector<1x32x96xf32> to vector<32x96xf32>
    %cst_80 = arith.constant dense<0.000000e+00> : vector<16x96xf32>
    %173 = tpu.matmul %160, %172, %cst_80 {dimension_numbers = #tpu.dot_dimension_numbers<[1], [0], [0], [1], [0, 0, 1, 1], [], []>, precision = #tpu.contract_precision<fp32>} : vector<16x32xf32>, vector<32x96xf32>, vector<16x96xf32> -> vector<16x96xf32>
    %174 = vector.broadcast %163 : vector<1x96xf32> to vector<16x96xf32>
    %175 = arith.addf %173, %174 : vector<16x96xf32>
    %176 = vector.extract_strided_slice %175 {offsets = [0, 0], sizes = [8, 24], strides = [1, 1]} : vector<16x96xf32> to vector<8x24xf32>
    %c0_81 = arith.constant 0 : index
    %c0_82 = arith.constant 0 : index
    %177 = vector.load %arg10[%c0_81, %c0_82] : memref<64x24xf32, #tpu.memory_space<vmem>>, vector<8x24xf32>
    tpu.vector_store %arg10[%c0_81, %c0_82], %176 {strides = array<i32>} : memref<64x24xf32, #tpu.memory_space<vmem>>, vector<8x24xf32>,
    %178 = vector.extract_strided_slice %175 {offsets = [0, 24], sizes = [8, 24], strides = [1, 1]} : vector<16x96xf32> to vector<8x24xf32>
    %c8_83 = arith.constant 8 : index
    %c0_84 = arith.constant 0 : index
    %179 = vector.load %arg10[%c8_83, %c0_84] : memref<64x24xf32, #tpu.memory_space<vmem>>, vector<8x24xf32>
    tpu.vector_store %arg10[%c8_83, %c0_84], %178 {strides = array<i32>} : memref<64x24xf32, #tpu.memory_space<vmem>>, vector<8x24xf32>,
    %180 = vector.extract_strided_slice %175 {offsets = [0, 48], sizes = [8, 24], strides = [1, 1]} : vector<16x96xf32> to vector<8x24xf32>
    %c16_85 = arith.constant 16 : index
    %c0_86 = arith.constant 0 : index
    %181 = vector.load %arg10[%c16_85, %c0_86] : memref<64x24xf32, #tpu.memory_space<vmem>>, vector<8x24xf32>
    tpu.vector_store %arg10[%c16_85, %c0_86], %180 {strides = array<i32>} : memref<64x24xf32, #tpu.memory_space<vmem>>, vector<8x24xf32>,
    %182 = vector.extract_strided_slice %175 {offsets = [0, 72], sizes = [8, 24], strides = [1, 1]} : vector<16x96xf32> to vector<8x24xf32>
    %c24_87 = arith.constant 24 : index
    %c0_88 = arith.constant 0 : index
    %183 = vector.load %arg10[%c24_87, %c0_88] : memref<64x24xf32, #tpu.memory_space<vmem>>, vector<8x24xf32>
    tpu.vector_store %arg10[%c24_87, %c0_88], %182 {strides = array<i32>} : memref<64x24xf32, #tpu.memory_space<vmem>>, vector<8x24xf32>,
    %184 = vector.extract_strided_slice %175 {offsets = [8, 0], sizes = [8, 24], strides = [1, 1]} : vector<16x96xf32> to vector<8x24xf32>
    %c32_89 = arith.constant 32 : index
    %c0_90 = arith.constant 0 : index
    %185 = vector.load %arg10[%c32_89, %c0_90] : memref<64x24xf32, #tpu.memory_space<vmem>>, vector<8x24xf32>
    tpu.vector_store %arg10[%c32_89, %c0_90], %184 {strides = array<i32>} : memref<64x24xf32, #tpu.memory_space<vmem>>, vector<8x24xf32>,
    %186 = vector.extract_strided_slice %175 {offsets = [8, 24], sizes = [8, 24], strides = [1, 1]} : vector<16x96xf32> to vector<8x24xf32>
    %c40_91 = arith.constant 40 : index
    %c0_92 = arith.constant 0 : index
    %187 = vector.load %arg10[%c40_91, %c0_92] : memref<64x24xf32, #tpu.memory_space<vmem>>, vector<8x24xf32>
    tpu.vector_store %arg10[%c40_91, %c0_92], %186 {strides = array<i32>} : memref<64x24xf32, #tpu.memory_space<vmem>>, vector<8x24xf32>,
    %188 = vector.extract_strided_slice %175 {offsets = [8, 48], sizes = [8, 24], strides = [1, 1]} : vector<16x96xf32> to vector<8x24xf32>
    %c48_93 = arith.constant 48 : index
    %c0_94 = arith.constant 0 : index
    %189 = vector.load %arg10[%c48_93, %c0_94] : memref<64x24xf32, #tpu.memory_space<vmem>>, vector<8x24xf32>
    tpu.vector_store %arg10[%c48_93, %c0_94], %188 {strides = array<i32>} : memref<64x24xf32, #tpu.memory_space<vmem>>, vector<8x24xf32>,
    %190 = vector.extract_strided_slice %175 {offsets = [8, 72], sizes = [8, 24], strides = [1, 1]} : vector<16x96xf32> to vector<8x24xf32>
    %c56_95 = arith.constant 56 : index
    %c0_96 = arith.constant 0 : index
    %191 = vector.load %arg10[%c56_95, %c0_96] : memref<64x24xf32, #tpu.memory_space<vmem>>, vector<8x24xf32>
    tpu.vector_store %arg10[%c56_95, %c0_96], %190 {strides = array<i32>} : memref<64x24xf32, #tpu.memory_space<vmem>>, vector<8x24xf32>,
    %c0_97 = arith.constant 0 : index
    %c0_98 = arith.constant 0 : index
    %192 = vector.load %arg10[%c0_97, %c0_98] : memref<64x24xf32, #tpu.memory_space<vmem>>, vector<64x24xf32>
    %193 = vector.extract_strided_slice %192 {offsets = [0, 0], sizes = [64, 8], strides = [1, 1]} : vector<64x24xf32> to vector<64x8xf32>
    %194 = vector.extract_strided_slice %192 {offsets = [0, 8], sizes = [64, 8], strides = [1, 1]} : vector<64x24xf32> to vector<64x8xf32>
    %195 = vector.extract_strided_slice %192 {offsets = [0, 16], sizes = [64, 8], strides = [1, 1]} : vector<64x24xf32> to vector<64x8xf32>
    %cst_99 = arith.constant dense<0.000000e+00> : vector<64x64xf32>
    %196 = tpu.matmul %193, %194, %cst_99 {dimension_numbers = #tpu.dot_dimension_numbers<[1], [1], [0], [0], [0, 0, 1, 0], [], []>, precision = #tpu.contract_precision<fp32>} : vector<64x8xf32>, vector<64x8xf32>, vector<64x64xf32> -> vector<64x64xf32>
    %197 = arith.addf %196, %27 : vector<64x64xf32>
    %cst_100 = arith.constant dense<0xFF800000> : vector<64xf32>
    %198 = vector.multi_reduction <maximumf>, %197, %cst_100 [1] : vector<64x64xf32> to vector<64xf32>
    %199 = vector.shape_cast %198 : vector<64xf32> to vector<64x1xf32>
    %200 = vector.broadcast %199 : vector<64x1xf32> to vector<64x64xf32>
    %201 = arith.subf %197, %200 : vector<64x64xf32>
    %202 = math.exp %201 : vector<64x64xf32>
    %cst_101 = arith.constant dense<0.000000e+00> : vector<64xf32>
    %203 = vector.multi_reduction <add>, %202, %cst_101 [1] : vector<64x64xf32> to vector<64xf32>
    %204 = vector.shape_cast %203 : vector<64xf32> to vector<64x1xf32>
    %205 = vector.broadcast %204 : vector<64x1xf32> to vector<64x64xf32>
    %206 = arith.divf %202, %205 : vector<64x64xf32>
    %cst_102 = arith.constant dense<0.000000e+00> : vector<64x8xf32>
    %207 = tpu.matmul %206, %195, %cst_102 {dimension_numbers = #tpu.dot_dimension_numbers<[1], [0], [0], [1], [0, 0, 1, 1], [], []>, precision = #tpu.contract_precision<fp32>} : vector<64x64xf32>, vector<64x8xf32>, vector<64x8xf32> -> vector<64x8xf32>
    %208 = vector.extract_strided_slice %207 {offsets = [0, 0], sizes = [8, 8], strides = [1, 1]} : vector<64x8xf32> to vector<8x8xf32>
    %c0_103 = arith.constant 0 : index
    %c0_104 = arith.constant 0 : index
    %209 = vector.load %arg11[%c0_103, %c0_104] : memref<16x32xf32, #tpu.memory_space<vmem>>, vector<8x8xf32>
    tpu.vector_store %arg11[%c0_103, %c0_104], %208 {strides = array<i32>} : memref<16x32xf32, #tpu.memory_space<vmem>>, vector<8x8xf32>,
    %210 = vector.extract_strided_slice %207 {offsets = [8, 0], sizes = [8, 8], strides = [1, 1]} : vector<64x8xf32> to vector<8x8xf32>
    %c0_105 = arith.constant 0 : index
    %c8_106 = arith.constant 8 : index
    %211 = vector.load %arg11[%c0_105, %c8_106] : memref<16x32xf32, #tpu.memory_space<vmem>>, vector<8x8xf32>
    tpu.vector_store %arg11[%c0_105, %c8_106], %210 {strides = array<i32>} : memref<16x32xf32, #tpu.memory_space<vmem>>, vector<8x8xf32>,
    %212 = vector.extract_strided_slice %207 {offsets = [16, 0], sizes = [8, 8], strides = [1, 1]} : vector<64x8xf32> to vector<8x8xf32>
    %c0_107 = arith.constant 0 : index
    %c16_108 = arith.constant 16 : index
    %213 = vector.load %arg11[%c0_107, %c16_108] : memref<16x32xf32, #tpu.memory_space<vmem>>, vector<8x8xf32>
    tpu.vector_store %arg11[%c0_107, %c16_108], %212 {strides = array<i32>} : memref<16x32xf32, #tpu.memory_space<vmem>>, vector<8x8xf32>,
    %214 = vector.extract_strided_slice %207 {offsets = [24, 0], sizes = [8, 8], strides = [1, 1]} : vector<64x8xf32> to vector<8x8xf32>
    %c0_109 = arith.constant 0 : index
    %c24_110 = arith.constant 24 : index
    %215 = vector.load %arg11[%c0_109, %c24_110] : memref<16x32xf32, #tpu.memory_space<vmem>>, vector<8x8xf32>
    tpu.vector_store %arg11[%c0_109, %c24_110], %214 {strides = array<i32>} : memref<16x32xf32, #tpu.memory_space<vmem>>, vector<8x8xf32>,
    %216 = vector.extract_strided_slice %207 {offsets = [32, 0], sizes = [8, 8], strides = [1, 1]} : vector<64x8xf32> to vector<8x8xf32>
    %c8_111 = arith.constant 8 : index
    %c0_112 = arith.constant 0 : index
    %217 = vector.load %arg11[%c8_111, %c0_112] : memref<16x32xf32, #tpu.memory_space<vmem>>, vector<8x8xf32>
    tpu.vector_store %arg11[%c8_111, %c0_112], %216 {strides = array<i32>} : memref<16x32xf32, #tpu.memory_space<vmem>>, vector<8x8xf32>,
    %218 = vector.extract_strided_slice %207 {offsets = [40, 0], sizes = [8, 8], strides = [1, 1]} : vector<64x8xf32> to vector<8x8xf32>
    %c8_113 = arith.constant 8 : index
    %c8_114 = arith.constant 8 : index
    %219 = vector.load %arg11[%c8_113, %c8_114] : memref<16x32xf32, #tpu.memory_space<vmem>>, vector<8x8xf32>
    tpu.vector_store %arg11[%c8_113, %c8_114], %218 {strides = array<i32>} : memref<16x32xf32, #tpu.memory_space<vmem>>, vector<8x8xf32>,
    %220 = vector.extract_strided_slice %207 {offsets = [48, 0], sizes = [8, 8], strides = [1, 1]} : vector<64x8xf32> to vector<8x8xf32>
    %c8_115 = arith.constant 8 : index
    %c16_116 = arith.constant 16 : index
    %221 = vector.load %arg11[%c8_115, %c16_116] : memref<16x32xf32, #tpu.memory_space<vmem>>, vector<8x8xf32>
    tpu.vector_store %arg11[%c8_115, %c16_116], %220 {strides = array<i32>} : memref<16x32xf32, #tpu.memory_space<vmem>>, vector<8x8xf32>,
    %222 = vector.extract_strided_slice %207 {offsets = [56, 0], sizes = [8, 8], strides = [1, 1]} : vector<64x8xf32> to vector<8x8xf32>
    %c8_117 = arith.constant 8 : index
    %c24_118 = arith.constant 24 : index
    %223 = vector.load %arg11[%c8_117, %c24_118] : memref<16x32xf32, #tpu.memory_space<vmem>>, vector<8x8xf32>
    tpu.vector_store %arg11[%c8_117, %c24_118], %222 {strides = array<i32>} : memref<16x32xf32, #tpu.memory_space<vmem>>, vector<8x8xf32>,
    %c0_119 = arith.constant 0 : index
    %c0_120 = arith.constant 0 : index
    %224 = vector.load %arg11[%c0_119, %c0_120] : memref<16x32xf32, #tpu.memory_space<vmem>>, vector<16x32xf32>
    %c1_121 = arith.constant 1 : index
    %c0_122 = arith.constant 0 : index
    %c0_123 = arith.constant 0 : index
    %225 = vector.load %arg5[%c1_121, %c0_122, %c0_123] : memref<2x32x32xf32, #tpu.memory_space<vmem>>, vector<1x32x32xf32>
    %226 = vector.shape_cast %225 : vector<1x32x32xf32> to vector<32x32xf32>
    %cst_124 = arith.constant dense<0.000000e+00> : vector<16x32xf32>
    %227 = tpu.matmul %224, %226, %cst_124 {dimension_numbers = #tpu.dot_dimension_numbers<[1], [0], [0], [1], [0, 0, 1, 1], [], []>, precision = #tpu.contract_precision<fp32>} : vector<16x32xf32>, vector<32x32xf32>, vector<16x32xf32> -> vector<16x32xf32>
    %228 = vector.broadcast %164 : vector<1x32xf32> to vector<16x32xf32>
    %229 = arith.addf %227, %228 : vector<16x32xf32>
    %230 = arith.addf %229, %160 : vector<16x32xf32>
    %cst_125 = arith.constant dense<0.000000e+00> : vector<16xf32>
    %231 = vector.multi_reduction <add>, %230, %cst_125 [1] : vector<16x32xf32> to vector<16xf32>
    %232 = vector.shape_cast %231 : vector<16xf32> to vector<16x1xf32>
    %cst_126 = arith.constant 3.200000e+01 : f32
    %233 = vector.broadcast %cst_126 : f32 to vector<16x1xf32>
    %234 = arith.divf %232, %233 : vector<16x1xf32>
    %235 = vector.broadcast %234 : vector<16x1xf32> to vector<16x32xf32>
    %236 = arith.subf %230, %235 : vector<16x32xf32>
    %237 = arith.mulf %236, %236 : vector<16x32xf32>
    %cst_127 = arith.constant dense<0.000000e+00> : vector<16xf32>
    %238 = vector.multi_reduction <add>, %237, %cst_127 [1] : vector<16x32xf32> to vector<16xf32>
    %239 = vector.shape_cast %238 : vector<16xf32> to vector<16x1xf32>
    %cst_128 = arith.constant 3.200000e+01 : f32
    %240 = vector.broadcast %cst_128 : f32 to vector<16x1xf32>
    %241 = arith.divf %239, %240 : vector<16x1xf32>
    %242 = vector.broadcast %234 : vector<16x1xf32> to vector<16x32xf32>
    %243 = arith.subf %230, %242 : vector<16x32xf32>
    %cst_129 = arith.constant 9.99999996E-13 : f32
    %244 = vector.broadcast %cst_129 : f32 to vector<16x1xf32>
    %245 = arith.addf %241, %244 : vector<16x1xf32>
    %246 = math.rsqrt %245 : vector<16x1xf32>
    %247 = vector.broadcast %246 : vector<16x1xf32> to vector<16x32xf32>
    %248 = arith.mulf %243, %247 : vector<16x32xf32>
    %249 = vector.broadcast %167 : vector<1x32xf32> to vector<16x32xf32>
    %250 = arith.mulf %248, %249 : vector<16x32xf32>
    %251 = vector.broadcast %168 : vector<1x32xf32> to vector<16x32xf32>
    %252 = arith.addf %250, %251 : vector<16x32xf32>
    %c1_130 = arith.constant 1 : index
    %c0_131 = arith.constant 0 : index
    %c0_132 = arith.constant 0 : index
    %253 = vector.load %arg6[%c1_130, %c0_131, %c0_132] : memref<2x32x64xf32, #tpu.memory_space<vmem>>, vector<1x32x64xf32>
    %254 = vector.shape_cast %253 : vector<1x32x64xf32> to vector<32x64xf32>
    %cst_133 = arith.constant dense<0.000000e+00> : vector<16x64xf32>
    %255 = tpu.matmul %252, %254, %cst_133 {dimension_numbers = #tpu.dot_dimension_numbers<[1], [0], [0], [1], [0, 0, 1, 1], [], []>, precision = #tpu.contract_precision<fp32>} : vector<16x32xf32>, vector<32x64xf32>, vector<16x64xf32> -> vector<16x64xf32>
    %256 = vector.broadcast %165 : vector<1x64xf32> to vector<16x64xf32>
    %257 = arith.addf %255, %256 : vector<16x64xf32>
    %cst_134 = arith.constant 5.000000e-01 : f32
    %258 = vector.broadcast %cst_134 : f32 to vector<16x64xf32>
    %259 = arith.mulf %258, %257 : vector<16x64xf32>
    %cst_135 = arith.constant 0.707106769 : f32
    %260 = vector.broadcast %cst_135 : f32 to vector<16x64xf32>
    %261 = arith.mulf %257, %260 : vector<16x64xf32>
    %262 = math.erf %261 : vector<16x64xf32>
    %cst_136 = arith.constant 1.000000e+00 : f32
    %263 = vector.broadcast %cst_136 : f32 to vector<16x64xf32>
    %264 = arith.addf %263, %262 : vector<16x64xf32>
    %265 = arith.mulf %259, %264 : vector<16x64xf32>
    %c1_137 = arith.constant 1 : index
    %c0_138 = arith.constant 0 : index
    %c0_139 = arith.constant 0 : index
    %266 = vector.load %arg7[%c1_137, %c0_138, %c0_139] : memref<2x64x32xf32, #tpu.memory_space<vmem>>, vector<1x64x32xf32>
    %267 = vector.shape_cast %266 : vector<1x64x32xf32> to vector<64x32xf32>
    %cst_140 = arith.constant dense<0.000000e+00> : vector<16x32xf32>
    %268 = tpu.matmul %265, %267, %cst_140 {dimension_numbers = #tpu.dot_dimension_numbers<[1], [0], [0], [1], [0, 0, 1, 1], [], []>, precision = #tpu.contract_precision<fp32>} : vector<16x64xf32>, vector<64x32xf32>, vector<16x32xf32> -> vector<16x32xf32>
    %269 = vector.broadcast %166 : vector<1x32xf32> to vector<16x32xf32>
    %270 = arith.addf %268, %269 : vector<16x32xf32>
    %271 = arith.addf %270, %252 : vector<16x32xf32>
    %cst_141 = arith.constant dense<0.000000e+00> : vector<16xf32>
    %272 = vector.multi_reduction <add>, %271, %cst_141 [1] : vector<16x32xf32> to vector<16xf32>
    %273 = vector.shape_cast %272 : vector<16xf32> to vector<16x1xf32>
    %cst_142 = arith.constant 3.200000e+01 : f32
    %274 = vector.broadcast %cst_142 : f32 to vector<16x1xf32>
    %275 = arith.divf %273, %274 : vector<16x1xf32>
    %276 = vector.broadcast %275 : vector<16x1xf32> to vector<16x32xf32>
    %277 = arith.subf %271, %276 : vector<16x32xf32>
    %278 = arith.mulf %277, %277 : vector<16x32xf32>
    %cst_143 = arith.constant dense<0.000000e+00> : vector<16xf32>
    %279 = vector.multi_reduction <add>, %278, %cst_143 [1] : vector<16x32xf32> to vector<16xf32>
    %280 = vector.shape_cast %279 : vector<16xf32> to vector<16x1xf32>
    %cst_144 = arith.constant 3.200000e+01 : f32
    %281 = vector.broadcast %cst_144 : f32 to vector<16x1xf32>
    %282 = arith.divf %280, %281 : vector<16x1xf32>
    %283 = vector.broadcast %275 : vector<16x1xf32> to vector<16x32xf32>
    %284 = arith.subf %271, %283 : vector<16x32xf32>
    %cst_145 = arith.constant 9.99999996E-13 : f32
    %285 = vector.broadcast %cst_145 : f32 to vector<16x1xf32>
    %286 = arith.addf %282, %285 : vector<16x1xf32>
    %287 = math.rsqrt %286 : vector<16x1xf32>
    %288 = vector.broadcast %287 : vector<16x1xf32> to vector<16x32xf32>
    %289 = arith.mulf %284, %288 : vector<16x32xf32>
    %290 = vector.broadcast %169 : vector<1x32xf32> to vector<16x32xf32>
    %291 = arith.mulf %289, %290 : vector<16x32xf32>
    %292 = vector.broadcast %170 : vector<1x32xf32> to vector<16x32xf32>
    %293 = arith.addf %291, %292 : vector<16x32xf32>
    %c0_146 = arith.constant 0 : index
    %c0_147 = arith.constant 0 : index
    %294 = vector.load %arg9[%c0_146, %c0_147] : memref<16x32xf32, #tpu.memory_space<vmem>>, vector<16x32xf32>
    tpu.vector_store %arg9[%c0_146, %c0_147], %293 {strides = array<i32>} : memref<16x32xf32, #tpu.memory_space<vmem>>, vector<16x32xf32>,
    return
  }
  func.func @transform_0(%arg0: i32) -> (i32, i32) {
    %c0_i32 = arith.constant 0 : i32
    %c0_i32_0 = arith.constant 0 : i32
    return %arg0, %c0_i32 : i32, i32
  }
  func.func @transform_1(%arg0: i32) -> (i32, i32) {
    %c0_i32 = arith.constant 0 : i32
    %c0_i32_0 = arith.constant 0 : i32
    %c0_i32_1 = arith.constant 0 : i32
    return %c0_i32, %c0_i32_0 : i32, i32
  }
  func.func @transform_2(%arg0: i32) -> (i32, i32, i32) {
    %c0_i32 = arith.constant 0 : i32
    %c0_i32_0 = arith.constant 0 : i32
    %c0_i32_1 = arith.constant 0 : i32
    return %arg0, %c0_i32, %c0_i32_0 : i32, i32, i32
  }
  func.func @transform_3(%arg0: i32) -> (i32, i32, i32) {
    %c0_i32 = arith.constant 0 : i32
    %c0_i32_0 = arith.constant 0 : i32
    %c0_i32_1 = arith.constant 0 : i32
    %c0_i32_2 = arith.constant 0 : i32
    return %c0_i32, %c0_i32_0, %c0_i32_1 : i32, i32, i32
  }
  func.func @transform_4(%arg0: i32) -> (i32, i32, i32) {
    %c0_i32 = arith.constant 0 : i32
    %c0_i32_0 = arith.constant 0 : i32
    %c0_i32_1 = arith.constant 0 : i32
    %c0_i32_2 = arith.constant 0 : i32
    return %c0_i32, %c0_i32_0, %c0_i32_1 : i32, i32, i32
  }
  func.func @transform_5(%arg0: i32) -> (i32, i32, i32) {
    %c0_i32 = arith.constant 0 : i32
    %c0_i32_0 = arith.constant 0 : i32
    %c0_i32_1 = arith.constant 0 : i32
    %c0_i32_2 = arith.constant 0 : i32
    return %c0_i32, %c0_i32_0, %c0_i32_1 : i32, i32, i32
  }
  func.func @transform_6(%arg0: i32) -> (i32, i32, i32) {
    %c0_i32 = arith.constant 0 : i32
    %c0_i32_0 = arith.constant 0 : i32
    %c0_i32_1 = arith.constant 0 : i32
    %c0_i32_2 = arith.constant 0 : i32
    return %c0_i32, %c0_i32_0, %c0_i32_1 : i32, i32, i32
  }
  func.func @transform_7(%arg0: i32) -> (i32, i32, i32) {
    %c0_i32 = arith.constant 0 : i32
    %c0_i32_0 = arith.constant 0 : i32
    %c0_i32_1 = arith.constant 0 : i32
    %c0_i32_2 = arith.constant 0 : i32
    return %c0_i32, %c0_i32_0, %c0_i32_1 : i32, i32, i32
  }
  func.func @transform_8(%arg0: i32) -> (i32, i32) {
    %c0_i32 = arith.constant 0 : i32
    %c0_i32_0 = arith.constant 0 : i32
    return %arg0, %c0_i32 : i32, i32
  }
}

</mosaic_0001>

<bundles_post_ra>
// kernel: tpu_custom_call.1
= control target key start
LH: loop header
LB: loop body
LE: loop exit
PB: predicated region body
PF: predicated region fallthrough
CT: control target
= control target key end

     0   :  { %13 = vsyncpa [#allocation5], 0  ;;  %s13738_s0 = inlined_call_operand.hbm [shape: f32[16,32], index: 0, kind: input, shape index: {}]   ;;  %s13739_s1 = inlined_call_operand.vmem [shape: f32[2,32], index: 1, kind: input, shape index: {}]   ;;  %s13740_s2 = inlined_call_operand.vmem [shape: f32[1,64,64], index: 2, kind: input, shape index: {}]   ;;  %s13741_s3 = inlined_call_operand.vmem [shape: f32[2,32,96], index: 3, kind: input, shape index: {}]   ;;  %s13742_s4 = inlined_call_operand.vmem [shape: f32[2,32,32], index: 4, kind: input, shape index: {}]   ;;  %s13743_s5 = inlined_call_operand.hbm [shape: f32[2,32,64], index: 5, kind: input, shape index: {}]   ;;  %s13744_s6 = inlined_call_operand.vmem [shape: f32[2,64,32], index: 6, kind: input, shape index: {}]   ;;  %s13745_s7 = inlined_call_operand.vmem [shape: f32[2,8,96], index: 7, kind: input, shape index: {}]   ;;  %s13746_s8 = inlined_call_operand.hbm [shape: f32[16,32], index: 8, kind: output, shape index: {}]  }
   0x1   :  { %14 = vsyncpa [#allocation8], 0 }
   0x2   :  { %15 = vsyncpa [#allocation6], 0  ;;  %s12001_s27 = smov [#allocation4]   ;;  %s11929_s9 = scalar_lea.hbm %s13738_s0, 256 }
   0x3   :  { %s21_s28 = sshll.u32 %s12001_s27, 4  ;;  %p11930_p0 = scmp.ne.s32.totalorder %s13738_s0, %s11929_s9  ;;  %s22_s28 = int_to_ptr.vmem [resolvable:$true] %s21_s28 }
   0x4   :  { %p11933_p1 = scmp.lt.u32.totalorder %s11929_s9, %s13738_s0 }
   0x6   :  { %p11935_p2 = pnand %p11933_p1, %p11930_p0 }
   0x8   :  { %11938 = shalt.err (!%p11935_p2)
}
   0x9   :  { %s11939_s14 = scalar_lea.vmem %s22_s28, 256  ;;  %p11944_p4 = scmp.lt.s32.totalorder %s22_s28, %s22_s28 }
   0xa   :  { %p11940_p3 = scmp.ne.s32.totalorder %s22_s28, %s11939_s14  ;;  %p11945_p5 = scmp.lt.s32.totalorder %s11939_s14, %s11939_s14 }
   0xc   :  { %p11946_p6 = por %p11945_p5, %p11944_p4 }
   0xe   :  { %p11947_p7 = pnand %p11946_p6, %p11940_p3 }
  0x10   :  { %11950 = shalt.err (!%p11947_p7)
}
  0x11   :  { %s12002_s15 = smov 128   ;;  %s12003_s16 = smov 8  }
  0x12   :  { %27 = dma.hbm_to_vmem [thread:$0]  %s13738_s0, 256, %s22_s28, [#allocation5], %s12002_s15, %s12002_s15, %s12003_s16  }
  0x13   :  { %s12004_s19 = smov [#allocation7]   ;;  %s11951_s23 = scalar_lea.hbm %s13743_s5, 1024 }
  0x14   :  { %s41_s20 = sshll.u32 %s12004_s19, 4  ;;  %p11952_p8 = scmp.ne.s32.totalorder %s13743_s5, %s11951_s23  ;;  %s42_s20 = int_to_ptr.vmem [resolvable:$true] %s41_s20 }
  0x15   :  { %p11955_p9 = scmp.lt.u32.totalorder %s11951_s23, %s13743_s5 }
  0x17   :  { %p11957_p10 = pnand %p11955_p9, %p11952_p8 }
  0x19   :  { %11960 = shalt.err (!%p11957_p10)
}
  0x1a   :  { %s11961_s29 = scalar_lea.vmem %s42_s20, 1024  ;;  %p11966_p12 = scmp.lt.s32.totalorder %s42_s20, %s42_s20 }
  0x1b   :  { %p11962_p11 = scmp.ne.s32.totalorder %s42_s20, %s11961_s29  ;;  %p11967_p13 = scmp.lt.s32.totalorder %s11961_s29, %s11961_s29 }
  0x1d   :  { %p11968_p0 = por %p11967_p13, %p11966_p12 }
  0x1f   :  { %p11969_p1 = pnand %p11968_p0, %p11962_p11 }
  0x21   :  { %11972 = shalt.err (!%p11969_p1)
}
  0x22   :  { %47 = dma.hbm_to_vmem [thread:$0]  %s13743_s5, 1024, %s42_s20, [#allocation8], %s12002_s15, %s12002_s15, %s12003_s16  }
  0x23   :  { %11995 = dma.done.wait [#allocation5], 256  }
  0x24   :  { %11996 = vsyncadd [#allocation5], 4294967040 }
  0x25   :  { %11997 = dma.done.wait [#allocation8], 1024  }
  0x26   :  { %11998 = vsyncadd [#allocation8], 4294966272  ;;  %vm61_vm0 = vcmask 261120   ;;  %v59_v0 = vld [vmem:[#allocation4] sm:$0xff]  ;;  %v60_v1 = vld [vmem:[#allocation4 + $0x8] sm:$0xff]  ;;  %v89_v48 = vlaneseq  ;;  %vm652_vm1 = vcmask 195584  }
  0x27   :  { %v62_v2 = vsel %vm61_vm0, %v59_v0, 0.0  ;;  %v65_v3 = vsel %vm61_vm0, %v60_v1, 0.0  ;;  %v110_v14 = vld [vmem:[%s13741_s3] sm:$0xff]  ;;  %v111_v15 = vld [vmem:[%s13741_s3 + $0x8] sm:$0xff]  ;;  %v112_v16 = vld [vmem:[%s13741_s3 + $0x10] sm:$0xff]  ;;  %s12005_s20 = smov 80  }
  0x28   :  { %63 = vadd.xlane.f32.xlu0 %v62_v2  ;;  %v125_v17 = vand.u32 4294901760, %v110_v14  ;;  %v128_v18 = vand.u32 4294901760, %v111_v15  ;;  %v113_v19 = vld [vmem:[%s13741_s3 + $0x18] sm:$0xff]  ;;  %v131_v20 = vand.u32 4294901760, %v112_v16  ;;  %v12112_v52 = vshrl.u32 %v89_v48, 7  ;;  %s12006_s21 = smov 104  }
  0x29   :  { %v134_v21 = vand.u32 4294901760, %v113_v19  ;;  %v58_v55 = vld [vmem:[%s13739_s1] sm:$0x3]  ;;  %s12007_s22 = smov 56   ;;  %vm713_vm2 = vcmask 64512   ;;  %s12008_s23 = smov 120  }
  0x2a   :  { %v12104_v22 = vpack.c.bf16 %v128_v18, %v125_v17  ;;  %v215_v24 = vsub.f32 %v110_v14, %v125_v17  ;;  %v222_v25 = vsub.f32 %v111_v15, %v128_v18  ;;  %v229_v30 = vsub.f32 %v112_v16, %v131_v20  ;;  %v109_v15 = vld [vmem:[%s13745_s7] sm:$0xff]  ;;  %s12009_s18 = smov 112   ;;  %s12010_s28 = smov 24  }
  0x2b   :  { %v12106_v23 = vpack.c.bf16 %v134_v21, %v131_v20  ;;  %v236_v31 = vsub.f32 %v113_v19, %v134_v21  ;;  %v12115_v54 = vsub.s32 0, %v12112_v52  ;;  %v12121_v56 = vsub.s32 1, %v12112_v52  ;;  %s12011_s5 = smov 16  }
  0x2c   :  { %66 = vadd.xlane.f32.xlu0 %v65_v3  ;;  %10680 = vmatprep.subr.bf16.mxu0 %v12104_v22  ;;  %v216_v26 = vand.u32 4294901760, %v215_v24  ;;  %v223_v27 = vand.u32 4294901760, %v222_v25  ;;  %v230_v34 = vand.u32 4294901760, %v229_v30  ;;  %v10695_v42 = vpack.c.bf16 %v222_v25, %v215_v24 }
  0x2d   :  { %10682 = vmatpush3.bf16.msra.mxu0 %v12104_v22  ;;  %v237_v35 = vand.u32 4294901760, %v236_v31  ;;  %v10699_v43 = vpack.c.bf16 %v236_v31, %v229_v30  ;;  %v92_v57 = vrot.slane %v58_v55, %v12115_v54  ;;  %v98_v60 = vrot.slane %v58_v55, %v12121_v56 }
  0x2e   :  { %10684 = vmatprep.subr.bf16.mxu0 %v12106_v23  ;;  %v217_v28 = vsub.f32 %v215_v24, %v216_v26  ;;  %v224_v29 = vsub.f32 %v222_v25, %v223_v27  ;;  %v231_v37 = vsub.f32 %v229_v30, %v230_v34  ;;  %v10711_v44 = vpack.c.bf16 %v223_v27, %v216_v26 }
  0x2f   :  { %v238_v38 = vsub.f32 %v236_v31, %v237_v35  ;;  %v10715_v45 = vpack.c.bf16 %v237_v35, %v230_v34  ;;  %v117_v16 = vrot.slane %v109_v15, %v12115_v54  ;;  %vm1584_vm3 = vcmask 523264  }
  0x30   :  { %v218_v32 = vand.u32 4294901760, %v217_v28  ;;  %v225_v33 = vand.u32 4294901760, %v224_v29  ;;  %v232_v39 = vand.u32 4294901760, %v231_v37  ;;  %vm2564_vm4 = vcmask 130112  }
  0x31   :  { %10686 = vmatpush3.bf16.msra.mxu0 %v12106_v23  ;;  %v239_v40 = vand.u32 4294901760, %v238_v38  ;;  %vm2570_vm5 = vcmask 195712   ;;  %vm2576_vm6 = vcmask 261312  }
  0x32   :  { %v10687_v36 = vpack.c.bf16 %v225_v33, %v218_v32 }
  0x33   :  { %v10691_v41 = vpack.c.bf16 %v239_v40, %v232_v39 }
  0x34   :  { %10688 = vmatprep.subr.bf16.mxu0 %v10687_v36 }
  0xb5   :  { %v64_v4 = vpop.xlane.xlu0 %63 }
  0xb6   :  { %v69_v5 = vmul.f32 0.03125, %v64_v4 }
  0xb8   :  { %v71_v6 = vsub.f32 %v59_v0, %v69_v5 }
  0xb9   :  { %v67_v7 = vpop.xlane.xlu0 %66 }
  0xba   :  { %v70_v8 = vmul.f32 0.03125, %v67_v7  ;;  %v73_v9 = vmul.f32 %v71_v6, %v71_v6 }
  0xbc   :  { %v72_v10 = vsub.f32 %v60_v1, %v70_v8  ;;  %v75_v11 = vsel %vm61_vm0, %v73_v9, 0.0 }
  0xbd   :  { %76 = vadd.xlane.f32.xlu1 %v75_v11 }
  0xbe   :  { %v74_v12 = vmul.f32 %v72_v10, %v72_v10 }
  0xc0   :  { %v78_v13 = vsel %vm61_vm0, %v74_v12, 0.0 }
  0xc1   :  { %79 = vadd.xlane.f32.xlu1 %v78_v13 }
 0x14a   :  { %v77_v46 = vpop.xlane.xlu1 %76 }
 0x14b   :  { %v81_v47 = vmul.f32 0.03125, %v77_v46 }
 0x14d   :  { %v83_v49 = vadd.f32 1e-12, %v81_v47 }
 0x14e   :  { %v80_v50 = vpop.xlane.xlu1 %79 }
 0x14f   :  { %11827 = vrsqrt.f32 %v83_v49  ;;  %v82_v51 = vmul.f32 0.03125, %v80_v50 }
 0x151   :  { %v84_v53 = vadd.f32 1e-12, %v82_v51 }
 0x153   :  { %11829 = vrsqrt.f32 %v84_v53 }
 0x159   :  { %v11828_v58 = vpop.eup %11827 }
 0x15a   :  { %v87_v59 = vmul.f32 %v11828_v58, %v71_v6 }
 0x15c   :  { %v93_v61 = vmul.f32 %v92_v57, %v87_v59 }
 0x15d   :  { %v11830_v62 = vpop.eup %11829 }
 0x15e   :  { %v88_v63 = vmul.f32 %v11830_v62, %v72_v10  ;;  %v12125_v0 = vadd.f32 %v98_v60, %v93_v61 }
 0x160   :  { %v119_v1 = vsel %vm61_vm0, %v12125_v0, 0  ;;  %v94_v2 = vmul.f32 %v92_v57, %v88_v63 }
 0x161   :  { %v193_v3 = vand.u32 4294901760, %v119_v1 }
 0x162   :  { %v12129_v4 = vadd.f32 %v98_v60, %v94_v2 }
 0x163   :  { %v194_v5 = vsub.f32 %v119_v1, %v193_v3 }
 0x164   :  { %v122_v7 = vsel %vm61_vm0, %v12129_v4, 0 }
 0x165   :  { %v195_v8 = vand.u32 4294901760, %v194_v5  ;;  %v203_v6 = vand.u32 4294901760, %v122_v7 }
 0x167   :  { %v196_v9 = vsub.f32 %v194_v5, %v195_v8  ;;  %v204_v11 = vsub.f32 %v122_v7, %v203_v6 }
 0x169   :  { %v197_v12 = vand.u32 4294901760, %v196_v9  ;;  %v205_v13 = vand.u32 4294901760, %v204_v11 }
 0x16b   :  { %9391 = vmatprep.mubr.f32.mxu0 %v197_v12  ;;  %v206_v10 = vsub.f32 %v204_v11, %v205_v13 }
 0x16d   :  { %v207_v14 = vand.u32 4294901760, %v206_v10 }
 0x16f   :  { %9392 = vmatmul.mubr.f32.vlgmr.msra.gmra.mrb[0].mxu0 %v207_v14 }
 0x170   :  { %10690 = vmatpush3.bf16.msra.mxu0 %v10687_v36  ;;  %9402 = vmatprep.mubr.f32.mxu0 %v193_v3 }
 0x171   :  { %10692 = vmatprep.subr.bf16.mxu0 %v10691_v41 }
 0x174   :  { %10694 = vmatpush3.bf16.msra.mxu0 %v10691_v41 }
 0x175   :  { %10696 = vmatprep.subr.bf16.mxu0 %v10695_v42 }
 0x177   :  { %9403 = vmatmul.mubr.f32.vlgmr.msra.gmra.mrb[0].mxu0 %v203_v6 }
 0x178   :  { %10698 = vmatpush3.bf16.msra.mxu0 %v10695_v42  ;;  %9413 = vmatprep.mubr.f32.mxu0 %v194_v5 }
 0x179   :  { %10700 = vmatprep.subr.bf16.mxu0 %v10699_v43 }
 0x17c   :  { %10702 = vmatpush3.bf16.msra.mxu0 %v10699_v43 }
 0x17d   :  { %10704 = vmatprep.subr.bf16.mxu0 %v12104_v22 }
 0x17f   :  { %9414 = vmatmul.mubr.f32.vlgmr.msra.gmra.mrb[0].mxu0 %v204_v11 }
 0x180   :  { %10706 = vmatpush3.bf16.msra.mxu0 %v12104_v22  ;;  %9424 = vmatprep.mubr.f32.mxu0 %v195_v8 }
 0x181   :  { %10708 = vmatprep.subr.bf16.mxu0 %v12106_v23 }
 0x184   :  { %10710 = vmatpush3.bf16.msra.mxu0 %v12106_v23 }
 0x185   :  { %10712 = vmatprep.subr.bf16.mxu0 %v10711_v44 }
 0x187   :  { %9425 = vmatmul.mubr.f32.vlgmr.msra.gmra.mrb[0].mxu0 %v205_v13 }
 0x188   :  { %10714 = vmatpush3.bf16.msra.mxu0 %v10711_v44  ;;  %9435 = vmatprep.mubr.f32.mxu0 %v193_v3 }
 0x189   :  { %10716 = vmatprep.subr.bf16.mxu0 %v10715_v45 }
 0x18c   :  { %10718 = vmatpush3.bf16.msra.mxu0 %v10715_v45 }
 0x18d   :  { %10720 = vmatprep.subr.bf16.mxu0 %v12104_v22 }
 0x18f   :  { %9436 = vmatmul.mubr.f32.vlgmr.msra.gmra.mrb[0].mxu0 %v203_v6 }
 0x190   :  { %10722 = vmatpush3.bf16.msra.mxu0 %v12104_v22  ;;  %9446 = vmatprep.mubr.f32.mxu0 %v193_v3 }
 0x191   :  { %10724 = vmatprep.subr.bf16.mxu0 %v12106_v23 }
 0x194   :  { %10726 = vmatpush3.bf16.msra.mxu0 %v12106_v23 }
 0x197   :  { %9447 = vmatmul.mubr.f32.vlgmr.msra.gmra.mrb[0].mxu0 %v203_v6 }
 0x26a   :  { %v9448_v17 = vpop.f32.mrb[0].mxu0 }
 0x26b   :  { %v11543_v18 = vadd.f32 %v9448_v17, %v117_v16  ;;  %v642_v19 = vpop.f32.mrb[1].mxu0 }
 0x26c   :  { %v11544_v20 = vadd.f32 %v642_v19, %v117_v16 }
 0x26d   :  { %667 = vst.msk [vmem:[#allocation2 + $0x20] sm:$0xff] %vm652_vm1, %v11543_v18 }
 0x26e   :  { %653 = vst.msk [vmem:[#allocation2] sm:$0xff] %vm652_vm1, %v11544_v20  ;;  %659 = vrot.lane.b32.xlu1 %v11544_v20, %s12005_s20  ;;  %655 = vrot.lane.b32.xlu0 %v11544_v20, %s12006_s21 }
 0x272   :  { %663 = vrot.lane.b32.xlu1 %v11544_v20, %s12007_s22  ;;  %673 = vrot.lane.b32.xlu0 %v11543_v18, %s12005_s20 }
 0x274   :  { %v12184_v37 = vld [vmem:[#allocation2 + $0x20] sm:$0xff] }
 0x275   :  { %v12151_v21 = vld [vmem:[#allocation2] sm:$0xff] }
 0x276   :  { %669 = vrot.lane.b32.xlu1 %v11543_v18, %s12006_s21  ;;  %697 = vrot.lane.b32.xlu0 %v12151_v21, %s12008_s23  ;;  %v714_v22 = vsel %vm713_vm2, %v12151_v21, 0 }
 0x277   :  { %v12158_v23 = vand.u32 4294901760, %v714_v22 }
 0x279   :  { %9493 = vmatprep.mubr.f32.mxu1 %v12158_v23  ;;  %v12162_v24 = vsub.f32 %v714_v22, %v12158_v23 }
 0x27a   :  { %677 = vrot.lane.b32.xlu1 %v11543_v18, %s12007_s22 }
 0x27b   :  { %v821_v25 = vand.u32 4294901760, %v12162_v24 }
 0x27d   :  { %v822_v26 = vsub.f32 %v12162_v24, %v821_v25 }
 0x27f   :  { %v823_v27 = vand.u32 4294901760, %v822_v26 }
 0x281   :  { %9465 = vmatprep.mubr.f32.mxu0 %v823_v27 }
 0x2e0   :  { %v660_v28 = vpop.permute.xlu1 %659  ;;  %v656_v29 = vpop.permute.xlu0 %655 }
 0x2e1   :  { %662 = vst.msk [vmem:[#allocation2 + $0x10] sm:$0xff] %vm652_vm1, %v660_v28  ;;  %658 = vst.msk [vmem:[#allocation2 + $0x8] sm:$0xff] %vm652_vm1, %v656_v29 }
 0x2e4   :  { %v664_v30 = vpop.permute.xlu1 %663  ;;  %v674_v31 = vpop.permute.xlu0 %673 }
 0x2e5   :  { %666 = vst.msk [vmem:[#allocation2 + $0x18] sm:$0xff] %vm652_vm1, %v664_v30  ;;  %676 = vst.msk [vmem:[#allocation2 + $0x30] sm:$0xff] %vm652_vm1, %v674_v31 }
 0x2e8   :  { %v670_v32 = vpop.permute.xlu1 %669  ;;  %v12173_v33 = vld [vmem:[#allocation2 + $0x8] sm:$0xff]  ;;  %v12175_v34 = vld [vmem:[#allocation2 + $0x10] sm:$0xff]  ;;  %v698_v41 = vpop.permute.xlu0 %697 }
 0x2e9   :  { %672 = vst.msk [vmem:[#allocation2 + $0x28] sm:$0xff] %vm652_vm1, %v670_v32  ;;  %699 = vrot.lane.b32.xlu1 %v12173_v33, %s12008_s23  ;;  %701 = vrot.lane.b32.xlu0 %v12175_v34, %s12008_s23  ;;  %v730_v42 = vsel %vm713_vm2, %v698_v41, 0 }
 0x2ea   :  { %v747_v43 = vand.u32 4294901760, %v730_v42 }
 0x2ec   :  { %v678_v35 = vpop.permute.xlu1 %677  ;;  %v12182_v36 = vld [vmem:[#allocation2 + $0x18] sm:$0xff]  ;;  %v12193_v39 = vld [vmem:[#allocation2 + $0x30] sm:$0xff]  ;;  %v12204_v44 = vsub.f32 %v730_v42, %v747_v43 }
 0x2ed   :  { %680 = vst.msk [vmem:[#allocation2 + $0x38] sm:$0xff] %vm652_vm1, %v678_v35  ;;  %703 = vrot.lane.b32.xlu1 %v12182_v36, %s12008_s23  ;;  %705 = vrot.lane.b32.xlu0 %v12184_v37, %s12008_s23 }
 0x2ee   :  { %v902_v51 = vand.u32 4294901760, %v12204_v44 }
 0x2f0   :  { %v12191_v38 = vld [vmem:[#allocation2 + $0x28] sm:$0xff]  ;;  %v903_v3 = vsub.f32 %v12204_v44, %v902_v51 }
 0x2f1   :  { %707 = vrot.lane.b32.xlu1 %v12191_v38, %s12008_s23  ;;  %709 = vrot.lane.b32.xlu0 %v12193_v39, %s12008_s23 }
 0x2f2   :  { %v904_v17 = vand.u32 4294901760, %v903_v3  ;;  %v722_v3 = vsel %vm713_vm2, %v12184_v37, 0 }
 0x2f4   :  { %v12199_v40 = vld [vmem:[#allocation2 + $0x38] sm:$0xff] }
 0x2f5   :  { %711 = vrot.lane.b32.xlu1 %v12199_v40, %s12008_s23 }
 0x35b   :  { %v700_v45 = vpop.permute.xlu1 %699  ;;  %v702_v46 = vpop.permute.xlu0 %701 }
 0x35c   :  { %v732_v47 = vsel %vm713_vm2, %v700_v45, 0  ;;  %v734_v48 = vsel %vm713_vm2, %v702_v46, 0  ;;  %v716_v46 = vsel %vm713_vm2, %v12173_v33, 0 }
 0x35d   :  { %v750_v49 = vand.u32 4294901760, %v732_v47  ;;  %v753_v50 = vand.u32 4294901760, %v734_v48 }
 0x35f   :  { %v12209_v53 = vpack.c.bf16 %v750_v49, %v747_v43  ;;  %v12211_v55 = vsub.f32 %v732_v47, %v750_v49  ;;  %v12213_v57 = vsub.f32 %v734_v48, %v753_v50  ;;  %v704_v58 = vpop.permute.xlu1 %703  ;;  %v706_v59 = vpop.permute.xlu0 %705 }
 0x360   :  { %v736_v60 = vsel %vm713_vm2, %v704_v58, 0  ;;  %v738_v61 = vsel %vm713_vm2, %v706_v59, 0 }
 0x361   :  { %v756_v62 = vand.u32 4294901760, %v736_v60  ;;  %v759_v63 = vand.u32 4294901760, %v738_v61  ;;  %10728 = vmatprep.subr.bf16.mxu0 %v12209_v53  ;;  %v909_v1 = vand.u32 4294901760, %v12211_v55  ;;  %v916_v2 = vand.u32 4294901760, %v12213_v57 }
 0x362   :  { %10730 = vmatpush3.bf16.xpose.msra.mxu0 %v12209_v53 }
 0x363   :  { %v12224_v5 = vpack.c.bf16 %v756_v62, %v753_v50  ;;  %v12226_v7 = vsub.f32 %v736_v60, %v756_v62  ;;  %v12228_v8 = vsub.f32 %v738_v61, %v759_v63  ;;  %v708_v6 = vpop.permute.xlu1 %707  ;;  %v710_v9 = vpop.permute.xlu0 %709  ;;  %v910_v13 = vsub.f32 %v12211_v55, %v909_v1 }
 0x364   :  { %v740_v11 = vsel %vm713_vm2, %v708_v6, 0  ;;  %v742_v12 = vsel %vm713_vm2, %v710_v9, 0  ;;  %v917_v16 = vsub.f32 %v12213_v57, %v916_v2  ;;  %v718_v50 = vsel %vm713_vm2, %v12175_v34, 0 }
 0x365   :  { %v923_v10 = vand.u32 4294901760, %v12226_v7  ;;  %v762_v14 = vand.u32 4294901760, %v740_v11  ;;  %v765_v15 = vand.u32 4294901760, %v742_v12  ;;  %10732 = vmatprep.subr.bf16.mxu0 %v12224_v5  ;;  %v911_v18 = vand.u32 4294901760, %v910_v13 }
 0x366   :  { %v930_v20 = vand.u32 4294901760, %v12228_v8  ;;  %v918_v42 = vand.u32 4294901760, %v917_v16  ;;  %v12264_v61 = vand.u32 4294901760, %v716_v46 }
 0x367   :  { %v924_v19 = vsub.f32 %v12226_v7, %v923_v10  ;;  %v12240_v22 = vsub.f32 %v740_v11, %v762_v14  ;;  %v712_v26 = vpop.permute.xlu1 %711  ;;  %v12242_v27 = vpack.c.bf16 %v762_v14, %v759_v63  ;;  %v10743_v29 = vpack.c.bf16 %v911_v18, %v904_v17 }
 0x368   :  { %v744_v28 = vsel %vm713_vm2, %v712_v26, 0  ;;  %v12245_v30 = vpack.c.bf16 %v923_v10, %v916_v2  ;;  %v12248_v32 = vsub.f32 %v742_v12, %v765_v15  ;;  %v931_v47 = vsub.f32 %v12228_v8, %v930_v20 }
 0x369   :  { %v937_v31 = vand.u32 4294901760, %v12240_v22  ;;  %v768_v35 = vand.u32 4294901760, %v744_v28  ;;  %v925_v41 = vand.u32 4294901760, %v924_v19  ;;  %10744 = vmatprep.subr.bf16.mxu1 %v10743_v29  ;;  %v12268_v63 = vand.u32 4294901760, %v718_v50 }
 0x36a   :  { %10734 = vmatpush3.bf16.xpose.msra.mxu0 %v12224_v5  ;;  %10746 = vmatpush3.bf16.xpose.msra.mxu1 %v10743_v29  ;;  %v944_v58 = vand.u32 4294901760, %v12248_v32  ;;  %v720_v2 = vsel %vm713_vm2, %v12182_v36, 0  ;;  %v932_v6 = vand.u32 4294901760, %v931_v47  ;;  %v12279_v13 = vsub.f32 %v716_v46, %v12264_v61 }
 0x36b   :  { %v938_v43 = vsub.f32 %v12240_v22, %v937_v31  ;;  %v12252_v45 = vsub.f32 %v744_v28, %v768_v35  ;;  %10736 = vmatprep.subr.bf16.mxu0 %v12242_v27  ;;  %v10747_v48 = vpack.c.bf16 %v925_v41, %v918_v42  ;;  %v12258_v49 = vpack.c.bf16 %v937_v31, %v930_v20 }
 0x36c   :  { %v12274_v9 = vpack.c.bf16 %v768_v35, %v765_v15  ;;  %v12281_v10 = vand.u32 4294901760, %v720_v2  ;;  %v12283_v14 = vand.u32 4294901760, %v722_v3  ;;  %v12287_v16 = vsub.f32 %v718_v50, %v12268_v63 }
 0x36d   :  { %v951_v59 = vand.u32 4294901760, %v12252_v45  ;;  %10748 = vmatprep.subr.bf16.mxu1 %v10747_v48  ;;  %v939_v60 = vand.u32 4294901760, %v938_v43  ;;  %v724_v15 = vsel %vm713_vm2, %v12191_v38, 0  ;;  %v945_v17 = vsub.f32 %v12248_v32, %v944_v58 }
 0x36e   :  { %v726_v18 = vsel %vm713_vm2, %v12193_v39, 0  ;;  %v12295_v20 = vsub.f32 %v720_v2, %v12281_v10  ;;  %v12298_v26 = vsub.f32 %v722_v3, %v12283_v14  ;;  %v12300_v28 = vand.u32 4294901760, %v724_v15 }
 0x36f   :  { %v12266_v62 = vpack.c.bf16 %v951_v59, %v944_v58  ;;  %v952_v11 = vsub.f32 %v12252_v45, %v951_v59  ;;  %v10751_v12 = vpack.c.bf16 %v939_v60, %v932_v6  ;;  %v831_v29 = vand.u32 4294901760, %v12279_v13 }
 0x370   :  { %v12303_v31 = vand.u32 4294901760, %v726_v18  ;;  %v728_v35 = vsel %vm713_vm2, %v12199_v40, 0  ;;  %v946_v41 = vand.u32 4294901760, %v945_v17  ;;  %v841_v42 = vand.u32 4294901760, %v12287_v16 }
 0x371   :  { %v953_v19 = vand.u32 4294901760, %v952_v11  ;;  %v12310_v46 = vsub.f32 %v724_v15, %v12300_v28  ;;  %v12312_v47 = vand.u32 4294901760, %v728_v35  ;;  %v851_v50 = vand.u32 4294901760, %v12295_v20 }
 0x372   :  { %10738 = vmatpush3.bf16.xpose.msra.mxu0 %v12242_v27  ;;  %10750 = vmatpush3.bf16.xpose.msra.mxu1 %v10747_v48  ;;  %v832_v48 = vsub.f32 %v12279_v13, %v831_v29  ;;  %v12319_v58 = vsub.f32 %v726_v18, %v12303_v31  ;;  %v842_v59 = vsub.f32 %v12287_v16, %v841_v42  ;;  %v13747_v60 = vand.u32 4294901760, %v12298_v26 }
 0x373   :  { %10740 = vmatprep.subr.bf16.mxu0 %v12274_v9  ;;  %10752 = vmatprep.subr.bf16.mxu1 %v10751_v12  ;;  %v10755_v43 = vpack.c.bf16 %v953_v19, %v946_v41  ;;  %v12326_v2 = vsub.f32 %v728_v35, %v12312_v47  ;;  %v852_v6 = vsub.f32 %v12295_v20, %v851_v50  ;;  %v871_v11 = vand.u32 4294901760, %v12310_v46 }
 0x374   :  { %v833_v3 = vand.u32 4294901760, %v832_v48  ;;  %v862_v15 = vsub.f32 %v12298_v26, %v13747_v60  ;;  %v881_v17 = vand.u32 4294901760, %v12319_v58  ;;  %v10759_v18 = vpack.c.bf16 %v12211_v55, %v12204_v44 }
 0x375   :  { %v853_v19 = vand.u32 4294901760, %v852_v6  ;;  %v872_v35 = vsub.f32 %v12310_v46, %v871_v11  ;;  %v891_v41 = vand.u32 4294901760, %v12326_v2 }
 0x376   :  { %v863_v48 = vand.u32 4294901760, %v862_v15 }
 0x377   :  { %v873_v60 = vand.u32 4294901760, %v872_v35 }
 0x37a   :  { %10742 = vmatpush3.bf16.xpose.msra.mxu0 %v12274_v9  ;;  %10754 = vmatpush3.bf16.xpose.msra.mxu1 %v10751_v12  ;;  %v843_v12 = vand.u32 4294901760, %v842_v59  ;;  %v882_v59 = vsub.f32 %v12319_v58, %v881_v17 }
 0x37b   :  { %10756 = vmatprep.subr.bf16.mxu1 %v10755_v43 }
 0x381   :  { %9466 = vmatmul.mubr.f32.vlgmr.msra.gmra.mrb[2].mxu0 %v833_v3  ;;  %v892_v3 = vsub.f32 %v12326_v2, %v891_v41 }
 0x382   :  { %9468 = vmatprep.mubr.f32.mxu0 %v843_v12  ;;  %10758 = vmatpush3.bf16.xpose.msra.mxu1 %v10755_v43  ;;  %v883_v12 = vand.u32 4294901760, %v882_v59  ;;  %v10763_v43 = vpack.c.bf16 %v12226_v7, %v12213_v57  ;;  %v10771_v57 = vpack.c.bf16 %v12252_v45, %v12248_v32  ;;  %v10791_v7 = vpack.c.bf16 %v909_v1, %v902_v51  ;;  %v104_v32 = vld [vmem:[%s13740_s2 + $0x18] sm:$0xff] }
 0x383   :  { %10760 = vmatprep.subr.bf16.mxu1 %v10759_v18  ;;  %v893_v6 = vand.u32 4294901760, %v892_v3 }
 0x385   :  { %9469 = vmatmul.mubr.f32.gmra.mrb[4].mxu0 %v853_v19 }
 0x386   :  { %9471 = vmatprep.mubr.f32.mxu0 %v863_v48 }
 0x389   :  { %9472 = vmatmul.mubr.f32.gmra.mrb[6].mxu0 %v873_v60  ;;  %9494 = vmatmul.mubr.f32.vlgmr.msra.gmra.mrb[0].mxu1 %v12264_v61  ;;  %v10767_v60 = vpack.c.bf16 %v12240_v22, %v12228_v8  ;;  %v102_v8 = vld [vmem:[%s13740_s2 + $0x8] sm:$0xff]  ;;  %v101_v22 = vld [vmem:[%s13740_s2] sm:$0xff] }
 0x38a   :  { %9474 = vmatprep.mubr.f32.mxu0 %v883_v12  ;;  %9496 = vmatprep.mubr.f32.mxu1 %v12268_v63 }
 0x38b   :  { %10762 = vmatpush3.bf16.xpose.msra.mxu1 %v10759_v18 }
 0x38c   :  { %10764 = vmatprep.subr.bf16.mxu1 %v10763_v43 }
 0x38d   :  { %9475 = vmatmul.mubr.f32.gmra.mrb[8].mxu0 %v893_v6  ;;  %9497 = vmatmul.mubr.f32.gmra.mrb[2].mxu1 %v12281_v10 }
 0x38e   :  { %9499 = vmatprep.mubr.f32.mxu1 %v12283_v14 }
 0x391   :  { %9500 = vmatmul.mubr.f32.gmra.mrb[4].mxu1 %v12300_v28 }
 0x392   :  { %9502 = vmatprep.mubr.f32.mxu1 %v12303_v31 }
 0x393   :  { %10766 = vmatpush3.bf16.xpose.msra.mxu1 %v10763_v43 }
 0x394   :  { %10768 = vmatprep.subr.bf16.mxu1 %v10767_v60 }
 0x395   :  { %9503 = vmatmul.mubr.f32.gmra.mrb[6].mxu1 %v12312_v47 }
 0x396   :  { %9521 = vmatprep.mubr.f32.mxu1 %v12162_v24  ;;  %v13760_v24 = vand.u32 4294901760, %v12298_v26 }
 0x39b   :  { %10770 = vmatpush3.bf16.xpose.msra.mxu1 %v10767_v60 }
 0x39c   :  { %10772 = vmatprep.subr.bf16.mxu1 %v10771_v57 }
 0x3a3   :  { %10774 = vmatpush3.bf16.xpose.msra.mxu1 %v10771_v57 }
 0x3a4   :  { %10776 = vmatprep.subr.bf16.mxu1 %v12209_v53 }
 0x3aa   :  { %9522 = vmatmul.mubr.f32.vlgmr.msra.gmra.mrb[0].mxu1 %v12279_v13 }
 0x3ab   :  { %9524 = vmatprep.mubr.f32.mxu1 %v12287_v16  ;;  %10778 = vmatpush3.bf16.xpose.msra.mxu1 %v12209_v53 }
 0x3ac   :  { %10780 = vmatprep.subr.bf16.mxu1 %v12224_v5 }
 0x3ae   :  { %9525 = vmatmul.mubr.f32.gmra.mrb[2].mxu1 %v12295_v20 }
 0x3af   :  { %9527 = vmatprep.mubr.f32.mxu1 %v12298_v26  ;;  %v105_v26 = vld [vmem:[%s13740_s2 + $0x20] sm:$0xff] }
 0x3b2   :  { %9528 = vmatmul.mubr.f32.gmra.mrb[4].mxu1 %v12310_v46 }
 0x3b3   :  { %9530 = vmatprep.mubr.f32.mxu1 %v12319_v58  ;;  %10782 = vmatpush3.bf16.xpose.msra.mxu1 %v12224_v5 }
 0x3b4   :  { %10784 = vmatprep.subr.bf16.mxu1 %v12242_v27 }
 0x3b6   :  { %9531 = vmatmul.mubr.f32.gmra.mrb[6].mxu1 %v12326_v2  ;;  %v107_v2 = vld [vmem:[%s13740_s2 + $0x30] sm:$0xff] }
 0x3b7   :  { %9549 = vmatprep.mubr.f32.mxu1 %v821_v25 }
 0x3bb   :  { %10786 = vmatpush3.bf16.xpose.msra.mxu1 %v12242_v27 }
 0x3bc   :  { %10788 = vmatprep.subr.bf16.mxu1 %v12274_v9 }
 0x3c3   :  { %10790 = vmatpush3.bf16.xpose.msra.mxu1 %v12274_v9 }
 0x3c4   :  { %10792 = vmatprep.subr.bf16.mxu1 %v10791_v7 }
 0x3ca   :  { %9550 = vmatmul.mubr.f32.vlgmr.msra.gmra.mrb[0].mxu1 %v831_v29 }
 0x3cb   :  { %9552 = vmatprep.mubr.f32.mxu1 %v841_v42  ;;  %10794 = vmatpush3.bf16.xpose.msra.mxu1 %v10791_v7 }
 0x3cc   :  { %10796 = vmatprep.subr.bf16.mxu1 %v12245_v30 }
 0x3ce   :  { %9553 = vmatmul.mubr.f32.gmra.mrb[2].mxu1 %v851_v50  ;;  %v108_v50 = vld [vmem:[%s13740_s2 + $0x38] sm:$0xff] }
 0x3cf   :  { %9555 = vmatprep.mubr.f32.mxu1 %v13760_v24 }
 0x3d2   :  { %9556 = vmatmul.mubr.f32.gmra.mrb[4].mxu1 %v871_v11 }
 0x3d3   :  { %9558 = vmatprep.mubr.f32.mxu1 %v881_v17  ;;  %10798 = vmatpush3.bf16.xpose.msra.mxu1 %v12245_v30 }
 0x3d4   :  { %10800 = vmatprep.subr.bf16.mxu1 %v12258_v49 }
 0x3d6   :  { %9559 = vmatmul.mubr.f32.gmra.mrb[6].mxu1 %v891_v41 }
 0x3d7   :  { %9577 = vmatprep.mubr.f32.mxu1 %v12158_v23 }
 0x3db   :  { %10802 = vmatpush3.bf16.xpose.msra.mxu1 %v12258_v49  ;;  %v103_v49 = vld [vmem:[%s13740_s2 + $0x10] sm:$0xff] }
 0x3dc   :  { %10804 = vmatprep.subr.bf16.mxu1 %v12266_v62 }
 0x3e3   :  { %10806 = vmatpush3.bf16.xpose.msra.mxu1 %v12266_v62 }
 0x3e4   :  { %10808 = vmatprep.subr.bf16.mxu1 %v12209_v53 }
 0x3ea   :  { %9578 = vmatmul.mubr.f32.vlgmr.msra.gmra.mrb[0].mxu1 %v12264_v61 }
 0x3eb   :  { %9580 = vmatprep.mubr.f32.mxu1 %v12268_v63  ;;  %10810 = vmatpush3.bf16.xpose.msra.mxu1 %v12209_v53 }
 0x3ec   :  { %10812 = vmatprep.subr.bf16.mxu1 %v12224_v5 }
 0x3ee   :  { %9581 = vmatmul.mubr.f32.gmra.mrb[2].mxu1 %v12281_v10 }
 0x3ef   :  { %9583 = vmatprep.mubr.f32.mxu1 %v12283_v14 }
 0x3f2   :  { %9584 = vmatmul.mubr.f32.gmra.mrb[4].mxu1 %v12300_v28 }
 0x3f3   :  { %9586 = vmatprep.mubr.f32.mxu1 %v12303_v31  ;;  %10814 = vmatpush3.bf16.xpose.msra.mxu1 %v12224_v5 }
 0x3f4   :  { %10816 = vmatprep.subr.bf16.mxu1 %v12242_v27 }
 0x3f6   :  { %9587 = vmatmul.mubr.f32.gmra.mrb[6].mxu1 %v12312_v47 }
 0x3f7   :  { %9605 = vmatprep.mubr.f32.mxu1 %v12158_v23 }
 0x3fb   :  { %10818 = vmatpush3.bf16.xpose.msra.mxu1 %v12242_v27 }
 0x3fc   :  { %10820 = vmatprep.subr.bf16.mxu1 %v12274_v9 }
 0x403   :  { %10822 = vmatpush3.bf16.xpose.msra.mxu1 %v12274_v9 }
 0x40a   :  { %9606 = vmatmul.mubr.f32.vlgmr.msra.gmra.mrb[0].mxu1 %v12264_v61 }
 0x40b   :  { %9608 = vmatprep.mubr.f32.mxu1 %v12268_v63 }
 0x40e   :  { %9609 = vmatmul.mubr.f32.gmra.mrb[2].mxu1 %v12281_v10 }
 0x40f   :  { %9611 = vmatprep.mubr.f32.mxu1 %v12283_v14  ;;  %v106_v14 = vld [vmem:[%s13740_s2 + $0x28] sm:$0xff] }
 0x412   :  { %9612 = vmatmul.mubr.f32.gmra.mrb[4].mxu1 %v12300_v28 }
 0x413   :  { %9614 = vmatprep.mubr.f32.mxu1 %v12303_v31 }
 0x416   :  { %9615 = vmatmul.mubr.f32.gmra.mrb[6].mxu1 %v12312_v47 }
 0x454   :  { %v9467_v23 = vpop.f32.mrb[2].mxu0 }
 0x455   :  { %v825_v25 = vpop.f32.mrb[3].mxu0  ;;  %v836_v27 = vadd.f32 %v9467_v23, %v102_v8 }
 0x456   :  { %v826_v30 = vadd.f32 %v825_v25, %v101_v22 }
 0x458   :  { %v9470_v44 = vpop.f32.mrb[4].mxu0 }
 0x459   :  { %v845_v51 = vpop.f32.mrb[5].mxu0  ;;  %v856_v9 = vadd.f32 %v9470_v44, %v104_v32 }
 0x45a   :  { %v846_v10 = vadd.f32 %v845_v51, %v103_v49 }
 0x45c   :  { %v9473_v53 = vpop.f32.mrb[6].mxu0 }
 0x45d   :  { %v865_v55 = vpop.f32.mrb[7].mxu0  ;;  %v876_v42 = vadd.f32 %v9473_v53, %v106_v14 }
 0x45e   :  { %v866_v47 = vadd.f32 %v865_v55, %v105_v26 }
 0x460   :  { %v9476_v1 = vpop.f32.mrb[8].mxu0 }
 0x461   :  { %v885_v5 = vpop.f32.mrb[9].mxu0  ;;  %v896_v18 = vadd.f32 %v9476_v1, %v108_v50 }
 0x462   :  { %v886_v35 = vadd.f32 %v885_v5, %v107_v2 }
 0x4dd   :  { %v9607_v45 = vpop.f32.mrb[0].mxu1 }
 0x4de   :  { %v11546_v61 = vadd.f32 %v9607_v45, %v836_v27  ;;  %v1538_v62 = vpop.f32.mrb[1].mxu1 }
 0x4df   :  { %v11548_v63 = vadd.f32 %v1538_v62, %v826_v30 }
 0x4e0   :  { %v1588_v13 = vsel %vm1584_vm3, %v11546_v61, -inf }
 0x4e1   :  { %v9610_v16 = vpop.f32.mrb[2].mxu1  ;;  %1589 = vmax.xlane.f32.xlu1 %v1588_v13  ;;  %v1585_v20 = vsel %vm1584_vm3, %v11548_v63, -inf }
 0x4e2   :  { %v11550_v28 = vadd.f32 %v9610_v16, %v856_v9  ;;  %v1550_v29 = vpop.f32.mrb[3].mxu1  ;;  %1586 = vmax.xlane.f32.xlu0 %v1585_v20 }
 0x4e3   :  { %v11552_v31 = vadd.f32 %v1550_v29, %v846_v10 }
 0x4e4   :  { %v1594_v46 = vsel %vm1584_vm3, %v11550_v28, -inf }
 0x4e5   :  { %v9613_v58 = vpop.f32.mrb[4].mxu1  ;;  %v1591_v48 = vsel %vm1584_vm3, %v11552_v31, -inf }
 0x4e6   :  { %v11554_v11 = vadd.f32 %v9613_v58, %v876_v42  ;;  %v1562_v15 = vpop.f32.mrb[5].mxu1  ;;  %1595 = vmax.xlane.f32.xlu0 %v1594_v46 }
 0x4e7   :  { %v11556_v17 = vadd.f32 %v1562_v15, %v866_v47 }
 0x4e8   :  { %v1600_v19 = vsel %vm1584_vm3, %v11554_v11, -inf }
 0x4e9   :  { %v9616_v41 = vpop.f32.mrb[6].mxu1  ;;  %1601 = vmax.xlane.f32.xlu1 %v1600_v19  ;;  %v1597_v6 = vsel %vm1584_vm3, %v11556_v17, -inf }
 0x4ea   :  { %v11558_v59 = vadd.f32 %v9616_v41, %v896_v18  ;;  %v1574_v3 = vpop.f32.mrb[7].mxu1  ;;  %1592 = vmax.xlane.f32.xlu0 %v1591_v48 }
 0x4eb   :  { %v11560_v12 = vadd.f32 %v1574_v3, %v886_v35 }
 0x4ec   :  { %v1606_v43 = vsel %vm1584_vm3, %v11558_v59, -inf }
 0x4ed   :  { %1607 = vmax.xlane.f32.xlu1 %v1606_v43  ;;  %v1603_v60 = vsel %vm1584_vm3, %v11560_v12, -inf }
 0x4ee   :  { %1598 = vmax.xlane.f32.xlu0 %v1597_v6 }
 0x4f2   :  { %1604 = vmax.xlane.f32.xlu0 %v1603_v60 }
 0x4fe   :  { %1675 = vrot.lane.b32.xlu1 %v12173_v33, %s12009_s18 }
 0x502   :  { %1677 = vrot.lane.b32.xlu1 %v12175_v34, %s12009_s18 }
 0x506   :  { %1679 = vrot.lane.b32.xlu1 %v12182_v36, %s12009_s18 }
 0x508   :  { %1673 = vrot.lane.b32.xlu0 %v12151_v21, %s12009_s18 }
 0x50a   :  { %1683 = vrot.lane.b32.xlu1 %v12191_v38, %s12009_s18 }
 0x50c   :  { %1681 = vrot.lane.b32.xlu0 %v12184_v37, %s12009_s18 }
 0x56e   :  { %v1590_v57 = vpop.xlane.xlu1 %1589 }
 0x56f   :  { %v1610_v7 = vsub.f32 %v11546_v61, %v1590_v57  ;;  %v1587_v24 = vpop.xlane.xlu0 %1586 }
 0x570   :  { %v1609_v23 = vsub.f32 %v11548_v63, %v1587_v24 }
 0x571   :  { %v1619_v33 = vmul.f32 1.442695, %v1610_v7 }
 0x572   :  { %v1617_v25 = vmul.f32 1.442695, %v1609_v23 }
 0x573   :  { %11831 = vpow2.f32 %v1619_v33  ;;  %v1596_v34 = vpop.xlane.xlu0 %1595 }
 0x574   :  { %11833 = vpow2.f32 %v1617_v25  ;;  %v1612_v44 = vsub.f32 %v11550_v28, %v1596_v34 }
 0x576   :  { %v1623_v36 = vmul.f32 1.442695, %v1612_v44  ;;  %v1602_v51 = vpop.xlane.xlu1 %1601 }
 0x577   :  { %v1614_v53 = vsub.f32 %v11554_v11, %v1602_v51  ;;  %v1593_v21 = vpop.xlane.xlu0 %1592 }
 0x578   :  { %11835 = vpow2.f32 %v1623_v36  ;;  %v1611_v55 = vsub.f32 %v11552_v31, %v1593_v21 }
 0x579   :  { %v1627_v38 = vmul.f32 1.442695, %v1614_v53 }
 0x57a   :  { %v1621_v1 = vmul.f32 1.442695, %v1611_v55  ;;  %v1608_v5 = vpop.xlane.xlu1 %1607 }
 0x57b   :  { %11837 = vpow2.f32 %v1627_v38  ;;  %v1616_v37 = vsub.f32 %v11558_v59, %v1608_v5  ;;  %v1599_v8 = vpop.xlane.xlu0 %1598 }
 0x57c   :  { %11839 = vpow2.f32 %v1621_v1  ;;  %v1613_v22 = vsub.f32 %v11556_v17, %v1599_v8 }
 0x57d   :  { %v12463_v27 = vpop.eup %11831  ;;  %v1631_v30 = vmul.f32 1.442695, %v1616_v37 }
 0x57e   :  { %v12465_v32 = vpop.eup %11833  ;;  %v1625_v45 = vmul.f32 1.442695, %v1613_v22  ;;  %v1676_v49 = vpop.permute.xlu1 %1675  ;;  %v1636_v61 = vsel %vm1584_vm3, %v12463_v27, 0.0 }
 0x57f   :  { %11841 = vpow2.f32 %v1631_v30  ;;  %v1725_v62 = vand.u32 4294901760, %v1676_v49  ;;  %1637 = vadd.xlane.f32.xlu1 %v1636_v61  ;;  %v1605_v63 = vpop.xlane.xlu0 %1604  ;;  %v1633_v9 = vsel %vm1584_vm3, %v12465_v32, 0.0 }
 0x580   :  { %11843 = vpow2.f32 %v1625_v45  ;;  %v1615_v13 = vsub.f32 %v11560_v12, %v1605_v63  ;;  %1634 = vadd.xlane.f32.xlu0 %v1633_v9 }
 0x581   :  { %v1883_v10 = vsub.f32 %v1676_v49, %v1725_v62 }
 0x582   :  { %v12471_v14 = vpop.eup %11835  ;;  %v1629_v16 = vmul.f32 1.442695, %v1615_v13  ;;  %v1678_v20 = vpop.permute.xlu1 %1677 }
 0x583   :  { %v1728_v26 = vand.u32 4294901760, %v1678_v20  ;;  %v1674_v28 = vpop.permute.xlu0 %1673  ;;  %v1642_v29 = vsel %vm1584_vm3, %v12471_v14, 0.0  ;;  %v1884_v31 = vand.u32 4294901760, %v1883_v10 }
 0x584   :  { %11845 = vpow2.f32 %v1629_v16  ;;  %v1722_v42 = vand.u32 4294901760, %v1674_v28  ;;  %1643 = vadd.xlane.f32.xlu1 %v1642_v29 }
 0x585   :  { %v12475_v46 = vpop.eup %11837  ;;  %v1890_v47 = vsub.f32 %v1678_v20, %v1728_v26  ;;  %v1885_v41 = vsub.f32 %v1883_v10, %v1884_v31 }
 0x586   :  { %v12477_v50 = vpop.eup %11839  ;;  %v12479_v58 = vpack.c.bf16 %v1725_v62, %v1722_v42  ;;  %v1876_v2 = vsub.f32 %v1674_v28, %v1722_v42  ;;  %v1680_v11 = vpop.permute.xlu1 %1679  ;;  %v1648_v15 = vsel %vm1584_vm3, %v12475_v46, 0.0 }
 0x587   :  { %v1891_v17 = vand.u32 4294901760, %v1890_v47  ;;  %v1731_v18 = vand.u32 4294901760, %v1680_v11  ;;  %v1682_v19 = vpop.permute.xlu0 %1681  ;;  %v1639_v35 = vsel %vm1584_vm3, %v12477_v50, 0.0  ;;  %v1886_v21 = vand.u32 4294901760, %v1885_v41 }
 0x588   :  { %v1877_v48 = vand.u32 4294901760, %v1876_v2  ;;  %v1734_v59 = vand.u32 4294901760, %v1682_v19  ;;  %1649 = vadd.xlane.f32.xlu1 %v1648_v15  ;;  %1640 = vadd.xlane.f32.xlu0 %v1639_v35  ;;  %v12485_v3 = vpack.c.bf16 %v1883_v10, %v1876_v2 }
 0x589   :  { %v12487_v12 = vpop.eup %11841  ;;  %v1892_v43 = vsub.f32 %v1890_v47, %v1891_v17  ;;  %v12489_v6 = vpack.c.bf16 %v1731_v18, %v1728_v26  ;;  %v1897_v60 = vsub.f32 %v1680_v11, %v1731_v18  ;;  %10824 = vmatprep.subr.bf16.mxu0 %v12479_v58 }
 0x58a   :  { %v12492_v57 = vpop.eup %11843  ;;  %v1878_v7 = vsub.f32 %v1876_v2, %v1877_v48  ;;  %v1904_v24 = vsub.f32 %v1682_v19, %v1734_v59  ;;  %10826 = vmatpush3.bf16.msra.mxu0 %v12479_v58  ;;  %v1684_v23 = vpop.permute.xlu1 %1683  ;;  %v1654_v33 = vsel %vm1584_vm3, %v12487_v12, 0.0  ;;  %v12497_v25 = vpack.c.bf16 %v1884_v31, %v1877_v48 }
 0x58b   :  { %v1898_v34 = vand.u32 4294901760, %v1897_v60  ;;  %v1737_v44 = vand.u32 4294901760, %v1684_v23  ;;  %10828 = vmatprep.subr.bf16.mxu0 %v12489_v6  ;;  %v1645_v36 = vsel %vm1584_vm3, %v12492_v57, 0.0  ;;  %v12502_v55 = vpack.c.bf16 %v1897_v60, %v1890_v47 }
 0x58c   :  { %v1905_v51 = vand.u32 4294901760, %v1904_v24  ;;  %1655 = vadd.xlane.f32.xlu1 %v1654_v33  ;;  %1646 = vadd.xlane.f32.xlu0 %v1645_v36  ;;  %v1879_v53 = vand.u32 4294901760, %v1878_v7  ;;  %v1893_v45 = vand.u32 4294901760, %v1892_v43 }
 0x58d   :  { %v1899_v38 = vsub.f32 %v1897_v60, %v1898_v34  ;;  %v12504_v1 = vpack.c.bf16 %v1737_v44, %v1734_v59  ;;  %v1911_v5 = vsub.f32 %v1684_v23, %v1737_v44  ;;  %v12506_v37 = vpack.c.bf16 %v1898_v34, %v1891_v17 }
 0x58e   :  { %v12508_v8 = vpop.eup %11845  ;;  %v1906_v22 = vsub.f32 %v1904_v24, %v1905_v51  ;;  %10830 = vmatpush3.bf16.msra.mxu0 %v12489_v6  ;;  %v12511_v30 = vpack.c.bf16 %v1886_v21, %v1879_v53 }
 0x58f   :  { %v1912_v49 = vand.u32 4294901760, %v1911_v5  ;;  %10832 = vmatprep.subr.bf16.mxu0 %v12504_v1  ;;  %v1651_v61 = vsel %vm1584_vm3, %v12508_v8, 0.0  ;;  %v1900_v62 = vand.u32 4294901760, %v1899_v38  ;;  %v12516_v63 = vpack.c.bf16 %v1911_v5, %v1904_v24 }
 0x590   :  { %1652 = vadd.xlane.f32.xlu0 %v1651_v61  ;;  %v1907_v16 = vand.u32 4294901760, %v1906_v22 }
 0x591   :  { %v1913_v9 = vsub.f32 %v1911_v5, %v1912_v49  ;;  %v12518_v13 = vpack.c.bf16 %v1900_v62, %v1893_v45  ;;  %v12520_v10 = vpack.c.bf16 %v1912_v49, %v1905_v51 }
 0x592   :  { %10834 = vmatpush3.bf16.msra.mxu0 %v12504_v1 }
 0x593   :  { %v1914_v20 = vand.u32 4294901760, %v1913_v9 }
 0x595   :  { %v12523_v26 = vpack.c.bf16 %v1914_v20, %v1907_v16 }
 0x59d   :  { %1687 = vrot.lane.b32.xlu1 %v12199_v40, %s12009_s18 }
 0x5a6   :  { %1685 = vrot.lane.b32.xlu0 %v12193_v39, %s12009_s18 }
 0x60c   :  { %v1638_v28 = vpop.xlane.xlu1 %1637 }
 0x60d   :  { %11847 = vrcp.f32 %v1638_v28  ;;  %v1635_v29 = vpop.xlane.xlu0 %1634 }
 0x60e   :  { %11849 = vrcp.f32 %v1635_v29 }
 0x611   :  { %v1644_v31 = vpop.xlane.xlu1 %1643 }
 0x612   :  { %11851 = vrcp.f32 %v1644_v31 }
 0x615   :  { %v1650_v42 = vpop.xlane.xlu1 %1649  ;;  %v1641_v47 = vpop.xlane.xlu0 %1640 }
 0x616   :  { %11853 = vrcp.f32 %v1650_v42 }
 0x617   :  { %v11848_v2 = vpop.eup %11847  ;;  %11855 = vrcp.f32 %v1641_v47 }
 0x618   :  { %v11850_v11 = vpop.eup %11849  ;;  %v1660_v15 = vmul.f32 %v11848_v2, %v12463_v27 }
 0x619   :  { %v1658_v17 = vmul.f32 %v11850_v11, %v12465_v32  ;;  %v1656_v40 = vpop.xlane.xlu1 %1655  ;;  %v1647_v18 = vpop.xlane.xlu0 %1646 }
 0x61a   :  { %v1701_v39 = vsel %vm1584_vm3, %v1660_v15, 0  ;;  %11857 = vrcp.f32 %v1656_v40 }
 0x61b   :  { %v12532_v19 = vand.u32 4294901760, %v1701_v39  ;;  %11859 = vrcp.f32 %v1647_v18  ;;  %v1698_v35 = vsel %vm1584_vm3, %v1658_v17, 0 }
 0x61c   :  { %v11852_v41 = vpop.eup %11851  ;;  %v12535_v48 = vand.u32 4294901760, %v1698_v35 }
 0x61d   :  { %v12538_v59 = vsub.f32 %v1701_v39, %v12532_v19  ;;  %v1664_v27 = vmul.f32 %v11852_v41, %v12471_v14  ;;  %v1688_v43 = vpop.permute.xlu1 %1687  ;;  %v1653_v32 = vpop.xlane.xlu0 %1652 }
 0x61e   :  { %11861 = vrcp.f32 %v1653_v32  ;;  %v12542_v60 = vsub.f32 %v1698_v35, %v12535_v48  ;;  %v1743_v7 = vand.u32 4294901760, %v1688_v43 }
 0x61f   :  { %v1707_v24 = vsel %vm1584_vm3, %v1664_v27, 0  ;;  %v1806_v34 = vand.u32 4294901760, %v12538_v59 }
 0x620   :  { %v11854_v23 = vpop.eup %11853  ;;  %v1796_v33 = vand.u32 4294901760, %v12542_v60  ;;  %v12547_v44 = vand.u32 4294901760, %v1707_v24  ;;  %v12554_v5 = vsub.f32 %v1688_v43, %v1743_v7 }
 0x621   :  { %v11856_v36 = vpop.eup %11855  ;;  %v1668_v51 = vmul.f32 %v11854_v23, %v12475_v46  ;;  %v1686_v14 = vpop.permute.xlu0 %1685 }
 0x622   :  { %v1662_v53 = vmul.f32 %v11856_v36, %v12477_v50  ;;  %v1740_v21 = vand.u32 4294901760, %v1686_v14  ;;  %v1797_v38 = vsub.f32 %v12542_v60, %v1796_v33  ;;  %v12557_v22 = vsub.f32 %v1707_v24, %v12547_v44 }
 0x623   :  { %v1713_v45 = vsel %vm1584_vm3, %v1668_v51, 0  ;;  %v1807_v50 = vsub.f32 %v12538_v59, %v1806_v34  ;;  %v1926_v2 = vand.u32 4294901760, %v12554_v5 }
 0x624   :  { %v11858_v49 = vpop.eup %11857  ;;  %v12560_v61 = vpack.c.bf16 %v1743_v7, %v1740_v21  ;;  %v12562_v62 = vsub.f32 %v1686_v14, %v1740_v21  ;;  %v1798_v46 = vand.u32 4294901760, %v1797_v38  ;;  %v1704_v20 = vsel %vm1584_vm3, %v1662_v53, 0 }
 0x625   :  { %v11860_v9 = vpop.eup %11859  ;;  %v1672_v16 = vmul.f32 %v11858_v49, %v12487_v12  ;;  %v12569_v28 = vand.u32 4294901760, %v1713_v45  ;;  %v12574_v42 = vand.u32 4294901760, %v1704_v20  ;;  %v1826_v47 = vand.u32 4294901760, %v12557_v22 }
 0x626   :  { %v1666_v29 = vmul.f32 %v11860_v9, %v12492_v57  ;;  %v1919_v31 = vand.u32 4294901760, %v12562_v62  ;;  %10836 = vmatprep.subr.bf16.mxu0 %v12560_v61  ;;  %9633 = vmatprep.mubr.f32.mxu0 %v1798_v46  ;;  %v1808_v57 = vand.u32 4294901760, %v1807_v50  ;;  %v1927_v23 = vsub.f32 %v12554_v5, %v1926_v2 }
 0x627   :  { %10838 = vmatpush3.bf16.msra.mxu0 %v12560_v61  ;;  %v12580_v12 = vsub.f32 %v1713_v45, %v12569_v28  ;;  %v1719_v11 = vsel %vm1584_vm3, %v1672_v16, 0  ;;  %v12585_v17 = vsub.f32 %v1704_v20, %v12574_v42  ;;  %v1827_v43 = vsub.f32 %v12557_v22, %v1826_v47 }
 0x628   :  { %v11862_v15 = vpop.eup %11861  ;;  %10840 = vmatprep.subr.bf16.mxu0 %v12511_v30  ;;  %v1710_v40 = vsel %vm1584_vm3, %v1666_v29, 0  ;;  %v12588_v18 = vand.u32 4294901760, %v1719_v11  ;;  %v1920_v41 = vsub.f32 %v12562_v62, %v1919_v31  ;;  %v1928_v50 = vand.u32 4294901760, %v1927_v23 }
 0x629   :  { %v1670_v39 = vmul.f32 %v11862_v15, %v12508_v8  ;;  %v12591_v35 = vand.u32 4294901760, %v1710_v40  ;;  %v1816_v27 = vand.u32 4294901760, %v12585_v17  ;;  %v1846_v8 = vand.u32 4294901760, %v12580_v12 }
 0x62a   :  { %9634 = vmatmul.mubr.f32.vlgmr.msra.gmra.mrb[10].mxu0 %v1808_v57  ;;  %v12607_v24 = vsub.f32 %v1719_v11, %v12588_v18  ;;  %v1921_v53 = vand.u32 4294901760, %v1920_v41  ;;  %v1828_v38 = vand.u32 4294901760, %v1827_v43 }
 0x62b   :  { %10842 = vmatpush3.bf16.msra.mxu0 %v12511_v30  ;;  %v12602_v32 = vsub.f32 %v1710_v40, %v12591_v35  ;;  %v1716_v7 = vsel %vm1584_vm3, %v1670_v39, 0  ;;  %v1817_v30 = vsub.f32 %v12585_v17, %v1816_v27  ;;  %v1847_v49 = vsub.f32 %v12580_v12, %v1846_v8 }
 0x62c   :  { %10844 = vmatprep.subr.bf16.mxu0 %v12518_v13  ;;  %v12616_v36 = vand.u32 4294901760, %v1716_v7  ;;  %v1866_v46 = vand.u32 4294901760, %v12607_v24  ;;  %v10851_v20 = vpack.c.bf16 %v1928_v50, %v1921_v53 }
 0x62d   :  { %v1836_v51 = vand.u32 4294901760, %v12602_v32  ;;  %v1818_v14 = vand.u32 4294901760, %v1817_v30  ;;  %v1848_v29 = vand.u32 4294901760, %v1847_v49 }
 0x62e   :  { %v12620_v21 = vsub.f32 %v1716_v7, %v12616_v36  ;;  %v1867_v11 = vsub.f32 %v12607_v24, %v1866_v46 }
 0x62f   :  { %10846 = vmatpush3.bf16.msra.mxu0 %v12518_v13  ;;  %v1837_v45 = vsub.f32 %v12602_v32, %v1836_v51  ;;  %9636 = vmatprep.mubr.f32.mxu0 %v1818_v14 }
 0x630   :  { %10848 = vmatprep.subr.bf16.mxu0 %v12523_v26  ;;  %v1856_v9 = vand.u32 4294901760, %v12620_v21  ;;  %9637 = vmatmul.mubr.f32.gmra.mrb[12].mxu0 %v1828_v38  ;;  %v1868_v57 = vand.u32 4294901760, %v1867_v11 }
 0x631   :  { %v1838_v16 = vand.u32 4294901760, %v1837_v45 }
 0x632   :  { %v1857_v13 = vsub.f32 %v12620_v21, %v1856_v9 }
 0x633   :  { %9639 = vmatprep.mubr.f32.mxu0 %v1838_v16  ;;  %10850 = vmatpush3.bf16.msra.mxu0 %v12523_v26  ;;  %v10867_v26 = vpack.c.bf16 %v12554_v5, %v12562_v62 }
 0x634   :  { %10852 = vmatprep.subr.bf16.mxu0 %v10851_v20  ;;  %v1858_v15 = vand.u32 4294901760, %v1857_v13  ;;  %9640 = vmatmul.mubr.f32.gmra.mrb[14].mxu0 %v1848_v29 }
 0x636   :  { %9642 = vmatprep.mubr.f32.mxu0 %v1858_v15 }
 0x637   :  { %10854 = vmatpush3.bf16.msra.mxu0 %v10851_v20 }
 0x638   :  { %10856 = vmatprep.subr.bf16.mxu0 %v12485_v3  ;;  %9643 = vmatmul.mubr.f32.gmra.mrb[16].mxu0 %v1868_v57 }
 0x639   :  { %9661 = vmatprep.mubr.f32.mxu0 %v12535_v48 }
 0x63c   :  { %9662 = vmatmul.mubr.f32.vlgmr.msra.gmra.mrb[10].mxu0 %v12532_v19 }
 0x63d   :  { %10858 = vmatpush3.bf16.msra.mxu0 %v12485_v3  ;;  %9664 = vmatprep.mubr.f32.mxu0 %v12574_v42  ;;  %v10899_v3 = vpack.c.bf16 %v1926_v2, %v1919_v31 }
 0x63e   :  { %10860 = vmatprep.subr.bf16.mxu0 %v12502_v55 }
 0x640   :  { %9665 = vmatmul.mubr.f32.gmra.mrb[12].mxu0 %v12547_v44 }
 0x641   :  { %10862 = vmatpush3.bf16.msra.mxu0 %v12502_v55  ;;  %9667 = vmatprep.mubr.f32.mxu0 %v12591_v35  ;;  %v2597_v55 = vld [vmem:[%s13742_s4 + $0x8] sm:$0xff] }
 0x642   :  { %10864 = vmatprep.subr.bf16.mxu0 %v12516_v63 }
 0x644   :  { %9668 = vmatmul.mubr.f32.gmra.mrb[14].mxu0 %v12569_v28 }
 0x645   :  { %10866 = vmatpush3.bf16.msra.mxu0 %v12516_v63  ;;  %9670 = vmatprep.mubr.f32.mxu0 %v12616_v36  ;;  %v2614_v63 = vand.u32 4294901760, %v2597_v55 }
 0x646   :  { %10868 = vmatprep.subr.bf16.mxu0 %v10867_v26 }
 0x647   :  { %v2708_v62 = vsub.f32 %v2597_v55, %v2614_v63 }
 0x648   :  { %9671 = vmatmul.mubr.f32.gmra.mrb[16].mxu0 %v12588_v18 }
 0x649   :  { %10870 = vmatpush3.bf16.msra.mxu0 %v10867_v26  ;;  %9689 = vmatprep.mubr.f32.mxu0 %v12542_v60 }
 0x64a   :  { %10872 = vmatprep.subr.bf16.mxu0 %v12479_v58 }
 0x64c   :  { %9690 = vmatmul.mubr.f32.vlgmr.msra.gmra.mrb[10].mxu0 %v12538_v59 }
 0x64d   :  { %10874 = vmatpush3.bf16.msra.mxu0 %v12479_v58  ;;  %9692 = vmatprep.mubr.f32.mxu0 %v12585_v17 }
 0x64e   :  { %10876 = vmatprep.subr.bf16.mxu0 %v12489_v6 }
 0x650   :  { %9693 = vmatmul.mubr.f32.gmra.mrb[12].mxu0 %v12557_v22 }
 0x651   :  { %10878 = vmatpush3.bf16.msra.mxu0 %v12489_v6  ;;  %9695 = vmatprep.mubr.f32.mxu0 %v12602_v32 }
 0x652   :  { %10880 = vmatprep.subr.bf16.mxu0 %v12504_v1 }
 0x654   :  { %9696 = vmatmul.mubr.f32.gmra.mrb[14].mxu0 %v12580_v12 }
 0x655   :  { %10882 = vmatpush3.bf16.msra.mxu0 %v12504_v1  ;;  %9698 = vmatprep.mubr.f32.mxu0 %v12620_v21 }
 0x656   :  { %10884 = vmatprep.subr.bf16.mxu0 %v12560_v61 }
 0x658   :  { %9699 = vmatmul.mubr.f32.gmra.mrb[16].mxu0 %v12607_v24 }
 0x659   :  { %10886 = vmatpush3.bf16.msra.mxu0 %v12560_v61  ;;  %9717 = vmatprep.mubr.f32.mxu0 %v1796_v33 }
 0x65a   :  { %10888 = vmatprep.subr.bf16.mxu0 %v12497_v25 }
 0x65c   :  { %9718 = vmatmul.mubr.f32.vlgmr.msra.gmra.mrb[10].mxu0 %v1806_v34 }
 0x65d   :  { %10890 = vmatpush3.bf16.msra.mxu0 %v12497_v25  ;;  %9720 = vmatprep.mubr.f32.mxu0 %v1816_v27  ;;  %v2596_v25 = vld [vmem:[%s13742_s4] sm:$0xff] }
 0x65e   :  { %10892 = vmatprep.subr.bf16.mxu0 %v12506_v37 }
 0x660   :  { %9721 = vmatmul.mubr.f32.gmra.mrb[12].mxu0 %v1826_v47 }
 0x661   :  { %10894 = vmatpush3.bf16.msra.mxu0 %v12506_v37  ;;  %9723 = vmatprep.mubr.f32.mxu0 %v1836_v51  ;;  %v2611_v37 = vand.u32 4294901760, %v2596_v25 }
 0x662   :  { %10896 = vmatprep.subr.bf16.mxu0 %v12520_v10 }
 0x663   :  { %v12732_v33 = vpack.c.bf16 %v2614_v63, %v2611_v37 }
 0x664   :  { %9724 = vmatmul.mubr.f32.gmra.mrb[14].mxu0 %v1846_v8 }
 0x665   :  { %10898 = vmatpush3.bf16.msra.mxu0 %v12520_v10  ;;  %9726 = vmatprep.mubr.f32.mxu0 %v1856_v9  ;;  %v2599_v10 = vld [vmem:[%s13742_s4 + $0x18] sm:$0xff] }
 0x666   :  { %10900 = vmatprep.subr.bf16.mxu0 %v10899_v3  ;;  %v2620_v59 = vand.u32 4294901760, %v2599_v10 }
 0x668   :  { %9727 = vmatmul.mubr.f32.gmra.mrb[16].mxu0 %v1866_v46  ;;  %v2722_v17 = vsub.f32 %v2599_v10, %v2620_v59 }
 0x669   :  { %10902 = vmatpush3.bf16.msra.mxu0 %v10899_v3  ;;  %9745 = vmatprep.mubr.f32.mxu0 %v12535_v48 }
 0x66a   :  { %10904 = vmatprep.subr.bf16.mxu0 %v12479_v58 }
 0x66c   :  { %9746 = vmatmul.mubr.f32.vlgmr.msra.gmra.mrb[10].mxu0 %v12532_v19 }
 0x66d   :  { %10906 = vmatpush3.bf16.msra.mxu0 %v12479_v58  ;;  %9748 = vmatprep.mubr.f32.mxu0 %v12574_v42 }
 0x66e   :  { %10908 = vmatprep.subr.bf16.mxu0 %v12489_v6 }
 0x670   :  { %9749 = vmatmul.mubr.f32.gmra.mrb[12].mxu0 %v12547_v44 }
 0x671   :  { %10910 = vmatpush3.bf16.msra.mxu0 %v12489_v6  ;;  %9751 = vmatprep.mubr.f32.mxu0 %v12591_v35 }
 0x672   :  { %10912 = vmatprep.subr.bf16.mxu0 %v12504_v1 }
 0x674   :  { %9752 = vmatmul.mubr.f32.gmra.mrb[14].mxu0 %v12569_v28 }
 0x675   :  { %10914 = vmatpush3.bf16.msra.mxu0 %v12504_v1  ;;  %9754 = vmatprep.mubr.f32.mxu0 %v12616_v36  ;;  %v2598_v1 = vld [vmem:[%s13742_s4 + $0x10] sm:$0xff] }
 0x676   :  { %10916 = vmatprep.subr.bf16.mxu0 %v12560_v61 }
 0x678   :  { %9755 = vmatmul.mubr.f32.gmra.mrb[16].mxu0 %v12588_v18 }
 0x679   :  { %10918 = vmatpush3.bf16.msra.mxu0 %v12560_v61  ;;  %9773 = vmatprep.mubr.f32.mxu0 %v12535_v48  ;;  %v2701_v61 = vsub.f32 %v2596_v25, %v2611_v37 }
 0x67a   :  { %10920 = vmatprep.subr.bf16.mxu0 %v12732_v33 }
 0x67b   :  { %v2702_v31 = vand.u32 4294901760, %v2701_v61  ;;  %v10935_v24 = vpack.c.bf16 %v2708_v62, %v2701_v61 }
 0x67c   :  { %9774 = vmatmul.mubr.f32.vlgmr.msra.gmra.mrb[10].mxu0 %v12532_v19  ;;  %v2617_v19 = vand.u32 4294901760, %v2598_v1 }
 0x67d   :  { %9776 = vmatprep.mubr.f32.mxu0 %v12574_v42  ;;  %10922 = vmatpush3.bf16.msra.mxu0 %v12732_v33  ;;  %v2709_v42 = vand.u32 4294901760, %v2708_v62  ;;  %v2703_v47 = vsub.f32 %v2701_v61, %v2702_v31 }
 0x67e   :  { %v12734_v34 = vpack.c.bf16 %v2620_v59, %v2617_v19  ;;  %v2715_v12 = vsub.f32 %v2598_v1, %v2617_v19 }
 0x67f   :  { %v2710_v2 = vsub.f32 %v2708_v62, %v2709_v42  ;;  %v2704_v40 = vand.u32 4294901760, %v2703_v47  ;;  %v10951_v30 = vpack.c.bf16 %v2709_v42, %v2702_v31  ;;  %v3179_v31 = vld [vmem:[#allocation7 + $0x8] sm:$0xff]  ;;  %v3180_v42 = vld [vmem:[#allocation7 + $0x10] sm:$0xff] }
 0x680   :  { %9777 = vmatmul.mubr.f32.gmra.mrb[12].mxu0 %v12547_v44  ;;  %10924 = vmatprep.subr.bf16.mxu0 %v12734_v34  ;;  %v2716_v39 = vand.u32 4294901760, %v2715_v12  ;;  %v10939_v23 = vpack.c.bf16 %v2722_v17, %v2715_v12 }
 0x681   :  { %9779 = vmatprep.mubr.f32.mxu0 %v12591_v35  ;;  %10926 = vmatpush3.bf16.msra.mxu0 %v12734_v34  ;;  %v2723_v35 = vand.u32 4294901760, %v2722_v17 }
 0x682   :  { %v2717_v27 = vsub.f32 %v2715_v12, %v2716_v39  ;;  %v3181_v12 = vld [vmem:[#allocation7 + $0x18] sm:$0xff] }
 0x683   :  { %v2724_v43 = vsub.f32 %v2722_v17, %v2723_v35  ;;  %v3199_v17 = vand.u32 4294901760, %v3180_v42 }
 0x684   :  { %9780 = vmatmul.mubr.f32.gmra.mrb[14].mxu0 %v12569_v28  ;;  %v2718_v32 = vand.u32 4294901760, %v2717_v27 }
 0x685   :  { %9782 = vmatprep.mubr.f32.mxu0 %v12616_v36  ;;  %v2725_v8 = vand.u32 4294901760, %v2724_v43  ;;  %v10955_v36 = vpack.c.bf16 %v2723_v35, %v2716_v39 }
 0x687   :  { %v10931_v7 = vpack.c.bf16 %v2725_v8, %v2718_v32 }
 0x688   :  { %9783 = vmatmul.mubr.f32.gmra.mrb[16].mxu0 %v12588_v18  ;;  %v2711_v18 = vand.u32 4294901760, %v2710_v2  ;;  %v3196_v2 = vand.u32 4294901760, %v3179_v31 }
 0x68a   :  { %v10927_v41 = vpack.c.bf16 %v2711_v18, %v2704_v40  ;;  %v3202_v40 = vand.u32 4294901760, %v3181_v12 }
 0x68c   :  { %10928 = vmatprep.subr.bf16.mxu0 %v10927_v41  ;;  %v12776_v39 = vpack.c.bf16 %v3202_v40, %v3199_v17 }
 0x74f   :  { %v9775_v58 = vpop.f32.mrb[10].mxu0 }
 0x750   :  { %2561 = vrot.lane.b32.xlu0 %v9775_v58, %s12003_s16  ;;  %v2513_v6 = vpop.f32.mrb[11].mxu0 }
 0x751   :  { %2559 = vst.msk [vmem:[#allocation3] sm:$0xff] %vm713_vm2, %v2513_v6  ;;  %v12764_v6 = vld [vmem:[%s13745_s7] sm:$0xff] }
 0x752   :  { %v2603_v25 = vrot.slane %v12764_v6, %v12121_v56 }
 0x753   :  { %v9778_v48 = vpop.f32.mrb[12].mxu0 }
 0x754   :  { %2573 = vrot.lane.b32.xlu1 %v9778_v48, %s12010_s28  ;;  %v2525_v60 = vpop.f32.mrb[13].mxu0 }
 0x757   :  { %v9781_v44 = vpop.f32.mrb[14].mxu0 }
 0x758   :  { %2567 = vrot.lane.b32.xlu1 %v2525_v60, %s12011_s5  ;;  %2580 = vrot.lane.b32.xlu0 %v9781_v44, %s12003_s16  ;;  %v2537_v5 = vpop.f32.mrb[15].mxu0 }
 0x759   :  { %2578 = vst.msk [vmem:[#allocation3 + $0x8] sm:$0xff] %vm713_vm2, %v2537_v5 }
 0x75b   :  { %v9784_v22 = vpop.f32.mrb[16].mxu0 }
 0x75c   :  { %2590 = vrot.lane.b32.xlu1 %v9784_v22, %s12010_s28  ;;  %v2549_v28 = vpop.f32.mrb[17].mxu0 }
 0x75d   :  { %2585 = vrot.lane.b32.xlu0 %v2549_v28, %s12011_s5 }
 0x7c2   :  { %v2562_v51 = vpop.permute.xlu0 %2561 }
 0x7c3   :  { %2565 = vst.msk [vmem:[#allocation3] sm:$0xff] %vm2564_vm4, %v2562_v51 }
 0x7c6   :  { %v2574_v14 = vpop.permute.xlu1 %2573 }
 0x7ca   :  { %v2568_v53 = vpop.permute.xlu1 %2567  ;;  %v2581_v21 = vpop.permute.xlu0 %2580 }
 0x7cb   :  { %2571 = vst.msk [vmem:[#allocation3] sm:$0xff] %vm2570_vm5, %v2568_v53 }
 0x7cc   :  { %2583 = vst.msk [vmem:[#allocation3 + $0x8] sm:$0xff] %vm2564_vm4, %v2581_v21 }
 0x7cd   :  { %2577 = vst.msk [vmem:[#allocation3] sm:$0xff] %vm2576_vm6, %v2574_v14 }
 0x7ce   :  { %v2591_v45 = vpop.permute.xlu1 %2590 }
 0x7cf   :  { %v2586_v38 = vpop.permute.xlu0 %2585 }
 0x7d0   :  { %2588 = vst.msk [vmem:[#allocation3 + $0x8] sm:$0xff] %vm2570_vm5, %v2586_v38 }
 0x7d1   :  { %2593 = vst.msk [vmem:[#allocation3 + $0x8] sm:$0xff] %vm2576_vm6, %v2591_v45 }
 0x7d4   :  { %v2594_v49 = vld [vmem:[#allocation3] sm:$0xff] }
 0x7d5   :  { %v2605_v46 = vsel %vm61_vm0, %v2594_v49, 0 }
 0x7d6   :  { %v2679_v50 = vand.u32 4294901760, %v2605_v46 }
 0x7d8   :  { %v2680_v9 = vsub.f32 %v2605_v46, %v2679_v50  ;;  %v2595_v16 = vld [vmem:[#allocation3 + $0x8] sm:$0xff] }
 0x7d9   :  { %v2608_v13 = vsel %vm61_vm0, %v2595_v16, 0 }
 0x7da   :  { %v2681_v20 = vand.u32 4294901760, %v2680_v9  ;;  %v2689_v29 = vand.u32 4294901760, %v2608_v13 }
 0x7dc   :  { %v2682_v11 = vsub.f32 %v2680_v9, %v2681_v20  ;;  %v2690_v15 = vsub.f32 %v2608_v13, %v2689_v29 }
 0x7de   :  { %v2683_v57 = vand.u32 4294901760, %v2682_v11  ;;  %v2691_v26 = vand.u32 4294901760, %v2690_v15 }
 0x7e0   :  { %9793 = vmatprep.mubr.f32.mxu0 %v2683_v57  ;;  %v2692_v3 = vsub.f32 %v2690_v15, %v2691_v26 }
 0x7e2   :  { %v2693_v58 = vand.u32 4294901760, %v2692_v3  ;;  %v13752_v3 = vsub.s32 5, %v12112_v52 }
 0x7e4   :  { %9794 = vmatmul.mubr.f32.vlgmr.msra.gmra.mrb[18].mxu0 %v2693_v58 }
 0x7e5   :  { %10930 = vmatpush3.bf16.msra.mxu0 %v10927_v41  ;;  %9804 = vmatprep.mubr.f32.mxu0 %v2679_v50  ;;  %v3290_v41 = vsub.f32 %v3179_v31, %v3196_v2 }
 0x7e6   :  { %10932 = vmatprep.subr.bf16.mxu0 %v10931_v7 }
 0x7e7   :  { %v3291_v43 = vand.u32 4294901760, %v3290_v41 }
 0x7e9   :  { %10934 = vmatpush3.bf16.msra.mxu0 %v10931_v7  ;;  %v3292_v8 = vsub.f32 %v3290_v41, %v3291_v43  ;;  %v3297_v7 = vsub.f32 %v3180_v42, %v3199_v17  ;;  %v3730_v42 = vld [vmem:[%s13744_s6] sm:$0xff] }
 0x7ea   :  { %10936 = vmatprep.subr.bf16.mxu0 %v10935_v24 }
 0x7ec   :  { %9805 = vmatmul.mubr.f32.vlgmr.msra.gmra.mrb[18].mxu0 %v2689_v29 }
 0x7ed   :  { %10938 = vmatpush3.bf16.msra.mxu0 %v10935_v24  ;;  %9815 = vmatprep.mubr.f32.mxu0 %v2680_v9  ;;  %v3304_v24 = vsub.f32 %v3181_v12, %v3202_v40  ;;  %v3732_v40 = vld [vmem:[%s13744_s6 + $0x10] sm:$0xff] }
 0x7ee   :  { %10940 = vmatprep.subr.bf16.mxu0 %v10939_v23 }
 0x7ef   :  { %v3305_v51 = vand.u32 4294901760, %v3304_v24 }
 0x7f1   :  { %10942 = vmatpush3.bf16.msra.mxu0 %v10939_v23  ;;  %v3306_v21 = vsub.f32 %v3304_v24, %v3305_v51 }
 0x7f2   :  { %10944 = vmatprep.subr.bf16.mxu0 %v12732_v33 }
 0x7f3   :  { %v3307_v45 = vand.u32 4294901760, %v3306_v21 }
 0x7f4   :  { %9816 = vmatmul.mubr.f32.vlgmr.msra.gmra.mrb[18].mxu0 %v2690_v15 }
 0x7f5   :  { %10946 = vmatpush3.bf16.msra.mxu0 %v12732_v33  ;;  %9826 = vmatprep.mubr.f32.mxu0 %v2681_v20 }
 0x7f6   :  { %10948 = vmatprep.subr.bf16.mxu0 %v12734_v34 }
 0x7f9   :  { %10950 = vmatpush3.bf16.msra.mxu0 %v12734_v34 }
 0x7fa   :  { %10952 = vmatprep.subr.bf16.mxu0 %v10951_v30 }
 0x7fc   :  { %9827 = vmatmul.mubr.f32.vlgmr.msra.gmra.mrb[18].mxu0 %v2691_v26  ;;  %v13753_v26 = vsub.s32 4, %v12112_v52 }
 0x7fd   :  { %10954 = vmatpush3.bf16.msra.mxu0 %v10951_v30  ;;  %9837 = vmatprep.mubr.f32.mxu0 %v2679_v50  ;;  %v3293_v30 = vand.u32 4294901760, %v3292_v8 }
 0x7fe   :  { %10956 = vmatprep.subr.bf16.mxu0 %v10955_v36  ;;  %v3169_v58 = vrot.slane %v12764_v6, %v13753_v26 }
 0x801   :  { %10958 = vmatpush3.bf16.msra.mxu0 %v10955_v36  ;;  %v3298_v36 = vand.u32 4294901760, %v3297_v7 }
 0x802   :  { %10960 = vmatprep.subr.bf16.mxu0 %v12732_v33 }
 0x803   :  { %v3299_v53 = vsub.f32 %v3297_v7, %v3298_v36  ;;  %v11003_v16 = vpack.c.bf16 %v3305_v51, %v3298_v36  ;;  %v3737_v36 = vld [vmem:[%s13744_s6 + $0x38] sm:$0xff] }
 0x804   :  { %9838 = vmatmul.mubr.f32.vlgmr.msra.gmra.mrb[18].mxu0 %v2689_v29 }
 0x805   :  { %10962 = vmatpush3.bf16.msra.mxu0 %v12732_v33  ;;  %9848 = vmatprep.mubr.f32.mxu0 %v2679_v50  ;;  %v3300_v38 = vand.u32 4294901760, %v3299_v53  ;;  %v10987_v50 = vpack.c.bf16 %v3304_v24, %v3297_v7 }
 0x806   :  { %10964 = vmatprep.subr.bf16.mxu0 %v12734_v34 }
 0x807   :  { %v10979_v49 = vpack.c.bf16 %v3307_v45, %v3300_v38 }
 0x809   :  { %10966 = vmatpush3.bf16.msra.mxu0 %v12734_v34 }
 0x80c   :  { %9849 = vmatmul.mubr.f32.vlgmr.msra.gmra.mrb[18].mxu0 %v2689_v29 }
 0x8df   :  { %v9850_v55 = vpop.f32.mrb[18].mxu0 }
 0x8e0   :  { %v11561_v1 = vadd.f32 %v9850_v55, %v2603_v25  ;;  %v3128_v37 = vpop.f32.mrb[19].mxu0 }
 0x8e1   :  { %v11562_v63 = vadd.f32 %v3128_v37, %v2603_v25 }
 0x8e2   :  { %v3139_v10 = vadd.f32 %v11561_v1, %v12129_v4  ;;  %v3175_v1 = vrot.slane %v12764_v6, %v13752_v3 }
 0x8e3   :  { %v3138_v19 = vadd.f32 %v11562_v63, %v12125_v0  ;;  %v3178_v0 = vld [vmem:[#allocation7] sm:$0xff] }
 0x8e4   :  { %v3143_v48 = vsel %vm61_vm0, %v3139_v10, 0.0  ;;  %v3193_v47 = vand.u32 4294901760, %v3178_v0 }
 0x8e5   :  { %3144 = vadd.xlane.f32.xlu1 %v3143_v48  ;;  %v3140_v59 = vsel %vm61_vm0, %v3138_v19, 0.0 }
 0x8e6   :  { %3141 = vadd.xlane.f32.xlu0 %v3140_v59  ;;  %v12774_v18 = vpack.c.bf16 %v3196_v2, %v3193_v47  ;;  %v3283_v35 = vsub.f32 %v3178_v0, %v3193_v47  ;;  %v3731_v47 = vld [vmem:[%s13744_s6 + $0x8] sm:$0xff]  ;;  %v3749_v2 = vand.u32 4294901760, %v3730_v42 }
 0x8e7   :  { %v3752_v12 = vand.u32 4294901760, %v3731_v47 }
 0x8e8   :  { %10968 = vmatprep.subr.bf16.mxu0 %v12774_v18  ;;  %v3284_v27 = vand.u32 4294901760, %v3283_v35  ;;  %v10983_v46 = vpack.c.bf16 %v3290_v41, %v3283_v35  ;;  %v3843_v24 = vsub.f32 %v3730_v42, %v3749_v2 }
 0x8e9   :  { %10970 = vmatpush3.bf16.msra.mxu0 %v12774_v18  ;;  %v12812_v17 = vpack.c.bf16 %v3752_v12, %v3749_v2 }
 0x8ea   :  { %10972 = vmatprep.subr.bf16.mxu0 %v12776_v39  ;;  %v3285_v32 = vsub.f32 %v3283_v35, %v3284_v27  ;;  %v10999_v9 = vpack.c.bf16 %v3291_v43, %v3284_v27  ;;  %v3734_v27 = vld [vmem:[%s13744_s6 + $0x20] sm:$0xff]  ;;  %v3735_v43 = vld [vmem:[%s13744_s6 + $0x28] sm:$0xff]  ;;  %v3844_v53 = vand.u32 4294901760, %v3843_v24 }
 0x8eb   :  { %11016 = vmatprep.subr.bf16.mxu1 %v12812_v17  ;;  %v3764_v8 = vand.u32 4294901760, %v3735_v43 }
 0x8ec   :  { %v3286_v23 = vand.u32 4294901760, %v3285_v32  ;;  %11018 = vmatpush3.bf16.msra.mxu1 %v12812_v17  ;;  %v3761_v32 = vand.u32 4294901760, %v3734_v27  ;;  %v3845_v45 = vsub.f32 %v3843_v24, %v3844_v53 }
 0x8ed   :  { %10974 = vmatpush3.bf16.msra.mxu0 %v12776_v39 }
 0x8ee   :  { %v10975_v14 = vpack.c.bf16 %v3293_v30, %v3286_v23  ;;  %v12832_v7 = vpack.c.bf16 %v3764_v8, %v3761_v32  ;;  %v3850_v23 = vsub.f32 %v3731_v47, %v3752_v12  ;;  %v3736_v30 = vld [vmem:[%s13744_s6 + $0x30] sm:$0xff] }
 0x8ef   :  { %v3767_v51 = vand.u32 4294901760, %v3736_v30 }
 0x8f0   :  { %10976 = vmatprep.subr.bf16.mxu0 %v10975_v14  ;;  %v3851_v21 = vand.u32 4294901760, %v3850_v23  ;;  %v11047_v42 = vpack.c.bf16 %v3850_v23, %v3843_v24 }
 0x972   :  { %v3145_v60 = vpop.xlane.xlu1 %3144 }
 0x973   :  { %v3147_v33 = vmul.f32 0.03125, %v3145_v60  ;;  %v3142_v34 = vpop.xlane.xlu0 %3141 }
 0x974   :  { %v3146_v44 = vmul.f32 0.03125, %v3142_v34 }
 0x975   :  { %v3149_v5 = vsub.f32 %v3139_v10, %v3147_v33 }
 0x976   :  { %v3148_v22 = vsub.f32 %v3138_v19, %v3146_v44 }
 0x977   :  { %v3151_v28 = vmul.f32 %v3149_v5, %v3149_v5 }
 0x978   :  { %v3150_v61 = vmul.f32 %v3148_v22, %v3148_v22 }
 0x979   :  { %v3155_v4 = vsel %vm61_vm0, %v3151_v28, 0.0 }
 0x97a   :  { %v3152_v62 = vsel %vm61_vm0, %v3150_v61, 0.0 }
 0x97b   :  { %3153 = vadd.xlane.f32.xlu0 %v3152_v62 }
 0x97f   :  { %3156 = vadd.xlane.f32.xlu0 %v3155_v4 }
 0xa08   :  { %v3154_v20 = vpop.xlane.xlu0 %3153 }
 0xa09   :  { %v3158_v13 = vmul.f32 0.03125, %v3154_v20 }
 0xa0b   :  { %v3160_v29 = vadd.f32 1e-12, %v3158_v13 }
 0xa0c   :  { %v3157_v11 = vpop.xlane.xlu0 %3156 }
 0xa0d   :  { %11863 = vrsqrt.f32 %v3160_v29  ;;  %v3159_v15 = vmul.f32 0.03125, %v3157_v11 }
 0xa0f   :  { %v3161_v57 = vadd.f32 1e-12, %v3159_v15  ;;  %v3871_v15 = vsub.f32 %v3734_v27, %v3761_v32  ;;  %v13751_v27 = vsub.s32 2, %v12112_v52 }
 0xa11   :  { %11865 = vrsqrt.f32 %v3161_v57  ;;  %v3878_v57 = vsub.f32 %v3735_v43, %v3764_v8  ;;  %v3185_v43 = vrot.slane %v12764_v6, %v13751_v27 }
 0xa13   :  { %v11055_v2 = vpack.c.bf16 %v3878_v57, %v3871_v15 }
 0xa17   :  { %v11864_v25 = vpop.eup %11863 }
 0xa18   :  { %v3164_v55 = vmul.f32 %v11864_v25, %v3148_v22 }
 0xa1a   :  { %v3170_v37 = vmul.f32 %v3169_v58, %v3164_v55  ;;  %v3872_v55 = vand.u32 4294901760, %v3871_v15 }
 0xa1b   :  { %v11866_v63 = vpop.eup %11865 }
 0xa1c   :  { %v3165_v10 = vmul.f32 %v11866_v63, %v3149_v5  ;;  %v12790_v19 = vadd.f32 %v3175_v1, %v3170_v37  ;;  %v3873_v63 = vsub.f32 %v3871_v15, %v3872_v55 }
 0xa1e   :  { %v3171_v48 = vmul.f32 %v3169_v58, %v3165_v10  ;;  %v3187_v59 = vsel %vm61_vm0, %v12790_v19, 0 }
 0xa1f   :  { %v3261_v60 = vand.u32 4294901760, %v3187_v59 }
 0xa20   :  { %v12794_v33 = vadd.f32 %v3175_v1, %v3171_v48  ;;  %v3879_v1 = vand.u32 4294901760, %v3878_v57  ;;  %v3885_v48 = vsub.f32 %v3736_v30, %v3767_v51 }
 0xa21   :  { %v3262_v34 = vsub.f32 %v3187_v59, %v3261_v60 }
 0xa22   :  { %v3190_v44 = vsel %vm61_vm0, %v12794_v33, 0  ;;  %v3880_v10 = vsub.f32 %v3878_v57, %v3879_v1 }
 0xa23   :  { %v3263_v22 = vand.u32 4294901760, %v3262_v34  ;;  %v3271_v61 = vand.u32 4294901760, %v3190_v44 }
 0xa25   :  { %v3264_v62 = vsub.f32 %v3262_v34, %v3263_v22  ;;  %v3272_v28 = vsub.f32 %v3190_v44, %v3271_v61  ;;  %v3881_v44 = vand.u32 4294901760, %v3880_v10 }
 0xa27   :  { %v3265_v4 = vand.u32 4294901760, %v3264_v62  ;;  %v3273_v0 = vand.u32 4294901760, %v3272_v28 }
 0xa29   :  { %9859 = vmatprep.mubr.f32.mxu0 %v3265_v4  ;;  %v3274_v5 = vsub.f32 %v3272_v28, %v3273_v0 }
 0xa2b   :  { %v3275_v31 = vand.u32 4294901760, %v3274_v5 }
 0xa2d   :  { %9860 = vmatmul.mubr.f32.vlgmr.msra.gmra.mrb[20].mxu0 %v3275_v31 }
 0xa2e   :  { %10978 = vmatpush3.bf16.msra.mxu0 %v10975_v14  ;;  %9870 = vmatprep.mubr.f32.mxu0 %v3261_v60  ;;  %v3770_v14 = vand.u32 4294901760, %v3737_v36 }
 0xa2f   :  { %10980 = vmatprep.subr.bf16.mxu0 %v10979_v49 }
 0xa30   :  { %v12842_v38 = vpack.c.bf16 %v3770_v14, %v3767_v51  ;;  %v3892_v59 = vsub.f32 %v3737_v36, %v3770_v14 }
 0xa32   :  { %10982 = vmatpush3.bf16.msra.mxu0 %v10979_v49  ;;  %v3852_v49 = vsub.f32 %v3850_v23, %v3851_v21  ;;  %v11059_v12 = vpack.c.bf16 %v3892_v59, %v3885_v48 }
 0xa33   :  { %10984 = vmatprep.subr.bf16.mxu0 %v10983_v46 }
 0xa35   :  { %9871 = vmatmul.mubr.f32.vlgmr.msra.gmra.mrb[20].mxu0 %v3271_v61 }
 0xa36   :  { %10986 = vmatpush3.bf16.msra.mxu0 %v10983_v46  ;;  %9881 = vmatprep.mubr.f32.mxu0 %v3262_v34  ;;  %v3874_v34 = vand.u32 4294901760, %v3873_v63 }
 0xa37   :  { %10988 = vmatprep.subr.bf16.mxu0 %v10987_v50 }
 0xa38   :  { %v11039_v62 = vpack.c.bf16 %v3881_v44, %v3874_v34 }
 0xa3a   :  { %10990 = vmatpush3.bf16.msra.mxu0 %v10987_v50 }
 0xa3b   :  { %10992 = vmatprep.subr.bf16.mxu0 %v12774_v18 }
 0xa3d   :  { %9882 = vmatmul.mubr.f32.vlgmr.msra.gmra.mrb[20].mxu0 %v3272_v28 }
 0xa3e   :  { %10994 = vmatpush3.bf16.msra.mxu0 %v12774_v18  ;;  %9892 = vmatprep.mubr.f32.mxu0 %v3263_v22  ;;  %v3886_v22 = vand.u32 4294901760, %v3885_v48 }
 0xa3f   :  { %10996 = vmatprep.subr.bf16.mxu0 %v12776_v39 }
 0xa40   :  { %v3887_v28 = vsub.f32 %v3885_v48, %v3886_v22 }
 0xa42   :  { %10998 = vmatpush3.bf16.msra.mxu0 %v12776_v39 }
 0xa43   :  { %11000 = vmatprep.subr.bf16.mxu0 %v10999_v9 }
 0xa45   :  { %9893 = vmatmul.mubr.f32.vlgmr.msra.gmra.mrb[20].mxu0 %v3273_v0  ;;  %v3888_v0 = vand.u32 4294901760, %v3887_v28 }
 0xa46   :  { %11002 = vmatpush3.bf16.msra.mxu0 %v10999_v9  ;;  %9903 = vmatprep.mubr.f32.mxu0 %v3261_v60  ;;  %v3846_v9 = vand.u32 4294901760, %v3845_v45 }
 0xa47   :  { %11004 = vmatprep.subr.bf16.mxu0 %v11003_v16 }
 0xa4a   :  { %11006 = vmatpush3.bf16.msra.mxu0 %v11003_v16  ;;  %v3853_v16 = vand.u32 4294901760, %v3852_v49 }
 0xa4b   :  { %11008 = vmatprep.subr.bf16.mxu0 %v12774_v18 }
 0xa4c   :  { %v12846_v29 = vpack.c.bf16 %v3853_v16, %v3846_v9 }
 0xa4d   :  { %9904 = vmatmul.mubr.f32.vlgmr.msra.gmra.mrb[20].mxu0 %v3271_v61 }
 0xa4e   :  { %11010 = vmatpush3.bf16.msra.mxu0 %v12774_v18  ;;  %9914 = vmatprep.mubr.f32.mxu0 %v3261_v60  ;;  %v3733_v18 = vld [vmem:[%s13744_s6 + $0x18] sm:$0xff] }
 0xa4f   :  { %11012 = vmatprep.subr.bf16.mxu0 %v12776_v39  ;;  %v3758_v35 = vand.u32 4294901760, %v3733_v18 }
 0xa51   :  { %v3864_v50 = vsub.f32 %v3733_v18, %v3758_v35 }
 0xa52   :  { %11014 = vmatpush3.bf16.msra.mxu0 %v12776_v39  ;;  %v3755_v39 = vand.u32 4294901760, %v3732_v40 }
 0xa53   :  { %v3865_v13 = vand.u32 4294901760, %v3864_v50 }
 0xa54   :  { %v12822_v41 = vpack.c.bf16 %v3758_v35, %v3755_v39  ;;  %v3857_v46 = vsub.f32 %v3732_v40, %v3755_v39  ;;  %v12849_v40 = vpack.c.bf16 %v3851_v21, %v3844_v53  ;;  %v12853_v39 = vpack.c.bf16 %v3879_v1, %v3872_v55 }
 0xa55   :  { %9915 = vmatmul.mubr.f32.vlgmr.msra.gmra.mrb[20].mxu0 %v3271_v61  ;;  %v3866_v58 = vsub.f32 %v3864_v50, %v3865_v13  ;;  %v3893_v61 = vand.u32 4294901760, %v3892_v59 }
 0xa56   :  { %11020 = vmatprep.subr.bf16.mxu1 %v12822_v41  ;;  %v3858_v20 = vand.u32 4294901760, %v3857_v46  ;;  %v11051_v47 = vpack.c.bf16 %v3864_v50, %v3857_v46 }
 0xa57   :  { %11022 = vmatpush3.bf16.msra.mxu1 %v12822_v41  ;;  %v3867_v37 = vand.u32 4294901760, %v3866_v58  ;;  %v3894_v4 = vsub.f32 %v3892_v59, %v3893_v61  ;;  %v12855_v35 = vpack.c.bf16 %v3893_v61, %v3886_v22 }
 0xa58   :  { %11024 = vmatprep.subr.bf16.mxu1 %v12832_v7  ;;  %v3859_v11 = vsub.f32 %v3857_v46, %v3858_v20  ;;  %v12851_v18 = vpack.c.bf16 %v3865_v13, %v3858_v20 }
 0xa59   :  { %v3895_v5 = vand.u32 4294901760, %v3894_v4 }
 0xa5a   :  { %v3860_v25 = vand.u32 4294901760, %v3859_v11 }
 0xa5b   :  { %11026 = vmatpush3.bf16.msra.mxu1 %v12832_v7  ;;  %v11043_v31 = vpack.c.bf16 %v3895_v5, %v3888_v0 }
 0xa5c   :  { %11028 = vmatprep.subr.bf16.mxu1 %v12842_v38  ;;  %v11035_v60 = vpack.c.bf16 %v3867_v37, %v3860_v25 }
 0xa5f   :  { %11030 = vmatpush3.bf16.msra.mxu1 %v12842_v38 }
 0xa60   :  { %11032 = vmatprep.subr.bf16.mxu1 %v12846_v29 }
 0xb28   :  { %v9916_v32 = vpop.f32.mrb[20].mxu0 }
 0xb29   :  { %v11563_v8 = vadd.f32 %v9916_v32, %v3185_v43  ;;  %v3710_v24 = vpop.f32.mrb[21].mxu0 }
 0xb2a   :  { %v11564_v23 = vadd.f32 %v3710_v24, %v3185_v43 }
 0xb2b   :  { %v3723_v30 = vmul.f32 0.70710677, %v11563_v8  ;;  %v3721_v53 = vmul.f32 0.5, %v11563_v8 }
 0xb2c   :  { %v3722_v36 = vmul.f32 0.70710677, %v11564_v23  ;;  %v3720_v45 = vmul.f32 0.5, %v11564_v23 }
 0xb2d   :  { %11867 = verf.f32 %v3723_v30 }
 0xb2e   :  { %11869 = verf.f32 %v3722_v36 }
 0xb37   :  { %v11868_v51 = vpop.eup %11867 }
 0xb38   :  { %v11870_v14 = vpop.eup %11869  ;;  %v3727_v21 = vadd.f32 1.0, %v11868_v51 }
 0xb39   :  { %v3726_v49 = vadd.f32 1.0, %v11870_v14 }
 0xb3a   :  { %v3729_v46 = vmul.f32 %v3727_v21, %v3721_v53 }
 0xb3b   :  { %v3728_v50 = vmul.f32 %v3726_v49, %v3720_v45 }
 0xb3c   :  { %v3746_v9 = vsel %vm1584_vm3, %v3729_v46, 0 }
 0xb3d   :  { %v3831_v16 = vand.u32 4294901760, %v3746_v9  ;;  %v3743_v20 = vsel %vm1584_vm3, %v3728_v50, 0 }
 0xb3e   :  { %v3821_v13 = vand.u32 4294901760, %v3743_v20 }
 0xb3f   :  { %v3832_v11 = vsub.f32 %v3746_v9, %v3831_v16 }
 0xb40   :  { %v3822_v15 = vsub.f32 %v3743_v20, %v3821_v13 }
 0xb41   :  { %v3833_v57 = vand.u32 4294901760, %v3832_v11 }
 0xb42   :  { %v3823_v58 = vand.u32 4294901760, %v3822_v15 }
 0xb43   :  { %v3834_v25 = vsub.f32 %v3832_v11, %v3833_v57 }
 0xb44   :  { %v3824_v55 = vsub.f32 %v3822_v15, %v3823_v58 }
 0xb45   :  { %v3835_v37 = vand.u32 4294901760, %v3834_v25 }
 0xb46   :  { %v3825_v1 = vand.u32 4294901760, %v3824_v55 }
 0xb48   :  { %9933 = vmatprep.mubr.f32.mxu1 %v3825_v1 }
 0xb49   :  { %9934 = vmatmul.mubr.f32.vlgmr.msra.gmra.mrb[8].mxu1 %v3835_v37 }
 0xb4a   :  { %11034 = vmatpush3.bf16.msra.mxu1 %v12846_v29  ;;  %9952 = vmatprep.mubr.f32.mxu1 %v3821_v13  ;;  %v13750_v29 = vsub.s32 3, %v12112_v52 }
 0xb4b   :  { %11036 = vmatprep.subr.bf16.mxu1 %v11035_v60 }
 0xb4e   :  { %11038 = vmatpush3.bf16.msra.mxu1 %v11035_v60 }
 0xb4f   :  { %11040 = vmatprep.subr.bf16.mxu1 %v11039_v62 }
 0xb52   :  { %11042 = vmatpush3.bf16.msra.mxu1 %v11039_v62 }
 0xb53   :  { %11044 = vmatprep.subr.bf16.mxu1 %v11043_v31 }
 0xb56   :  { %11046 = vmatpush3.bf16.msra.mxu1 %v11043_v31  ;;  %v8648_v31 = vld [vmem:[%s13741_s3 + $0x28] sm:$0xff] }
 0xb57   :  { %11048 = vmatprep.subr.bf16.mxu1 %v11047_v42 }
 0xb59   :  { %9953 = vmatmul.mubr.f32.vlgmr.msra.gmra.mrb[8].mxu1 %v3831_v16 }
 0xb5a   :  { %11050 = vmatpush3.bf16.msra.mxu1 %v11047_v42  ;;  %9971 = vmatprep.mubr.f32.mxu1 %v3822_v15  ;;  %v8649_v42 = vld [vmem:[%s13741_s3 + $0x30] sm:$0xff] }
 0xb5b   :  { %11052 = vmatprep.subr.bf16.mxu1 %v11051_v47 }
 0xb5e   :  { %11054 = vmatpush3.bf16.msra.mxu1 %v11051_v47 }
 0xb5f   :  { %11056 = vmatprep.subr.bf16.mxu1 %v11055_v2 }
 0xb62   :  { %11058 = vmatpush3.bf16.msra.mxu1 %v11055_v2  ;;  %v4389_v2 = vand.u32 4294901760, %v8648_v31 }
 0xb63   :  { %11060 = vmatprep.subr.bf16.mxu1 %v11059_v12 }
 0xb64   :  { %v4483_v32 = vsub.f32 %v8648_v31, %v4389_v2 }
 0xb66   :  { %11062 = vmatpush3.bf16.msra.mxu1 %v11059_v12  ;;  %v8650_v12 = vld [vmem:[%s13741_s3 + $0x38] sm:$0xff]  ;;  %v4484_v24 = vand.u32 4294901760, %v4483_v32 }
 0xb67   :  { %11064 = vmatprep.subr.bf16.mxu1 %v12812_v17 }
 0xb68   :  { %v4485_v30 = vsub.f32 %v4483_v32, %v4484_v24 }
 0xb69   :  { %9972 = vmatmul.mubr.f32.vlgmr.msra.gmra.mrb[8].mxu1 %v3832_v11 }
 0xb6a   :  { %11066 = vmatpush3.bf16.msra.mxu1 %v12812_v17  ;;  %9990 = vmatprep.mubr.f32.mxu1 %v3823_v58  ;;  %v4486_v53 = vand.u32 4294901760, %v4485_v30 }
 0xb6b   :  { %11068 = vmatprep.subr.bf16.mxu1 %v12822_v41 }
 0xb6e   :  { %11070 = vmatpush3.bf16.msra.mxu1 %v12822_v41 }
 0xb6f   :  { %11072 = vmatprep.subr.bf16.mxu1 %v12832_v7 }
 0xb72   :  { %11074 = vmatpush3.bf16.msra.mxu1 %v12832_v7 }
 0xb73   :  { %11076 = vmatprep.subr.bf16.mxu1 %v12842_v38 }
 0xb76   :  { %11078 = vmatpush3.bf16.msra.mxu1 %v12842_v38 }
 0xb77   :  { %11080 = vmatprep.subr.bf16.mxu1 %v12849_v40 }
 0xb79   :  { %9991 = vmatmul.mubr.f32.vlgmr.msra.gmra.mrb[8].mxu1 %v3833_v57 }
 0xb7a   :  { %11082 = vmatpush3.bf16.msra.mxu1 %v12849_v40  ;;  %10009 = vmatprep.mubr.f32.mxu1 %v3821_v13  ;;  %v4392_v40 = vand.u32 4294901760, %v8649_v42 }
 0xb7b   :  { %11084 = vmatprep.subr.bf16.mxu1 %v12851_v18 }
 0xb7c   :  { %v4490_v36 = vsub.f32 %v8649_v42, %v4392_v40 }
 0xb7e   :  { %11086 = vmatpush3.bf16.msra.mxu1 %v12851_v18  ;;  %v4395_v18 = vand.u32 4294901760, %v8650_v12  ;;  %v4491_v21 = vand.u32 4294901760, %v4490_v36 }
 0xb7f   :  { %11088 = vmatprep.subr.bf16.mxu1 %v12853_v39 }
 0xb80   :  { %v4497_v51 = vsub.f32 %v8650_v12, %v4395_v18  ;;  %v4492_v46 = vsub.f32 %v4490_v36, %v4491_v21  ;;  %v8646_v12 = vld [vmem:[%s13745_s7 + $0x8] sm:$0xff] }
 0xb82   :  { %11090 = vmatpush3.bf16.msra.mxu1 %v12853_v39  ;;  %v4498_v45 = vand.u32 4294901760, %v4497_v51  ;;  %v4493_v9 = vand.u32 4294901760, %v4492_v46  ;;  %v11131_v11 = vpack.c.bf16 %v4497_v51, %v4490_v36 }
 0xb83   :  { %11092 = vmatprep.subr.bf16.mxu1 %v12855_v35 }
 0xb84   :  { %v4499_v50 = vsub.f32 %v4497_v51, %v4498_v45  ;;  %v11147_v57 = vpack.c.bf16 %v4498_v45, %v4491_v21 }
 0xb86   :  { %11094 = vmatpush3.bf16.msra.mxu1 %v12855_v35  ;;  %v12912_v35 = vpack.c.bf16 %v4395_v18, %v4392_v40  ;;  %v4378_v40 = vrot.slane %v8646_v12, %v12115_v54 }
 0xb87   :  { %11096 = vmatprep.subr.bf16.mxu1 %v12812_v17 }
 0xb89   :  { %10010 = vmatmul.mubr.f32.vlgmr.msra.gmra.mrb[8].mxu1 %v3831_v16 }
 0xb8a   :  { %11098 = vmatpush3.bf16.msra.mxu1 %v12812_v17  ;;  %10028 = vmatprep.mubr.f32.mxu1 %v3821_v13  ;;  %v3741_v17 = vrot.slane %v12764_v6, %v13750_v29 }
 0xb8b   :  { %11100 = vmatprep.subr.bf16.mxu1 %v12822_v41 }
 0xb8e   :  { %11102 = vmatpush3.bf16.msra.mxu1 %v12822_v41 }
 0xb8f   :  { %11104 = vmatprep.subr.bf16.mxu1 %v12832_v7 }
 0xb92   :  { %11106 = vmatpush3.bf16.msra.mxu1 %v12832_v7 }
 0xb93   :  { %11108 = vmatprep.subr.bf16.mxu1 %v12842_v38 }
 0xb96   :  { %11110 = vmatpush3.bf16.msra.mxu1 %v12842_v38 }
 0xb99   :  { %10029 = vmatmul.mubr.f32.vlgmr.msra.gmra.mrb[8].mxu1 %v3831_v16  ;;  %v4500_v16 = vand.u32 4294901760, %v4499_v50 }
 0xb9b   :  { %v11123_v20 = vpack.c.bf16 %v4500_v16, %v4493_v9 }
 0xc6c   :  { %v10030_v63 = vpop.f32.mrb[8].mxu1 }
 0xc6d   :  { %v11565_v10 = vadd.f32 %v10030_v63, %v3741_v17  ;;  %v4318_v48 = vpop.f32.mrb[9].mxu1  ;;  %v13749_v63 = vsub.s32 6, %v12112_v52 }
 0xc6e   :  { %v11566_v59 = vadd.f32 %v4318_v48, %v3741_v17 }
 0xc6f   :  { %v4329_v41 = vadd.f32 %v11565_v10, %v12794_v33  ;;  %v13748_v10 = vsub.s32 7, %v12112_v52  ;;  %v4359_v48 = vrot.slane %v12764_v6, %v13749_v63 }
 0xc70   :  { %v4328_v60 = vadd.f32 %v11566_v59, %v12790_v19  ;;  %v8647_v19 = vld [vmem:[%s13741_s3 + $0x20] sm:$0xff] }
 0xc71   :  { %v4333_v7 = vsel %vm61_vm0, %v4329_v41, 0.0  ;;  %v4386_v47 = vand.u32 4294901760, %v8647_v19 }
 0xc72   :  { %4334 = vadd.xlane.f32.xlu1 %v4333_v7  ;;  %v4330_v38 = vsel %vm61_vm0, %v4328_v60, 0.0  ;;  %v4365_v7 = vrot.slane %v12764_v6, %v13748_v10 }
 0xc73   :  { %4331 = vadd.xlane.f32.xlu0 %v4330_v38  ;;  %v12910_v39 = vpack.c.bf16 %v4389_v2, %v4386_v47  ;;  %v4476_v43 = vsub.f32 %v8647_v19, %v4386_v47 }
 0xc75   :  { %11112 = vmatprep.subr.bf16.mxu0 %v12910_v39  ;;  %v4477_v8 = vand.u32 4294901760, %v4476_v43  ;;  %v11127_v13 = vpack.c.bf16 %v4483_v32, %v4476_v43 }
 0xc76   :  { %11114 = vmatpush3.bf16.msra.mxu0 %v12910_v39 }
 0xc77   :  { %11116 = vmatprep.subr.bf16.mxu0 %v12912_v35  ;;  %v4478_v23 = vsub.f32 %v4476_v43, %v4477_v8  ;;  %v11143_v15 = vpack.c.bf16 %v4484_v24, %v4477_v8 }
 0xc79   :  { %v4479_v14 = vand.u32 4294901760, %v4478_v23 }
 0xc7a   :  { %11118 = vmatpush3.bf16.msra.mxu0 %v12912_v35 }
 0xc7b   :  { %v11119_v49 = vpack.c.bf16 %v4486_v53, %v4479_v14 }
 0xc7d   :  { %11120 = vmatprep.subr.bf16.mxu0 %v11119_v49 }
 0xcff   :  { %v4335_v34 = vpop.xlane.xlu1 %4334 }
 0xd00   :  { %v4337_v44 = vmul.f32 0.03125, %v4335_v34  ;;  %v4332_v22 = vpop.xlane.xlu0 %4331 }
 0xd01   :  { %v4336_v61 = vmul.f32 0.03125, %v4332_v22 }
 0xd02   :  { %v4339_v62 = vsub.f32 %v4329_v41, %v4337_v44 }
 0xd03   :  { %v4338_v28 = vsub.f32 %v4328_v60, %v4336_v61 }
 0xd04   :  { %v4341_v4 = vmul.f32 %v4339_v62, %v4339_v62 }
 0xd05   :  { %v4340_v0 = vmul.f32 %v4338_v28, %v4338_v28 }
 0xd06   :  { %v4345_v5 = vsel %vm61_vm0, %v4341_v4, 0.0 }
 0xd07   :  { %4346 = vadd.xlane.f32.xlu1 %v4345_v5  ;;  %v4342_v33 = vsel %vm61_vm0, %v4340_v0, 0.0 }
 0xd08   :  { %4343 = vadd.xlane.f32.xlu0 %v4342_v33 }
 0xd94   :  { %v4347_v58 = vpop.xlane.xlu1 %4346 }
 0xd95   :  { %v4349_v25 = vmul.f32 0.03125, %v4347_v58  ;;  %v4344_v55 = vpop.xlane.xlu0 %4343 }
 0xd96   :  { %v4348_v1 = vmul.f32 0.03125, %v4344_v55 }
 0xd97   :  { %v4351_v37 = vadd.f32 1e-12, %v4349_v25 }
 0xd98   :  { %v4350_v17 = vadd.f32 1e-12, %v4348_v1 }
 0xd99   :  { %11871 = vrsqrt.f32 %v4351_v37 }
 0xd9a   :  { %11873 = vrsqrt.f32 %v4350_v17 }
 0xda3   :  { %v11872_v59 = vpop.eup %11871 }
 0xda4   :  { %v11874_v41 = vpop.eup %11873  ;;  %v4355_v60 = vmul.f32 %v11872_v59, %v4339_v62 }
 0xda5   :  { %v4354_v38 = vmul.f32 %v11874_v41, %v4338_v28 }
 0xda6   :  { %v4361_v34 = vmul.f32 %v4359_v48, %v4355_v60 }
 0xda7   :  { %v4360_v44 = vmul.f32 %v4359_v48, %v4354_v38 }
 0xda8   :  { %v12926_v22 = vadd.f32 %v4365_v7, %v4361_v34 }
 0xda9   :  { %v12928_v61 = vadd.f32 %v4365_v7, %v4360_v44 }
 0xdaa   :  { %v4383_v4 = vsel %vm61_vm0, %v12926_v22, 0 }
 0xdab   :  { %v4380_v0 = vsel %vm61_vm0, %v12928_v61, 0  ;;  %v4464_v5 = vand.u32 4294901760, %v4383_v4 }
 0xdac   :  { %v4454_v33 = vand.u32 4294901760, %v4380_v0 }
 0xdad   :  { %v4465_v62 = vsub.f32 %v4383_v4, %v4464_v5 }
 0xdae   :  { %v4455_v19 = vsub.f32 %v4380_v0, %v4454_v33 }
 0xdaf   :  { %v4466_v31 = vand.u32 4294901760, %v4465_v62 }
 0xdb0   :  { %v4456_v42 = vand.u32 4294901760, %v4455_v19 }
 0xdb1   :  { %v4467_v6 = vsub.f32 %v4465_v62, %v4466_v31 }
 0xdb2   :  { %v4457_v28 = vsub.f32 %v4455_v19, %v4456_v42 }
 0xdb3   :  { %v4468_v2 = vand.u32 4294901760, %v4467_v6 }
 0xdb4   :  { %v4458_v47 = vand.u32 4294901760, %v4457_v28 }
 0xdb6   :  { %10039 = vmatprep.mubr.f32.mxu0 %v4458_v47 }
 0xdb7   :  { %10040 = vmatmul.mubr.f32.vlgmr.msra.gmra.mrb[22].mxu0 %v4468_v2 }
 0xdb8   :  { %11122 = vmatpush3.bf16.msra.mxu0 %v11119_v49  ;;  %10050 = vmatprep.mubr.f32.mxu0 %v4454_v33 }
 0xdb9   :  { %11124 = vmatprep.subr.bf16.mxu0 %v11123_v20 }
 0xdbc   :  { %11126 = vmatpush3.bf16.msra.mxu0 %v11123_v20 }
 0xdbd   :  { %11128 = vmatprep.subr.bf16.mxu0 %v11127_v13 }
 0xdbf   :  { %10051 = vmatmul.mubr.f32.vlgmr.msra.gmra.mrb[22].mxu0 %v4464_v5 }
 0xdc0   :  { %11130 = vmatpush3.bf16.msra.mxu0 %v11127_v13  ;;  %10061 = vmatprep.mubr.f32.mxu0 %v4455_v19 }
 0xdc1   :  { %11132 = vmatprep.subr.bf16.mxu0 %v11131_v11 }
 0xdc4   :  { %11134 = vmatpush3.bf16.msra.mxu0 %v11131_v11 }
 0xdc5   :  { %11136 = vmatprep.subr.bf16.mxu0 %v12910_v39 }
 0xdc7   :  { %10062 = vmatmul.mubr.f32.vlgmr.msra.gmra.mrb[22].mxu0 %v4465_v62 }
 0xdc8   :  { %11138 = vmatpush3.bf16.msra.mxu0 %v12910_v39  ;;  %10072 = vmatprep.mubr.f32.mxu0 %v4456_v42 }
 0xdc9   :  { %11140 = vmatprep.subr.bf16.mxu0 %v12912_v35 }
 0xdcc   :  { %11142 = vmatpush3.bf16.msra.mxu0 %v12912_v35 }
 0xdcd   :  { %11144 = vmatprep.subr.bf16.mxu0 %v11143_v15 }
 0xdcf   :  { %10073 = vmatmul.mubr.f32.vlgmr.msra.gmra.mrb[22].mxu0 %v4466_v31 }
 0xdd0   :  { %11146 = vmatpush3.bf16.msra.mxu0 %v11143_v15  ;;  %10083 = vmatprep.mubr.f32.mxu0 %v4454_v33 }
 0xdd1   :  { %11148 = vmatprep.subr.bf16.mxu0 %v11147_v57 }
 0xdd4   :  { %11150 = vmatpush3.bf16.msra.mxu0 %v11147_v57 }
 0xdd5   :  { %11152 = vmatprep.subr.bf16.mxu0 %v12910_v39 }
 0xdd7   :  { %10084 = vmatmul.mubr.f32.vlgmr.msra.gmra.mrb[22].mxu0 %v4464_v5 }
 0xdd8   :  { %11154 = vmatpush3.bf16.msra.mxu0 %v12910_v39  ;;  %10094 = vmatprep.mubr.f32.mxu0 %v4454_v33 }
 0xdd9   :  { %11156 = vmatprep.subr.bf16.mxu0 %v12912_v35 }
 0xddc   :  { %11158 = vmatpush3.bf16.msra.mxu0 %v12912_v35 }
 0xddf   :  { %10095 = vmatmul.mubr.f32.vlgmr.msra.gmra.mrb[22].mxu0 %v4464_v5 }
 0xeb2   :  { %v10096_v18 = vpop.f32.mrb[22].mxu0 }
 0xeb3   :  { %v11567_v43 = vadd.f32 %v10096_v18, %v4378_v40  ;;  %v4903_v32 = vpop.f32.mrb[23].mxu0 }
 0xeb4   :  { %v11568_v8 = vadd.f32 %v4903_v32, %v4378_v40 }
 0xeb5   :  { %4927 = vst.msk [vmem:[#allocation2 + $0x20] sm:$0xff] %vm652_vm1, %v11567_v43 }
 0xeb6   :  { %4913 = vst.msk [vmem:[#allocation2] sm:$0xff] %vm652_vm1, %v11568_v8  ;;  %4919 = vrot.lane.b32.xlu1 %v11568_v8, %s12005_s20  ;;  %4915 = vrot.lane.b32.xlu0 %v11568_v8, %s12006_s21 }
 0xeba   :  { %4923 = vrot.lane.b32.xlu1 %v11568_v8, %s12007_s22  ;;  %4933 = vrot.lane.b32.xlu0 %v11567_v43, %s12005_s20 }
 0xebc   :  { %v12984_v16 = vld [vmem:[#allocation2 + $0x20] sm:$0xff] }
 0xebd   :  { %v12952_v39 = vld [vmem:[#allocation2] sm:$0xff] }
 0xebe   :  { %4929 = vrot.lane.b32.xlu1 %v11567_v43, %s12006_s21  ;;  %4957 = vrot.lane.b32.xlu0 %v12952_v39, %s12008_s23  ;;  %v4973_v54 = vsel %vm713_vm2, %v12952_v39, 0 }
 0xebf   :  { %v12959_v35 = vand.u32 4294901760, %v4973_v54 }
 0xec1   :  { %v12962_v24 = vsub.f32 %v4973_v54, %v12959_v35 }
 0xec2   :  { %4937 = vrot.lane.b32.xlu1 %v11567_v43, %s12007_s22 }
 0xec3   :  { %v5080_v23 = vand.u32 4294901760, %v12962_v24 }
 0xec5   :  { %v5081_v30 = vsub.f32 %v12962_v24, %v5080_v23 }
 0xec7   :  { %v5082_v36 = vand.u32 4294901760, %v5081_v30 }
 0xec9   :  { %10113 = vmatprep.mubr.f32.mxu1 %v5082_v36 }
 0xf28   :  { %v4920_v51 = vpop.permute.xlu1 %4919  ;;  %v4916_v14 = vpop.permute.xlu0 %4915 }
 0xf29   :  { %4922 = vst.msk [vmem:[#allocation2 + $0x10] sm:$0xff] %vm652_vm1, %v4920_v51  ;;  %4918 = vst.msk [vmem:[#allocation2 + $0x8] sm:$0xff] %vm652_vm1, %v4916_v14 }
 0xf2c   :  { %v4924_v53 = vpop.permute.xlu1 %4923  ;;  %v4934_v21 = vpop.permute.xlu0 %4933 }
 0xf2d   :  { %4926 = vst.msk [vmem:[#allocation2 + $0x18] sm:$0xff] %vm652_vm1, %v4924_v53  ;;  %4936 = vst.msk [vmem:[#allocation2 + $0x30] sm:$0xff] %vm652_vm1, %v4934_v21 }
 0xf30   :  { %v4930_v45 = vpop.permute.xlu1 %4929  ;;  %v12973_v49 = vld [vmem:[#allocation2 + $0x8] sm:$0xff]  ;;  %v12975_v46 = vld [vmem:[#allocation2 + $0x10] sm:$0xff]  ;;  %v4958_v15 = vpop.permute.xlu0 %4957 }
 0xf31   :  { %4932 = vst.msk [vmem:[#allocation2 + $0x28] sm:$0xff] %vm652_vm1, %v4930_v45  ;;  %4959 = vrot.lane.b32.xlu1 %v12973_v49, %s12008_s23  ;;  %4961 = vrot.lane.b32.xlu0 %v12975_v46, %s12008_s23  ;;  %v4989_v57 = vsel %vm713_vm2, %v4958_v15, 0  ;;  %v4975_v53 = vsel %vm713_vm2, %v12973_v49, 0 }
 0xf32   :  { %v5006_v37 = vand.u32 4294901760, %v4989_v57 }
 0xf34   :  { %v4938_v50 = vpop.permute.xlu1 %4937  ;;  %v12982_v9 = vld [vmem:[#allocation2 + $0x18] sm:$0xff]  ;;  %v12993_v13 = vld [vmem:[#allocation2 + $0x30] sm:$0xff]  ;;  %v13039_v14 = vsub.f32 %v4989_v57, %v5006_v37 }
 0xf35   :  { %4940 = vst.msk [vmem:[#allocation2 + $0x38] sm:$0xff] %vm652_vm1, %v4938_v50  ;;  %4963 = vrot.lane.b32.xlu1 %v12982_v9, %s12008_s23  ;;  %4965 = vrot.lane.b32.xlu0 %v12984_v16, %s12008_s23  ;;  %v4977_v50 = vsel %vm713_vm2, %v12975_v46, 0 }
 0xf38   :  { %v12991_v20 = vld [vmem:[#allocation2 + $0x28] sm:$0xff] }
 0xf39   :  { %4967 = vrot.lane.b32.xlu1 %v12991_v20, %s12008_s23  ;;  %4969 = vrot.lane.b32.xlu0 %v12993_v13, %s12008_s23 }
 0xf3c   :  { %v12999_v11 = vld [vmem:[#allocation2 + $0x38] sm:$0xff] }
 0xf3d   :  { %4971 = vrot.lane.b32.xlu1 %v12999_v11, %s12008_s23 }
 0xfa3   :  { %v4960_v58 = vpop.permute.xlu1 %4959  ;;  %v4962_v25 = vpop.permute.xlu0 %4961 }
 0xfa4   :  { %v4991_v55 = vsel %vm713_vm2, %v4960_v58, 0  ;;  %v4993_v1 = vsel %vm713_vm2, %v4962_v25, 0  ;;  %v13055_v25 = vand.u32 4294901760, %v4975_v53 }
 0xfa5   :  { %v5009_v17 = vand.u32 4294901760, %v4991_v55  ;;  %v5012_v48 = vand.u32 4294901760, %v4993_v1 }
 0xfa7   :  { %v13006_v59 = vpack.c.bf16 %v5009_v17, %v5006_v37  ;;  %v4964_v41 = vpop.permute.xlu1 %4963  ;;  %v4966_v60 = vpop.permute.xlu0 %4965  ;;  %v13011_v44 = vsub.f32 %v4993_v1, %v5012_v48  ;;  %v13027_v18 = vsub.f32 %v4991_v55, %v5009_v17  ;;  %v13756_v55 = vand.u32 4294901760, %v13039_v14 }
 0xfa8   :  { %v4995_v7 = vsel %vm713_vm2, %v4964_v41, 0  ;;  %v4997_v38 = vsel %vm713_vm2, %v4966_v60, 0  ;;  %v13064_v37 = vand.u32 4294901760, %v4977_v50  ;;  %v4979_v17 = vsel %vm713_vm2, %v12982_v9, 0 }
 0xfa9   :  { %v5015_v34 = vand.u32 4294901760, %v4995_v7  ;;  %11160 = vmatprep.subr.bf16.mxu1 %v13006_v59  ;;  %v5018_v4 = vand.u32 4294901760, %v4997_v38  ;;  %v5175_v47 = vand.u32 4294901760, %v13011_v44  ;;  %v13755_v15 = vand.u32 4294901760, %v13027_v18 }
 0xfaa   :  { %11162 = vmatpush3.bf16.xpose.msra.mxu1 %v13006_v59 }
 0xfab   :  { %v13014_v0 = vpack.c.bf16 %v5015_v34, %v5012_v48  ;;  %v13016_v5 = vsub.f32 %v4995_v7, %v5015_v34  ;;  %v4968_v33 = vpop.permute.xlu1 %4967  ;;  %v4970_v62 = vpop.permute.xlu0 %4969  ;;  %v13023_v2 = vsub.f32 %v4997_v38, %v5018_v4  ;;  %v4981_v48 = vsel %vm713_vm2, %v12984_v16, 0 }
 0xfac   :  { %v4999_v19 = vsel %vm713_vm2, %v4968_v33, 0  ;;  %v5001_v31 = vsel %vm713_vm2, %v4970_v62, 0  ;;  %v5169_v41 = vsub.f32 %v13027_v18, %v13755_v15  ;;  %v13076_v7 = vsub.f32 %v4975_v53, %v13055_v25 }
 0xfad   :  { %v5182_v42 = vand.u32 4294901760, %v13016_v5  ;;  %v5021_v6 = vand.u32 4294901760, %v4999_v19  ;;  %v5024_v28 = vand.u32 4294901760, %v5001_v31  ;;  %11164 = vmatprep.subr.bf16.mxu1 %v13014_v0  ;;  %v5189_v51 = vand.u32 4294901760, %v13023_v2 }
 0xfae   :  { %v5162_v38 = vsub.f32 %v13039_v14, %v13756_v55  ;;  %v13082_v34 = vand.u32 4294901760, %v4979_v17  ;;  %v13088_v33 = vand.u32 4294901760, %v4981_v48  ;;  %v4983_v62 = vsel %vm713_vm2, %v12991_v20, 0 }
 0xfaf   :  { %v13025_v12 = vsub.f32 %v4999_v19, %v5021_v6  ;;  %v4972_v40 = vpop.permute.xlu1 %4971  ;;  %v13030_v32 = vpack.c.bf16 %v5182_v42, %v5175_v47  ;;  %v13032_v8 = vpack.c.bf16 %v5021_v6, %v5018_v4  ;;  %v13035_v30 = vsub.f32 %v5001_v31, %v5024_v28 }
 0xfb0   :  { %v5003_v43 = vsel %vm713_vm2, %v4972_v40, 0  ;;  %v13086_v4 = vsub.f32 %v4977_v50, %v13064_v37  ;;  %v4985_v19 = vsel %vm713_vm2, %v12993_v13, 0  ;;  %v5170_v31 = vand.u32 4294901760, %v5169_v41 }
 0xfb1   :  { %v5196_v54 = vand.u32 4294901760, %v13025_v12  ;;  %v5027_v36 = vand.u32 4294901760, %v5003_v43  ;;  %v5203_v58 = vand.u32 4294901760, %v13035_v30  ;;  %v13754_v6 = vand.u32 4294901760, %v13076_v7 }
 0xfb2   :  { %11166 = vmatpush3.bf16.xpose.msra.mxu1 %v13014_v0  ;;  %v13098_v40 = vand.u32 4294901760, %v4983_v62  ;;  %v13103_v53 = vand.u32 4294901760, %v4985_v19  ;;  %v4987_v50 = vsel %vm713_vm2, %v12999_v11, 0  ;;  %v13757_v10 = vand.u32 4294901760, %v13086_v4 }
 0xfb3   :  { %v13043_v21 = vsub.f32 %v5003_v43, %v5027_v36  ;;  %11168 = vmatprep.subr.bf16.mxu1 %v13032_v8  ;;  %v13048_v45 = vpack.c.bf16 %v5196_v54, %v5189_v51  ;;  %v13073_v60 = vpack.c.bf16 %v5027_v36, %v5024_v28  ;;  %v13096_v28 = vsub.f32 %v4979_v17, %v13082_v34 }
 0xfb4   :  { %v5163_v43 = vand.u32 4294901760, %v5162_v38  ;;  %v13101_v36 = vsub.f32 %v4981_v48, %v13088_v33  ;;  %v5183_v41 = vsub.f32 %v13016_v5, %v5182_v42  ;;  %v5091_v17 = vsub.f32 %v13076_v7, %v13754_v6 }
 0xfb5   :  { %v5210_v57 = vand.u32 4294901760, %v13043_v21  ;;  %v13114_v38 = vsub.f32 %v4983_v62, %v13098_v40  ;;  %v13116_v48 = vand.u32 4294901760, %v4987_v50  ;;  %v5176_v29 = vsub.f32 %v13011_v44, %v5175_v47 }
 0xfb6   :  { %v11175_v63 = vpack.c.bf16 %v5170_v31, %v5163_v43  ;;  %v13759_v27 = vand.u32 4294901760, %v13096_v28  ;;  %v13121_v3 = vsub.f32 %v4985_v19, %v13103_v53  ;;  %v5101_v42 = vsub.f32 %v13086_v4, %v13757_v10 }
 0xfb7   :  { %v13062_v1 = vpack.c.bf16 %v5210_v57, %v5203_v58  ;;  %v13758_v31 = vand.u32 4294901760, %v13101_v36  ;;  %v5184_v43 = vand.u32 4294901760, %v5183_v41  ;;  %v5092_v26 = vand.u32 4294901760, %v5091_v17 }
 0xfb8   :  { %v13128_v62 = vsub.f32 %v4987_v50, %v13116_v48  ;;  %v5177_v6 = vand.u32 4294901760, %v5176_v29  ;;  %v5111_v47 = vsub.f32 %v13096_v28, %v13759_v27  ;;  %v5130_v15 = vand.u32 4294901760, %v13114_v38 }
 0xfb9   :  { %v5102_v19 = vand.u32 4294901760, %v5101_v42  ;;  %v5121_v55 = vsub.f32 %v13101_v36, %v13758_v31  ;;  %v5140_v10 = vand.u32 4294901760, %v13121_v3  ;;  %v5197_v41 = vsub.f32 %v13025_v12, %v5196_v54 }
 0xfba   :  { %11170 = vmatpush3.bf16.xpose.msra.mxu1 %v13032_v8  ;;  %v11179_v17 = vpack.c.bf16 %v5184_v43, %v5177_v6  ;;  %v5190_v29 = vsub.f32 %v13023_v2, %v5189_v51  ;;  %v5112_v50 = vand.u32 4294901760, %v5111_v47  ;;  %v5131_v42 = vsub.f32 %v13114_v38, %v5130_v15 }
 0xfbb   :  { %11172 = vmatprep.subr.bf16.mxu1 %v13073_v60  ;;  %v5150_v31 = vand.u32 4294901760, %v13128_v62  ;;  %v5122_v27 = vand.u32 4294901760, %v5121_v55  ;;  %v5198_v54 = vand.u32 4294901760, %v5197_v41  ;;  %v5211_v47 = vsub.f32 %v13043_v21, %v5210_v57 }
 0xfbc   :  { %v5191_v6 = vand.u32 4294901760, %v5190_v29  ;;  %v11191_v57 = vpack.c.bf16 %v13027_v18, %v13039_v14 }
 0xfbd   :  { %v5151_v51 = vsub.f32 %v13128_v62, %v5150_v31  ;;  %v5212_v41 = vand.u32 4294901760, %v5211_v47 }
 0xfbe   :  { %v11183_v55 = vpack.c.bf16 %v5198_v54, %v5191_v6 }
 0xfc2   :  { %11174 = vmatpush3.bf16.xpose.msra.mxu1 %v13073_v60 }
 0xfc3   :  { %11176 = vmatprep.subr.bf16.mxu1 %v11175_v63 }
 0xfc9   :  { %10114 = vmatmul.mubr.f32.vlgmr.msra.gmra.mrb[10].mxu1 %v5092_v26  ;;  %v5141_v26 = vsub.f32 %v13121_v3, %v5140_v10 }
 0xfca   :  { %10116 = vmatprep.mubr.f32.mxu1 %v5102_v19  ;;  %11178 = vmatpush3.bf16.xpose.msra.mxu1 %v11175_v63  ;;  %v5132_v63 = vand.u32 4294901760, %v5131_v42  ;;  %v5204_v19 = vsub.f32 %v13035_v30, %v5203_v58  ;;  %v11195_v58 = vpack.c.bf16 %v13016_v5, %v13011_v44  ;;  %v11203_v44 = vpack.c.bf16 %v13043_v21, %v13035_v30 }
 0xfcb   :  { %11180 = vmatprep.subr.bf16.mxu1 %v11179_v17  ;;  %v5142_v43 = vand.u32 4294901760, %v5141_v26  ;;  %v13761_v5 = vand.u32 4294901760, %v13039_v14  ;;  %v13763_v30 = vand.u32 4294901760, %v13076_v7  ;;  %v13764_v21 = vand.u32 4294901760, %v13086_v4  ;;  %v11927_v26 = vld [vmem:[%s13740_s2 + $0x30] sm:$0xff] }
 0xfcc   :  { %v5205_v29 = vand.u32 4294901760, %v5204_v19 }
 0xfcd   :  { %10117 = vmatmul.mubr.f32.gmra.mrb[12].mxu1 %v5112_v50 }
 0xfce   :  { %10119 = vmatprep.mubr.f32.mxu1 %v5122_v27  ;;  %v5152_v27 = vand.u32 4294901760, %v5151_v51  ;;  %v11187_v50 = vpack.c.bf16 %v5212_v41, %v5205_v29 }
 0xfd1   :  { %10120 = vmatmul.mubr.f32.gmra.mrb[14].mxu1 %v5132_v63 }
 0xfd2   :  { %10122 = vmatprep.mubr.f32.mxu1 %v5142_v43  ;;  %11182 = vmatpush3.bf16.xpose.msra.mxu1 %v11179_v17  ;;  %v11199_v17 = vpack.c.bf16 %v13025_v12, %v13023_v2  ;;  %v13762_v2 = vand.u32 4294901760, %v13027_v18 }
 0xfd3   :  { %11184 = vmatprep.subr.bf16.mxu1 %v11183_v55 }
 0xfd4   :  { %v11223_v12 = vpack.c.bf16 %v13762_v2, %v13761_v5 }
 0xfd5   :  { %10123 = vmatmul.mubr.f32.gmra.mrb[16].mxu1 %v5152_v27 }
 0xfd6   :  { %10141 = vmatprep.mubr.f32.mxu1 %v12959_v35 }
 0xfda   :  { %11186 = vmatpush3.bf16.xpose.msra.mxu1 %v11183_v55 }
 0xfdb   :  { %11188 = vmatprep.subr.bf16.mxu1 %v11187_v50 }
 0xfe2   :  { %11190 = vmatpush3.bf16.xpose.msra.mxu1 %v11187_v50 }
 0xfe3   :  { %11192 = vmatprep.subr.bf16.mxu1 %v11191_v57 }
 0xfe9   :  { %10142 = vmatmul.mubr.f32.vlgmr.msra.gmra.mrb[10].mxu1 %v13055_v25 }
 0xfea   :  { %10144 = vmatprep.mubr.f32.mxu1 %v13064_v37  ;;  %11194 = vmatpush3.bf16.xpose.msra.mxu1 %v11191_v57 }
 0xfeb   :  { %11196 = vmatprep.subr.bf16.mxu1 %v11195_v58 }
 0xfed   :  { %10145 = vmatmul.mubr.f32.gmra.mrb[12].mxu1 %v13082_v34 }
 0xfee   :  { %10147 = vmatprep.mubr.f32.mxu1 %v13088_v33 }
 0xff1   :  { %10148 = vmatmul.mubr.f32.gmra.mrb[14].mxu1 %v13098_v40 }
 0xff2   :  { %10150 = vmatprep.mubr.f32.mxu1 %v13103_v53  ;;  %11198 = vmatpush3.bf16.xpose.msra.mxu1 %v11195_v58 }
 0xff3   :  { %11200 = vmatprep.subr.bf16.mxu1 %v11199_v17 }
 0xff5   :  { %10151 = vmatmul.mubr.f32.gmra.mrb[16].mxu1 %v13116_v48 }
 0xff6   :  { %10169 = vmatprep.mubr.f32.mxu1 %v12962_v24  ;;  %v13765_v24 = vand.u32 4294901760, %v13096_v28 }
 0xffa   :  { %11202 = vmatpush3.bf16.xpose.msra.mxu1 %v11199_v17 }
 0xffb   :  { %11204 = vmatprep.subr.bf16.mxu1 %v11203_v44 }
0x1002   :  { %11206 = vmatpush3.bf16.xpose.msra.mxu1 %v11203_v44 }
0x1003   :  { %11208 = vmatprep.subr.bf16.mxu1 %v13006_v59 }
0x1009   :  { %10170 = vmatmul.mubr.f32.vlgmr.msra.gmra.mrb[10].mxu1 %v13076_v7 }
0x100a   :  { %10172 = vmatprep.mubr.f32.mxu1 %v13086_v4  ;;  %11210 = vmatpush3.bf16.xpose.msra.mxu1 %v13006_v59 }
0x100b   :  { %11212 = vmatprep.subr.bf16.mxu1 %v13014_v0 }
0x100d   :  { %10173 = vmatmul.mubr.f32.gmra.mrb[12].mxu1 %v13096_v28 }
0x100e   :  { %10175 = vmatprep.mubr.f32.mxu1 %v13101_v36 }
0x1011   :  { %10176 = vmatmul.mubr.f32.gmra.mrb[14].mxu1 %v13114_v38 }
0x1012   :  { %10178 = vmatprep.mubr.f32.mxu1 %v13121_v3  ;;  %11214 = vmatpush3.bf16.xpose.msra.mxu1 %v13014_v0 }
0x1013   :  { %11216 = vmatprep.subr.bf16.mxu1 %v13032_v8 }
0x1015   :  { %10179 = vmatmul.mubr.f32.gmra.mrb[16].mxu1 %v13128_v62 }
0x1016   :  { %10197 = vmatprep.mubr.f32.mxu1 %v5080_v23  ;;  %v13766_v23 = vand.u32 4294901760, %v13101_v36 }
0x101a   :  { %11218 = vmatpush3.bf16.xpose.msra.mxu1 %v13032_v8 }
0x101b   :  { %11220 = vmatprep.subr.bf16.mxu1 %v13073_v60 }
0x1022   :  { %11222 = vmatpush3.bf16.xpose.msra.mxu1 %v13073_v60 }
0x1023   :  { %11224 = vmatprep.subr.bf16.mxu1 %v11223_v12 }
0x1029   :  { %10198 = vmatmul.mubr.f32.vlgmr.msra.gmra.mrb[10].mxu1 %v13763_v30 }
0x102a   :  { %10200 = vmatprep.mubr.f32.mxu1 %v13764_v21  ;;  %11226 = vmatpush3.bf16.xpose.msra.mxu1 %v11223_v12 }
0x102b   :  { %11228 = vmatprep.subr.bf16.mxu1 %v13030_v32 }
0x102d   :  { %10201 = vmatmul.mubr.f32.gmra.mrb[12].mxu1 %v13765_v24 }
0x102e   :  { %10203 = vmatprep.mubr.f32.mxu1 %v13766_v23 }
0x1031   :  { %10204 = vmatmul.mubr.f32.gmra.mrb[14].mxu1 %v5130_v15 }
0x1032   :  { %10206 = vmatprep.mubr.f32.mxu1 %v5140_v10  ;;  %11230 = vmatpush3.bf16.xpose.msra.mxu1 %v13030_v32  ;;  %v11920_v10 = vld [vmem:[%s13740_s2 + $0x8] sm:$0xff] }
0x1033   :  { %11232 = vmatprep.subr.bf16.mxu1 %v13048_v45 }
0x1035   :  { %10207 = vmatmul.mubr.f32.gmra.mrb[16].mxu1 %v5150_v31 }
0x1036   :  { %10225 = vmatprep.mubr.f32.mxu1 %v12959_v35 }
0x103a   :  { %11234 = vmatpush3.bf16.xpose.msra.mxu1 %v13048_v45  ;;  %v11922_v45 = vld [vmem:[%s13740_s2 + $0x18] sm:$0xff] }
0x103b   :  { %11236 = vmatprep.subr.bf16.mxu1 %v13062_v1 }
0x1042   :  { %11238 = vmatpush3.bf16.xpose.msra.mxu1 %v13062_v1 }
0x1043   :  { %11240 = vmatprep.subr.bf16.mxu1 %v13006_v59 }
0x1049   :  { %10226 = vmatmul.mubr.f32.vlgmr.msra.gmra.mrb[10].mxu1 %v13055_v25 }
0x104a   :  { %10228 = vmatprep.mubr.f32.mxu1 %v13064_v37  ;;  %11242 = vmatpush3.bf16.xpose.msra.mxu1 %v13006_v59 }
0x104b   :  { %11244 = vmatprep.subr.bf16.mxu1 %v13014_v0 }
0x104d   :  { %10229 = vmatmul.mubr.f32.gmra.mrb[12].mxu1 %v13082_v34 }
0x104e   :  { %10231 = vmatprep.mubr.f32.mxu1 %v13088_v33 }
0x1051   :  { %10232 = vmatmul.mubr.f32.gmra.mrb[14].mxu1 %v13098_v40 }
0x1052   :  { %10234 = vmatprep.mubr.f32.mxu1 %v13103_v53  ;;  %11246 = vmatpush3.bf16.xpose.msra.mxu1 %v13014_v0  ;;  %v11921_v0 = vld [vmem:[%s13740_s2] sm:$0xff] }
0x1053   :  { %11248 = vmatprep.subr.bf16.mxu1 %v13032_v8 }
0x1055   :  { %10235 = vmatmul.mubr.f32.gmra.mrb[16].mxu1 %v13116_v48 }
0x1056   :  { %10253 = vmatprep.mubr.f32.mxu1 %v12959_v35 }
0x105a   :  { %11250 = vmatpush3.bf16.xpose.msra.mxu1 %v13032_v8 }
0x105b   :  { %11252 = vmatprep.subr.bf16.mxu1 %v13073_v60 }
0x1062   :  { %11254 = vmatpush3.bf16.xpose.msra.mxu1 %v13073_v60 }
0x1069   :  { %10254 = vmatmul.mubr.f32.vlgmr.msra.gmra.mrb[10].mxu1 %v13055_v25 }
0x106a   :  { %10256 = vmatprep.mubr.f32.mxu1 %v13064_v37  ;;  %v11923_v37 = vld [vmem:[%s13740_s2 + $0x10] sm:$0xff] }
0x106d   :  { %10257 = vmatmul.mubr.f32.gmra.mrb[12].mxu1 %v13082_v34  ;;  %v11924_v34 = vld [vmem:[%s13740_s2 + $0x28] sm:$0xff] }
0x106e   :  { %10259 = vmatprep.mubr.f32.mxu1 %v13088_v33 }
0x1071   :  { %10260 = vmatmul.mubr.f32.gmra.mrb[14].mxu1 %v13098_v40  ;;  %v11925_v40 = vld [vmem:[%s13740_s2 + $0x20] sm:$0xff] }
0x1072   :  { %10262 = vmatprep.mubr.f32.mxu1 %v13103_v53 }
0x1075   :  { %10263 = vmatmul.mubr.f32.gmra.mrb[16].mxu1 %v13116_v48  ;;  %v11926_v48 = vld [vmem:[%s13740_s2 + $0x38] sm:$0xff] }
0x113c   :  { %v10255_v3 = vpop.f32.mrb[10].mxu1 }
0x113d   :  { %v11569_v35 = vadd.f32 %v11920_v10, %v10255_v3  ;;  %v5797_v59 = vpop.f32.mrb[11].mxu1 }
0x113e   :  { %v11570_v18 = vadd.f32 %v11921_v0, %v5797_v59 }
0x113f   :  { %v5846_v32 = vsel %vm1584_vm3, %v11569_v35, -inf }
0x1140   :  { %5847 = vmax.xlane.f32.xlu1 %v5846_v32  ;;  %v10258_v8 = vpop.f32.mrb[12].mxu1  ;;  %v5843_v14 = vsel %vm1584_vm3, %v11570_v18, -inf }
0x1141   :  { %v11571_v15 = vadd.f32 %v11922_v45, %v10258_v8  ;;  %v5809_v25 = vpop.f32.mrb[13].mxu1  ;;  %5844 = vmax.xlane.f32.xlu0 %v5843_v14 }
0x1142   :  { %v11572_v60 = vadd.f32 %v11923_v37, %v5809_v25 }
0x1143   :  { %v5852_v1 = vsel %vm1584_vm3, %v11571_v15, -inf }
0x1144   :  { %v10261_v7 = vpop.f32.mrb[14].mxu1  ;;  %v5849_v38 = vsel %vm1584_vm3, %v11572_v60, -inf }
0x1145   :  { %v11573_v4 = vadd.f32 %v11924_v34, %v10261_v7  ;;  %v5821_v33 = vpop.f32.mrb[15].mxu1  ;;  %5853 = vmax.xlane.f32.xlu0 %v5852_v1 }
0x1146   :  { %v11574_v36 = vadd.f32 %v11925_v40, %v5821_v33 }
0x1147   :  { %v5858_v28 = vsel %vm1584_vm3, %v11573_v4, -inf }
0x1148   :  { %5859 = vmax.xlane.f32.xlu1 %v5858_v28  ;;  %v10264_v53 = vpop.f32.mrb[16].mxu1  ;;  %v5855_v63 = vsel %vm1584_vm3, %v11574_v36, -inf }
0x1149   :  { %v11575_v31 = vadd.f32 %v11926_v48, %v10264_v53  ;;  %v5833_v62 = vpop.f32.mrb[17].mxu1  ;;  %5850 = vmax.xlane.f32.xlu0 %v5849_v38 }
0x114a   :  { %v11576_v54 = vadd.f32 %v11927_v26, %v5833_v62 }
0x114b   :  { %v5864_v42 = vsel %vm1584_vm3, %v11575_v31, -inf }
0x114c   :  { %5865 = vmax.xlane.f32.xlu1 %v5864_v42  ;;  %v5861_v6 = vsel %vm1584_vm3, %v11576_v54, -inf }
0x114d   :  { %5856 = vmax.xlane.f32.xlu0 %v5855_v63 }
0x1151   :  { %5862 = vmax.xlane.f32.xlu0 %v5861_v6 }
0x115d   :  { %5933 = vrot.lane.b32.xlu1 %v12973_v49, %s12009_s18 }
0x1161   :  { %5935 = vrot.lane.b32.xlu1 %v12975_v46, %s12009_s18 }
0x1165   :  { %5937 = vrot.lane.b32.xlu1 %v12982_v9, %s12009_s18 }
0x1167   :  { %5931 = vrot.lane.b32.xlu0 %v12952_v39, %s12009_s18 }
0x1169   :  { %5941 = vrot.lane.b32.xlu1 %v12991_v20, %s12009_s18 }
0x116b   :  { %5939 = vrot.lane.b32.xlu0 %v12984_v16, %s12009_s18 }
0x11cd   :  { %v5848_v51 = vpop.xlane.xlu1 %5847 }
0x11ce   :  { %v5868_v43 = vsub.f32 %v11569_v35, %v5848_v51  ;;  %v5845_v47 = vpop.xlane.xlu0 %5844 }
0x11cf   :  { %v5867_v55 = vsub.f32 %v11570_v18, %v5845_v47 }
0x11d0   :  { %v5877_v49 = vmul.f32 1.442695, %v5868_v43 }
0x11d1   :  { %v5875_v19 = vmul.f32 1.442695, %v5867_v55 }
0x11d2   :  { %11875 = vpow2.f32 %v5877_v49  ;;  %v5854_v46 = vpop.xlane.xlu0 %5853 }
0x11d3   :  { %11877 = vpow2.f32 %v5875_v19  ;;  %v5870_v27 = vsub.f32 %v11571_v15, %v5854_v46 }
0x11d5   :  { %v5881_v9 = vmul.f32 1.442695, %v5870_v27  ;;  %v5860_v41 = vpop.xlane.xlu1 %5859 }
0x11d6   :  { %v5872_v29 = vsub.f32 %v11573_v4, %v5860_v41  ;;  %v5851_v39 = vpop.xlane.xlu0 %5850 }
0x11d7   :  { %11879 = vpow2.f32 %v5881_v9  ;;  %v5869_v50 = vsub.f32 %v11572_v60, %v5851_v39 }
0x11d8   :  { %v5885_v20 = vmul.f32 1.442695, %v5872_v29 }
0x11d9   :  { %v5879_v57 = vmul.f32 1.442695, %v5869_v50  ;;  %v5866_v58 = vpop.xlane.xlu1 %5865 }
0x11da   :  { %11881 = vpow2.f32 %v5885_v20  ;;  %v5874_v16 = vsub.f32 %v11575_v31, %v5866_v58  ;;  %v5857_v17 = vpop.xlane.xlu0 %5856 }
0x11db   :  { %11883 = vpow2.f32 %v5879_v57  ;;  %v5871_v44 = vsub.f32 %v11574_v36, %v5857_v17 }
0x11dc   :  { %v13284_v5 = vpop.eup %11875  ;;  %v5889_v2 = vmul.f32 1.442695, %v5874_v16 }
0x11dd   :  { %v13286_v12 = vpop.eup %11877  ;;  %v5883_v30 = vmul.f32 1.442695, %v5871_v44  ;;  %v5934_v21 = vpop.permute.xlu1 %5933  ;;  %v5894_v24 = vsel %vm1584_vm3, %v13284_v5, 0.0 }
0x11de   :  { %11885 = vpow2.f32 %v5889_v2  ;;  %v5983_v23 = vand.u32 4294901760, %v5934_v21  ;;  %5895 = vadd.xlane.f32.xlu1 %v5894_v24  ;;  %v5863_v3 = vpop.xlane.xlu0 %5862  ;;  %v5891_v10 = vsel %vm1584_vm3, %v13286_v12, 0.0 }
0x11df   :  { %11887 = vpow2.f32 %v5883_v30  ;;  %v5873_v35 = vsub.f32 %v11576_v54, %v5863_v3  ;;  %5892 = vadd.xlane.f32.xlu0 %v5891_v10 }
0x11e0   :  { %v6141_v59 = vsub.f32 %v5934_v21, %v5983_v23 }
0x11e1   :  { %v13292_v0 = vpop.eup %11879  ;;  %v5887_v18 = vmul.f32 1.442695, %v5873_v35  ;;  %v5936_v32 = vpop.permute.xlu1 %5935 }
0x11e2   :  { %v5986_v8 = vand.u32 4294901760, %v5936_v32  ;;  %v5932_v14 = vpop.permute.xlu0 %5931  ;;  %v5900_v45 = vsel %vm1584_vm3, %v13292_v0, 0.0  ;;  %v6142_v15 = vand.u32 4294901760, %v6141_v59 }
0x11e3   :  { %11889 = vpow2.f32 %v5887_v18  ;;  %v5980_v25 = vand.u32 4294901760, %v5932_v14  ;;  %5901 = vadd.xlane.f32.xlu1 %v5900_v45 }
0x11e4   :  { %v13296_v1 = vpop.eup %11881  ;;  %v6148_v37 = vsub.f32 %v5936_v32, %v5986_v8  ;;  %v6143_v38 = vsub.f32 %v6141_v59, %v6142_v15 }
0x11e5   :  { %v13298_v60 = vpop.eup %11883  ;;  %v13300_v7 = vpack.c.bf16 %v5983_v23, %v5980_v25  ;;  %v6134_v34 = vsub.f32 %v5932_v14, %v5980_v25  ;;  %v5938_v4 = vpop.permute.xlu1 %5937  ;;  %v5906_v33 = vsel %vm1584_vm3, %v13296_v1, 0.0 }
0x11e6   :  { %v6149_v28 = vand.u32 4294901760, %v6148_v37  ;;  %v5989_v40 = vand.u32 4294901760, %v5938_v4  ;;  %v5940_v36 = vpop.permute.xlu0 %5939  ;;  %v5897_v53 = vsel %vm1584_vm3, %v13298_v60, 0.0  ;;  %v6144_v29 = vand.u32 4294901760, %v6143_v38 }
0x11e7   :  { %v6135_v48 = vand.u32 4294901760, %v6134_v34  ;;  %v5992_v31 = vand.u32 4294901760, %v5940_v36  ;;  %5907 = vadd.xlane.f32.xlu1 %v5906_v33  ;;  %5898 = vadd.xlane.f32.xlu0 %v5897_v53  ;;  %v13306_v62 = vpack.c.bf16 %v6141_v59, %v6134_v34 }
0x11e8   :  { %v13308_v42 = vpop.eup %11885  ;;  %v6150_v26 = vsub.f32 %v6148_v37, %v6149_v28  ;;  %v13310_v54 = vpack.c.bf16 %v5989_v40, %v5986_v8  ;;  %v6155_v63 = vsub.f32 %v5938_v4, %v5989_v40  ;;  %11256 = vmatprep.subr.bf16.mxu0 %v13300_v7 }
0x11e9   :  { %v13313_v6 = vpop.eup %11887  ;;  %v6136_v51 = vsub.f32 %v6134_v34, %v6135_v48  ;;  %v6162_v43 = vsub.f32 %v5940_v36, %v5992_v31  ;;  %11258 = vmatpush3.bf16.msra.mxu0 %v13300_v7  ;;  %v5942_v47 = vpop.permute.xlu1 %5941  ;;  %v5912_v55 = vsel %vm1584_vm3, %v13308_v42, 0.0  ;;  %v13318_v49 = vpack.c.bf16 %v6142_v15, %v6135_v48 }
0x11ea   :  { %v6156_v19 = vand.u32 4294901760, %v6155_v63  ;;  %v5995_v46 = vand.u32 4294901760, %v5942_v47  ;;  %11260 = vmatprep.subr.bf16.mxu0 %v13310_v54  ;;  %v5903_v27 = vsel %vm1584_vm3, %v13313_v6, 0.0  ;;  %v13323_v39 = vpack.c.bf16 %v6155_v63, %v6148_v37 }
0x11eb   :  { %v6163_v9 = vand.u32 4294901760, %v6162_v43  ;;  %5913 = vadd.xlane.f32.xlu1 %v5912_v55  ;;  %5904 = vadd.xlane.f32.xlu0 %v5903_v27  ;;  %v6137_v41 = vand.u32 4294901760, %v6136_v51  ;;  %v6151_v2 = vand.u32 4294901760, %v6150_v26 }
0x11ec   :  { %v6157_v50 = vsub.f32 %v6155_v63, %v6156_v19  ;;  %v13325_v20 = vpack.c.bf16 %v5995_v46, %v5992_v31  ;;  %v6169_v57 = vsub.f32 %v5942_v47, %v5995_v46  ;;  %v13327_v58 = vpack.c.bf16 %v6156_v19, %v6149_v28 }
0x11ed   :  { %v13329_v16 = vpop.eup %11889  ;;  %v6164_v17 = vsub.f32 %v6162_v43, %v6163_v9  ;;  %11262 = vmatpush3.bf16.msra.mxu0 %v13310_v54  ;;  %v13332_v44 = vpack.c.bf16 %v6144_v29, %v6137_v41 }
0x11ee   :  { %v6170_v30 = vand.u32 4294901760, %v6169_v57  ;;  %11264 = vmatprep.subr.bf16.mxu0 %v13325_v20  ;;  %v5909_v21 = vsel %vm1584_vm3, %v13329_v16, 0.0  ;;  %v6158_v24 = vand.u32 4294901760, %v6157_v50  ;;  %v13337_v23 = vpack.c.bf16 %v6169_v57, %v6162_v43 }
0x11ef   :  { %5910 = vadd.xlane.f32.xlu0 %v5909_v21  ;;  %v6165_v59 = vand.u32 4294901760, %v6164_v17 }
0x11f0   :  { %v6171_v3 = vsub.f32 %v6169_v57, %v6170_v30  ;;  %v13339_v10 = vpack.c.bf16 %v6158_v24, %v6151_v2  ;;  %v13341_v35 = vpack.c.bf16 %v6170_v30, %v6163_v9 }
0x11f1   :  { %11266 = vmatpush3.bf16.msra.mxu0 %v13325_v20 }
0x11f2   :  { %v6172_v18 = vand.u32 4294901760, %v6171_v3 }
0x11f4   :  { %v13344_v32 = vpack.c.bf16 %v6172_v18, %v6165_v59 }
0x11fc   :  { %5945 = vrot.lane.b32.xlu1 %v12999_v11, %s12009_s18 }
0x1205   :  { %5943 = vrot.lane.b32.xlu0 %v12993_v13, %s12009_s18 }
0x126b   :  { %v5896_v8 = vpop.xlane.xlu1 %5895 }
0x126c   :  { %11891 = vrcp.f32 %v5896_v8  ;;  %v5893_v14 = vpop.xlane.xlu0 %5892 }
0x126d   :  { %11893 = vrcp.f32 %v5893_v14 }
0x1270   :  { %v5902_v45 = vpop.xlane.xlu1 %5901 }
0x1271   :  { %11895 = vrcp.f32 %v5902_v45 }
0x1274   :  { %v5908_v15 = vpop.xlane.xlu1 %5907  ;;  %v5899_v25 = vpop.xlane.xlu0 %5898 }
0x1275   :  { %11897 = vrcp.f32 %v5908_v15 }
0x1276   :  { %v11892_v37 = vpop.eup %11891  ;;  %11899 = vrcp.f32 %v5899_v25 }
0x1277   :  { %v11894_v34 = vpop.eup %11893  ;;  %v5918_v4 = vmul.f32 %v11892_v37, %v13284_v5 }
0x1278   :  { %v5916_v33 = vmul.f32 %v11894_v34, %v13286_v12  ;;  %v5914_v11 = vpop.xlane.xlu1 %5913  ;;  %v5905_v28 = vpop.xlane.xlu0 %5904 }
0x1279   :  { %11901 = vrcp.f32 %v5914_v11  ;;  %v5959_v13 = vsel %vm1584_vm3, %v5918_v4, 0 }
0x127a   :  { %11903 = vrcp.f32 %v5905_v28  ;;  %v5956_v40 = vsel %vm1584_vm3, %v5916_v33, 0  ;;  %v13354_v36 = vand.u32 4294901760, %v5959_v13 }
0x127b   :  { %v11896_v53 = vpop.eup %11895  ;;  %v13356_v38 = vand.u32 4294901760, %v5956_v40 }
0x127c   :  { %v5922_v48 = vmul.f32 %v11896_v53, %v13292_v0  ;;  %v5946_v31 = vpop.permute.xlu1 %5945  ;;  %v5911_v26 = vpop.xlane.xlu0 %5910  ;;  %v13360_v5 = vsub.f32 %v5959_v13, %v13354_v36 }
0x127d   :  { %11905 = vrcp.f32 %v5911_v26  ;;  %v13363_v12 = vsub.f32 %v5956_v40, %v13356_v38  ;;  %v6001_v63 = vand.u32 4294901760, %v5946_v31 }
0x127e   :  { %v5965_v51 = vsel %vm1584_vm3, %v5922_v48, 0  ;;  %v6064_v55 = vand.u32 4294901760, %v13360_v5 }
0x127f   :  { %v11898_v43 = vpop.eup %11897  ;;  %v6054_v47 = vand.u32 4294901760, %v13363_v12  ;;  %v13368_v19 = vand.u32 4294901760, %v5965_v51  ;;  %v13375_v50 = vsub.f32 %v5946_v31, %v6001_v63 }
0x1280   :  { %v11900_v0 = vpop.eup %11899  ;;  %v5926_v46 = vmul.f32 %v11898_v43, %v13296_v1  ;;  %v5944_v27 = vpop.permute.xlu0 %5943 }
0x1281   :  { %v5920_v9 = vmul.f32 %v11900_v0, %v13298_v60  ;;  %v5998_v41 = vand.u32 4294901760, %v5944_v27  ;;  %v6055_v29 = vsub.f32 %v13363_v12, %v6054_v47  ;;  %v13378_v57 = vsub.f32 %v5965_v51, %v13368_v19 }
0x1282   :  { %v5971_v17 = vsel %vm1584_vm3, %v5926_v46, 0  ;;  %v6065_v60 = vsub.f32 %v13360_v5, %v6064_v55  ;;  %v6184_v25 = vand.u32 4294901760, %v13375_v50 }
0x1283   :  { %v11902_v2 = vpop.eup %11901  ;;  %v13381_v30 = vpack.c.bf16 %v6001_v63, %v5998_v41  ;;  %v13383_v21 = vsub.f32 %v5944_v27, %v5998_v41  ;;  %v6056_v1 = vand.u32 4294901760, %v6055_v29  ;;  %v5962_v59 = vsel %vm1584_vm3, %v5920_v9, 0 }
0x1284   :  { %v11904_v24 = vpop.eup %11903  ;;  %v5930_v3 = vmul.f32 %v11902_v2, %v13308_v42  ;;  %v13390_v18 = vand.u32 4294901760, %v5971_v17  ;;  %v13395_v45 = vand.u32 4294901760, %v5962_v59  ;;  %v6084_v15 = vand.u32 4294901760, %v13378_v57 }
0x1285   :  { %v5924_v8 = vmul.f32 %v11904_v24, %v13313_v6  ;;  %v6177_v14 = vand.u32 4294901760, %v13383_v21  ;;  %11268 = vmatprep.subr.bf16.mxu0 %v13381_v30  ;;  %10281 = vmatprep.mubr.f32.mxu0 %v6056_v1  ;;  %v6066_v6 = vand.u32 4294901760, %v6065_v60  ;;  %v6185_v51 = vsub.f32 %v13375_v50, %v6184_v25 }
0x1286   :  { %11270 = vmatpush3.bf16.msra.mxu0 %v13381_v30  ;;  %v13401_v42 = vsub.f32 %v5971_v17, %v13390_v18  ;;  %v5977_v37 = vsel %vm1584_vm3, %v5930_v3, 0  ;;  %v13406_v4 = vsub.f32 %v5962_v59, %v13395_v45  ;;  %v6085_v48 = vsub.f32 %v13378_v57, %v6084_v15 }
0x1287   :  { %v11906_v34 = vpop.eup %11905  ;;  %11272 = vmatprep.subr.bf16.mxu0 %v13332_v44  ;;  %v5968_v33 = vsel %vm1584_vm3, %v5924_v8, 0  ;;  %v13409_v11 = vand.u32 4294901760, %v5977_v37  ;;  %v6178_v40 = vsub.f32 %v13383_v21, %v6177_v14  ;;  %v6186_v1 = vand.u32 4294901760, %v6185_v51 }
0x1288   :  { %v5928_v28 = vmul.f32 %v11906_v34, %v13329_v16  ;;  %v13412_v13 = vand.u32 4294901760, %v5968_v33  ;;  %v6074_v53 = vand.u32 4294901760, %v13406_v4  ;;  %v6104_v16 = vand.u32 4294901760, %v13401_v42 }
0x1289   :  { %10282 = vmatmul.mubr.f32.vlgmr.msra.gmra.mrb[24].mxu0 %v6066_v6  ;;  %v13428_v63 = vsub.f32 %v5977_v37, %v13409_v11  ;;  %v6179_v27 = vand.u32 4294901760, %v6178_v40  ;;  %v6086_v41 = vand.u32 4294901760, %v6085_v48 }
0x128a   :  { %11274 = vmatpush3.bf16.msra.mxu0 %v13332_v44  ;;  %v13423_v31 = vsub.f32 %v5968_v33, %v13412_v13  ;;  %v5974_v26 = vsel %vm1584_vm3, %v5928_v28, 0  ;;  %v6075_v44 = vsub.f32 %v13406_v4, %v6074_v53  ;;  %v6105_v17 = vsub.f32 %v13401_v42, %v6104_v16 }
0x128b   :  { %11276 = vmatprep.subr.bf16.mxu0 %v13339_v10  ;;  %v13437_v43 = vand.u32 4294901760, %v5974_v26  ;;  %v6124_v2 = vand.u32 4294901760, %v13428_v63  ;;  %v11283_v3 = vpack.c.bf16 %v6186_v1, %v6179_v27 }
0x128c   :  { %v6094_v0 = vand.u32 4294901760, %v13423_v31  ;;  %v6076_v46 = vand.u32 4294901760, %v6075_v44  ;;  %v6106_v59 = vand.u32 4294901760, %v6105_v17 }
0x128d   :  { %v13441_v9 = vsub.f32 %v5974_v26, %v13437_v43  ;;  %v6125_v8 = vsub.f32 %v13428_v63, %v6124_v2 }
0x128e   :  { %11278 = vmatpush3.bf16.msra.mxu0 %v13339_v10  ;;  %v6095_v29 = vsub.f32 %v13423_v31, %v6094_v0  ;;  %10284 = vmatprep.mubr.f32.mxu0 %v6076_v46 }
0x128f   :  { %11280 = vmatprep.subr.bf16.mxu0 %v13344_v32  ;;  %v6114_v60 = vand.u32 4294901760, %v13441_v9  ;;  %10285 = vmatmul.mubr.f32.gmra.mrb[26].mxu0 %v6086_v41  ;;  %v6126_v34 = vand.u32 4294901760, %v6125_v8 }
0x1290   :  { %v6096_v24 = vand.u32 4294901760, %v6095_v29 }
0x1291   :  { %v6115_v10 = vsub.f32 %v13441_v9, %v6114_v60 }
0x1292   :  { %10287 = vmatprep.mubr.f32.mxu0 %v6096_v24  ;;  %11282 = vmatpush3.bf16.msra.mxu0 %v13344_v32  ;;  %v11299_v32 = vpack.c.bf16 %v13375_v50, %v13383_v21 }
0x1293   :  { %11284 = vmatprep.subr.bf16.mxu0 %v11283_v3  ;;  %v6116_v37 = vand.u32 4294901760, %v6115_v10  ;;  %10288 = vmatmul.mubr.f32.gmra.mrb[28].mxu0 %v6106_v59 }
0x1295   :  { %10290 = vmatprep.mubr.f32.mxu0 %v6116_v37 }
0x1296   :  { %11286 = vmatpush3.bf16.msra.mxu0 %v11283_v3 }
0x1297   :  { %11288 = vmatprep.subr.bf16.mxu0 %v13306_v62  ;;  %10291 = vmatmul.mubr.f32.gmra.mrb[30].mxu0 %v6126_v34 }
0x1298   :  { %10309 = vmatprep.mubr.f32.mxu0 %v13356_v38 }
0x129b   :  { %10310 = vmatmul.mubr.f32.vlgmr.msra.gmra.mrb[24].mxu0 %v13354_v36 }
0x129c   :  { %11290 = vmatpush3.bf16.msra.mxu0 %v13306_v62  ;;  %10312 = vmatprep.mubr.f32.mxu0 %v13395_v45  ;;  %v11331_v62 = vpack.c.bf16 %v6184_v25, %v6177_v14 }
0x129d   :  { %11292 = vmatprep.subr.bf16.mxu0 %v13323_v39 }
0x129f   :  { %10313 = vmatmul.mubr.f32.gmra.mrb[26].mxu0 %v13368_v19 }
0x12a0   :  { %11294 = vmatpush3.bf16.msra.mxu0 %v13323_v39  ;;  %10315 = vmatprep.mubr.f32.mxu0 %v13412_v13  ;;  %v8652_v39 = vld [vmem:[%s13742_s4 + $0x28] sm:$0xff] }
0x12a1   :  { %11296 = vmatprep.subr.bf16.mxu0 %v13337_v23 }
0x12a3   :  { %10316 = vmatmul.mubr.f32.gmra.mrb[28].mxu0 %v13390_v18 }
0x12a4   :  { %11298 = vmatpush3.bf16.msra.mxu0 %v13337_v23  ;;  %10318 = vmatprep.mubr.f32.mxu0 %v13437_v43  ;;  %v6870_v23 = vand.u32 4294901760, %v8652_v39 }
0x12a5   :  { %11300 = vmatprep.subr.bf16.mxu0 %v11299_v32 }
0x12a6   :  { %v6964_v21 = vsub.f32 %v8652_v39, %v6870_v23 }
0x12a7   :  { %10319 = vmatmul.mubr.f32.gmra.mrb[30].mxu0 %v13409_v11 }
0x12a8   :  { %11302 = vmatpush3.bf16.msra.mxu0 %v11299_v32  ;;  %10337 = vmatprep.mubr.f32.mxu0 %v13363_v12 }
0x12a9   :  { %11304 = vmatprep.subr.bf16.mxu0 %v13300_v7 }
0x12ab   :  { %10338 = vmatmul.mubr.f32.vlgmr.msra.gmra.mrb[24].mxu0 %v13360_v5 }
0x12ac   :  { %11306 = vmatpush3.bf16.msra.mxu0 %v13300_v7  ;;  %10340 = vmatprep.mubr.f32.mxu0 %v13406_v4 }
0x12ad   :  { %11308 = vmatprep.subr.bf16.mxu0 %v13310_v54 }
0x12af   :  { %10341 = vmatmul.mubr.f32.gmra.mrb[26].mxu0 %v13378_v57 }
0x12b0   :  { %11310 = vmatpush3.bf16.msra.mxu0 %v13310_v54  ;;  %10343 = vmatprep.mubr.f32.mxu0 %v13423_v31 }
0x12b1   :  { %11312 = vmatprep.subr.bf16.mxu0 %v13325_v20 }
0x12b3   :  { %10344 = vmatmul.mubr.f32.gmra.mrb[28].mxu0 %v13401_v42 }
0x12b4   :  { %11314 = vmatpush3.bf16.msra.mxu0 %v13325_v20  ;;  %10346 = vmatprep.mubr.f32.mxu0 %v13441_v9 }
0x12b5   :  { %11316 = vmatprep.subr.bf16.mxu0 %v13381_v30 }
0x12b7   :  { %10347 = vmatmul.mubr.f32.gmra.mrb[30].mxu0 %v13428_v63 }
0x12b8   :  { %11318 = vmatpush3.bf16.msra.mxu0 %v13381_v30  ;;  %10365 = vmatprep.mubr.f32.mxu0 %v6054_v47 }
0x12b9   :  { %11320 = vmatprep.subr.bf16.mxu0 %v13318_v49 }
0x12bb   :  { %10366 = vmatmul.mubr.f32.vlgmr.msra.gmra.mrb[24].mxu0 %v6064_v55 }
0x12bc   :  { %11322 = vmatpush3.bf16.msra.mxu0 %v13318_v49  ;;  %10368 = vmatprep.mubr.f32.mxu0 %v6074_v53  ;;  %v8651_v49 = vld [vmem:[%s13742_s4 + $0x20] sm:$0xff] }
0x12bd   :  { %11324 = vmatprep.subr.bf16.mxu0 %v13327_v58 }
0x12bf   :  { %10369 = vmatmul.mubr.f32.gmra.mrb[26].mxu0 %v6084_v15 }
0x12c0   :  { %11326 = vmatpush3.bf16.msra.mxu0 %v13327_v58  ;;  %10371 = vmatprep.mubr.f32.mxu0 %v6094_v0  ;;  %v6867_v58 = vand.u32 4294901760, %v8651_v49 }
0x12c1   :  { %11328 = vmatprep.subr.bf16.mxu0 %v13341_v35 }
0x12c2   :  { %v13553_v47 = vpack.c.bf16 %v6870_v23, %v6867_v58 }
0x12c3   :  { %10372 = vmatmul.mubr.f32.gmra.mrb[28].mxu0 %v6104_v16 }
0x12c4   :  { %11330 = vmatpush3.bf16.msra.mxu0 %v13341_v35  ;;  %10374 = vmatprep.mubr.f32.mxu0 %v6114_v60  ;;  %v8654_v35 = vld [vmem:[%s13742_s4 + $0x38] sm:$0xff] }
0x12c5   :  { %11332 = vmatprep.subr.bf16.mxu0 %v11331_v62  ;;  %v6876_v5 = vand.u32 4294901760, %v8654_v35 }
0x12c7   :  { %10375 = vmatmul.mubr.f32.gmra.mrb[30].mxu0 %v6124_v2  ;;  %v6978_v6 = vsub.f32 %v8654_v35, %v6876_v5 }
0x12c8   :  { %11334 = vmatpush3.bf16.msra.mxu0 %v11331_v62  ;;  %10393 = vmatprep.mubr.f32.mxu0 %v13356_v38 }
0x12c9   :  { %11336 = vmatprep.subr.bf16.mxu0 %v13300_v7  ;;  %v6979_v28 = vand.u32 4294901760, %v6978_v6 }
0x12cb   :  { %10394 = vmatmul.mubr.f32.vlgmr.msra.gmra.mrb[24].mxu0 %v13354_v36  ;;  %v6980_v53 = vsub.f32 %v6978_v6, %v6979_v28 }
0x12cc   :  { %11338 = vmatpush3.bf16.msra.mxu0 %v13300_v7  ;;  %10396 = vmatprep.mubr.f32.mxu0 %v13395_v45 }
0x12cd   :  { %11340 = vmatprep.subr.bf16.mxu0 %v13310_v54  ;;  %v6981_v31 = vand.u32 4294901760, %v6980_v53 }
0x12cf   :  { %10397 = vmatmul.mubr.f32.gmra.mrb[26].mxu0 %v13368_v19 }
0x12d0   :  { %11342 = vmatpush3.bf16.msra.mxu0 %v13310_v54  ;;  %10399 = vmatprep.mubr.f32.mxu0 %v13412_v13 }
0x12d1   :  { %11344 = vmatprep.subr.bf16.mxu0 %v13325_v20 }
0x12d3   :  { %10400 = vmatmul.mubr.f32.gmra.mrb[28].mxu0 %v13390_v18 }
0x12d4   :  { %11346 = vmatpush3.bf16.msra.mxu0 %v13325_v20  ;;  %10402 = vmatprep.mubr.f32.mxu0 %v13437_v43  ;;  %v8653_v20 = vld [vmem:[%s13742_s4 + $0x30] sm:$0xff] }
0x12d5   :  { %11348 = vmatprep.subr.bf16.mxu0 %v13381_v30 }
0x12d7   :  { %10403 = vmatmul.mubr.f32.gmra.mrb[30].mxu0 %v13409_v11 }
0x12d8   :  { %11350 = vmatpush3.bf16.msra.mxu0 %v13381_v30  ;;  %10421 = vmatprep.mubr.f32.mxu0 %v13356_v38  ;;  %v6957_v30 = vsub.f32 %v8651_v49, %v6867_v58 }
0x12d9   :  { %11352 = vmatprep.subr.bf16.mxu0 %v13553_v47 }
0x12da   :  { %v6958_v14 = vand.u32 4294901760, %v6957_v30  ;;  %v11367_v26 = vpack.c.bf16 %v6964_v21, %v6957_v30 }
0x12db   :  { %10422 = vmatmul.mubr.f32.vlgmr.msra.gmra.mrb[24].mxu0 %v13354_v36  ;;  %v6873_v36 = vand.u32 4294901760, %v8653_v20 }
0x12dc   :  { %10424 = vmatprep.mubr.f32.mxu0 %v13395_v45  ;;  %11354 = vmatpush3.bf16.msra.mxu0 %v13553_v47  ;;  %v6965_v45 = vand.u32 4294901760, %v6964_v21  ;;  %v6959_v15 = vsub.f32 %v6957_v30, %v6958_v14 }
0x12dd   :  { %v13555_v55 = vpack.c.bf16 %v6876_v5, %v6873_v36  ;;  %v6971_v42 = vsub.f32 %v8653_v20, %v6873_v36 }
0x12de   :  { %v6966_v25 = vsub.f32 %v6964_v21, %v6965_v45  ;;  %v6960_v4 = vand.u32 4294901760, %v6959_v15  ;;  %v11383_v51 = vpack.c.bf16 %v6965_v45, %v6958_v14  ;;  %v7436_v21 = vld [vmem:[#allocation7 + $0x28] sm:$0xff]  ;;  %v7438_v15 = vld [vmem:[#allocation7 + $0x38] sm:$0xff] }
0x12df   :  { %10425 = vmatmul.mubr.f32.gmra.mrb[26].mxu0 %v13368_v19  ;;  %11356 = vmatprep.subr.bf16.mxu0 %v13555_v55  ;;  %v11371_v63 = vpack.c.bf16 %v6978_v6, %v6971_v42  ;;  %v7453_v45 = vand.u32 4294901760, %v7436_v21 }
0x12e0   :  { %10427 = vmatprep.mubr.f32.mxu0 %v13412_v13  ;;  %11358 = vmatpush3.bf16.msra.mxu0 %v13555_v55  ;;  %v6967_v33 = vand.u32 4294901760, %v6966_v25 }
0x12e2   :  { %v11359_v13 = vpack.c.bf16 %v6967_v33, %v6960_v4 }
0x12e3   :  { %10428 = vmatmul.mubr.f32.gmra.mrb[28].mxu0 %v13390_v18 }
0x12e4   :  { %10430 = vmatprep.mubr.f32.mxu0 %v13437_v43  ;;  %11360 = vmatprep.subr.bf16.mxu0 %v11359_v13 }
0x12e7   :  { %10431 = vmatmul.mubr.f32.gmra.mrb[30].mxu0 %v13409_v11  ;;  %v6972_v11 = vand.u32 4294901760, %v6971_v42 }
0x12e9   :  { %v6973_v40 = vsub.f32 %v6971_v42, %v6972_v11  ;;  %v11387_v44 = vpack.c.bf16 %v6979_v28, %v6972_v11  ;;  %v7459_v42 = vand.u32 4294901760, %v7438_v15  ;;  %v7547_v11 = vsub.f32 %v7436_v21, %v7453_v45  ;;  %v8656_v21 = vld [vmem:[%s13744_s6 + $0x48] sm:$0xff] }
0x12eb   :  { %v6974_v48 = vand.u32 4294901760, %v6973_v40 }
0x12ed   :  { %v11363_v16 = vpack.c.bf16 %v6981_v31, %v6974_v48  ;;  %v7561_v31 = vsub.f32 %v7438_v15, %v7459_v42  ;;  %v8657_v15 = vld [vmem:[%s13744_s6 + $0x50] sm:$0xff] }
0x13ae   :  { %v10423_v7 = vpop.f32.mrb[24].mxu0 }
0x13af   :  { %6819 = vrot.lane.b32.xlu0 %v10423_v7, %s12003_s16  ;;  %v6771_v54 = vpop.f32.mrb[25].mxu0  ;;  %v13585_v7 = vld [vmem:[%s13745_s7 + $0x8] sm:$0xff] }
0x13b0   :  { %6817 = vst.msk [vmem:[#allocation3] sm:$0xff] %vm713_vm2, %v6771_v54  ;;  %v6859_v54 = vrot.slane %v13585_v7, %v12121_v56 }
0x13b2   :  { %v10426_v38 = vpop.f32.mrb[26].mxu0 }
0x13b3   :  { %6829 = vrot.lane.b32.xlu1 %v10426_v38, %s12010_s28  ;;  %v6783_v12 = vpop.f32.mrb[27].mxu0 }
0x13b6   :  { %v10429_v19 = vpop.f32.mrb[28].mxu0 }
0x13b7   :  { %6824 = vrot.lane.b32.xlu1 %v6783_v12, %s12011_s5  ;;  %6835 = vrot.lane.b32.xlu0 %v10429_v19, %s12003_s16  ;;  %v6795_v50 = vpop.f32.mrb[29].mxu0 }
0x13b8   :  { %6833 = vst.msk [vmem:[#allocation3 + $0x8] sm:$0xff] %vm713_vm2, %v6795_v50 }
0x13ba   :  { %v10432_v57 = vpop.f32.mrb[30].mxu0 }
0x13bb   :  { %6845 = vrot.lane.b32.xlu1 %v10432_v57, %s12010_s28  ;;  %v6807_v18 = vpop.f32.mrb[31].mxu0 }
0x13bc   :  { %6840 = vrot.lane.b32.xlu0 %v6807_v18, %s12011_s5  ;;  %v7437_v18 = vld [vmem:[#allocation7 + $0x30] sm:$0xff] }
0x13bd   :  { %v7456_v25 = vand.u32 4294901760, %v7437_v18 }
0x13bf   :  { %v13597_v4 = vpack.c.bf16 %v7459_v42, %v7456_v25  ;;  %v7554_v48 = vsub.f32 %v7437_v18, %v7456_v25  ;;  %v8658_v25 = vld [vmem:[%s13744_s6 + $0x58] sm:$0xff]  ;;  %v8013_v42 = vand.u32 4294901760, %v8657_v15 }
0x1421   :  { %v6820_v43 = vpop.permute.xlu0 %6819 }
0x1422   :  { %6822 = vst.msk [vmem:[#allocation3] sm:$0xff] %vm2564_vm4, %v6820_v43 }
0x1425   :  { %v6830_v0 = vpop.permute.xlu1 %6829 }
0x1429   :  { %v6825_v46 = vpop.permute.xlu1 %6824  ;;  %v6836_v27 = vpop.permute.xlu0 %6835 }
0x142a   :  { %6827 = vst.msk [vmem:[#allocation3] sm:$0xff] %vm2570_vm5, %v6825_v46 }
0x142b   :  { %6838 = vst.msk [vmem:[#allocation3 + $0x8] sm:$0xff] %vm2564_vm4, %v6836_v27 }
0x142c   :  { %6832 = vst.msk [vmem:[#allocation3] sm:$0xff] %vm2576_vm6, %v6830_v0 }
0x142d   :  { %v6846_v41 = vpop.permute.xlu1 %6845 }
0x142e   :  { %v6841_v9 = vpop.permute.xlu0 %6840 }
0x142f   :  { %6843 = vst.msk [vmem:[#allocation3 + $0x8] sm:$0xff] %vm2570_vm5, %v6841_v9 }
0x1430   :  { %6848 = vst.msk [vmem:[#allocation3 + $0x8] sm:$0xff] %vm2576_vm6, %v6846_v41 }
0x1433   :  { %v6849_v29 = vld [vmem:[#allocation3] sm:$0xff] }
0x1434   :  { %v6861_v17 = vsel %vm61_vm0, %v6849_v29, 0  ;;  %v11419_v29 = vpack.c.bf16 %v7561_v31, %v7554_v48 }
0x1435   :  { %v6935_v2 = vand.u32 4294901760, %v6861_v17 }
0x1437   :  { %v6936_v1 = vsub.f32 %v6861_v17, %v6935_v2  ;;  %v6850_v60 = vld [vmem:[#allocation3 + $0x8] sm:$0xff] }
0x1438   :  { %v6864_v3 = vsel %vm61_vm0, %v6850_v60, 0 }
0x1439   :  { %v6937_v24 = vand.u32 4294901760, %v6936_v1  ;;  %v6945_v10 = vand.u32 4294901760, %v6864_v3 }
0x143b   :  { %v6938_v59 = vsub.f32 %v6936_v1, %v6937_v24  ;;  %v6946_v8 = vsub.f32 %v6864_v3, %v6945_v10 }
0x143d   :  { %v6939_v37 = vand.u32 4294901760, %v6938_v59  ;;  %v6947_v34 = vand.u32 4294901760, %v6946_v8 }
0x143f   :  { %10441 = vmatprep.mubr.f32.mxu0 %v6939_v37  ;;  %v6948_v32 = vsub.f32 %v6946_v8, %v6947_v34 }
0x1441   :  { %v6949_v62 = vand.u32 4294901760, %v6948_v32 }
0x1443   :  { %10442 = vmatmul.mubr.f32.vlgmr.msra.gmra.mrb[32].mxu0 %v6949_v62  ;;  %v13768_v62 = vsub.s32 5, %v12112_v52 }
0x1444   :  { %11362 = vmatpush3.bf16.msra.mxu0 %v11359_v13  ;;  %10452 = vmatprep.mubr.f32.mxu0 %v6935_v2  ;;  %v7548_v13 = vand.u32 4294901760, %v7547_v11 }
0x1445   :  { %11364 = vmatprep.subr.bf16.mxu0 %v11363_v16 }
0x1446   :  { %v7549_v53 = vsub.f32 %v7547_v11, %v7548_v13 }
0x1448   :  { %11366 = vmatpush3.bf16.msra.mxu0 %v11363_v16 }
0x1449   :  { %11368 = vmatprep.subr.bf16.mxu0 %v11367_v26 }
0x144b   :  { %10453 = vmatmul.mubr.f32.vlgmr.msra.gmra.mrb[32].mxu0 %v6945_v10 }
0x144c   :  { %11370 = vmatpush3.bf16.msra.mxu0 %v11367_v26  ;;  %10463 = vmatprep.mubr.f32.mxu0 %v6936_v1  ;;  %v7550_v26 = vand.u32 4294901760, %v7549_v53 }
0x144d   :  { %11372 = vmatprep.subr.bf16.mxu0 %v11371_v63 }
0x1450   :  { %11374 = vmatpush3.bf16.msra.mxu0 %v11371_v63  ;;  %v7555_v63 = vand.u32 4294901760, %v7554_v48 }
0x1451   :  { %11376 = vmatprep.subr.bf16.mxu0 %v13553_v47 }
0x1452   :  { %v7556_v43 = vsub.f32 %v7554_v48, %v7555_v63 }
0x1453   :  { %10464 = vmatmul.mubr.f32.vlgmr.msra.gmra.mrb[32].mxu0 %v6946_v8  ;;  %v13767_v8 = vsub.s32 4, %v12112_v52 }
0x1454   :  { %11378 = vmatpush3.bf16.msra.mxu0 %v13553_v47  ;;  %10474 = vmatprep.mubr.f32.mxu0 %v6937_v24  ;;  %v7557_v46 = vand.u32 4294901760, %v7556_v43 }
0x1455   :  { %11380 = vmatprep.subr.bf16.mxu0 %v13555_v55  ;;  %v7425_v37 = vrot.slane %v13585_v7, %v13767_v8 }
0x1458   :  { %11382 = vmatpush3.bf16.msra.mxu0 %v13555_v55 }
0x1459   :  { %11384 = vmatprep.subr.bf16.mxu0 %v11383_v51 }
0x145b   :  { %10475 = vmatmul.mubr.f32.vlgmr.msra.gmra.mrb[32].mxu0 %v6947_v34 }
0x145c   :  { %11386 = vmatpush3.bf16.msra.mxu0 %v11383_v51  ;;  %10485 = vmatprep.mubr.f32.mxu0 %v6935_v2  ;;  %v7562_v51 = vand.u32 4294901760, %v7561_v31 }
0x145d   :  { %11388 = vmatprep.subr.bf16.mxu0 %v11387_v44 }
0x145e   :  { %v7563_v0 = vsub.f32 %v7561_v31, %v7562_v51  ;;  %v8661_v31 = vld [vmem:[%s13744_s6 + $0x70] sm:$0xff] }
0x1460   :  { %11390 = vmatpush3.bf16.msra.mxu0 %v11387_v44  ;;  %v7564_v27 = vand.u32 4294901760, %v7563_v0 }
0x1461   :  { %11392 = vmatprep.subr.bf16.mxu0 %v13553_v47 }
0x1462   :  { %v11411_v9 = vpack.c.bf16 %v7564_v27, %v7557_v46  ;;  %v8115_v27 = vsub.f32 %v8657_v15, %v8013_v42  ;;  %v13769_v15 = vsub.s32 2, %v12112_v52 }
0x1463   :  { %10486 = vmatmul.mubr.f32.vlgmr.msra.gmra.mrb[32].mxu0 %v6945_v10 }
0x1464   :  { %11394 = vmatpush3.bf16.msra.mxu0 %v13553_v47  ;;  %10496 = vmatprep.mubr.f32.mxu0 %v6935_v2  ;;  %v11435_v2 = vpack.c.bf16 %v7562_v51, %v7555_v63 }
0x1465   :  { %11396 = vmatprep.subr.bf16.mxu0 %v13555_v55 }
0x1468   :  { %11398 = vmatpush3.bf16.msra.mxu0 %v13555_v55 }
0x146b   :  { %10497 = vmatmul.mubr.f32.vlgmr.msra.gmra.mrb[32].mxu0 %v6945_v10 }
0x153e   :  { %v10498_v49 = vpop.f32.mrb[32].mxu0 }
0x153f   :  { %v11577_v39 = vadd.f32 %v10498_v49, %v6859_v54  ;;  %v7384_v20 = vpop.f32.mrb[33].mxu0 }
0x1540   :  { %v11578_v58 = vadd.f32 %v7384_v20, %v6859_v54  ;;  %v7431_v54 = vrot.slane %v13585_v7, %v13768_v62 }
0x1541   :  { %v7395_v23 = vadd.f32 %v11577_v39, %v12926_v22 }
0x1542   :  { %v7394_v35 = vadd.f32 %v11578_v58, %v12928_v61  ;;  %v7435_v61 = vld [vmem:[#allocation7 + $0x20] sm:$0xff] }
0x1543   :  { %v7399_v36 = vsel %vm61_vm0, %v7395_v23, 0.0  ;;  %v7450_v14 = vand.u32 4294901760, %v7435_v61 }
0x1544   :  { %7400 = vadd.xlane.f32.xlu1 %v7399_v36  ;;  %v7396_v38 = vsel %vm61_vm0, %v7394_v35, 0.0 }
0x1545   :  { %7397 = vadd.xlane.f32.xlu0 %v7396_v38  ;;  %v13595_v6 = vpack.c.bf16 %v7453_v45, %v7450_v14  ;;  %v7540_v33 = vsub.f32 %v7435_v61, %v7450_v14  ;;  %v8655_v61 = vld [vmem:[%s13744_s6 + $0x40] sm:$0xff]  ;;  %v8010_v14 = vand.u32 4294901760, %v8656_v21 }
0x1546   :  { %v8007_v18 = vand.u32 4294901760, %v8655_v61 }
0x1547   :  { %11400 = vmatprep.subr.bf16.mxu0 %v13595_v6  ;;  %v7541_v28 = vand.u32 4294901760, %v7540_v33  ;;  %v11415_v41 = vpack.c.bf16 %v7547_v11, %v7540_v33  ;;  %v8660_v11 = vld [vmem:[%s13744_s6 + $0x68] sm:$0xff]  ;;  %v8108_v48 = vsub.f32 %v8656_v21, %v8010_v14 }
0x1548   :  { %11402 = vmatpush3.bf16.msra.mxu0 %v13595_v6  ;;  %v13631_v45 = vpack.c.bf16 %v8010_v14, %v8007_v18  ;;  %v8101_v53 = vsub.f32 %v8655_v61, %v8007_v18 }
0x1549   :  { %11404 = vmatprep.subr.bf16.mxu0 %v13597_v4  ;;  %v7542_v40 = vsub.f32 %v7540_v33, %v7541_v28  ;;  %v11431_v17 = vpack.c.bf16 %v7548_v13, %v7541_v28  ;;  %v8659_v33 = vld [vmem:[%s13744_s6 + $0x60] sm:$0xff]  ;;  %v8022_v13 = vand.u32 4294901760, %v8660_v11 }
0x154a   :  { %11448 = vmatprep.subr.bf16.mxu1 %v13631_v45  ;;  %v8019_v28 = vand.u32 4294901760, %v8659_v33  ;;  %v8102_v51 = vand.u32 4294901760, %v8101_v53 }
0x154b   :  { %v7543_v16 = vand.u32 4294901760, %v7542_v40  ;;  %11450 = vmatpush3.bf16.msra.mxu1 %v13631_v45 }
0x154c   :  { %11406 = vmatpush3.bf16.msra.mxu0 %v13597_v4  ;;  %v13651_v40 = vpack.c.bf16 %v8022_v13, %v8019_v28  ;;  %v8103_v0 = vsub.f32 %v8101_v53, %v8102_v51 }
0x154d   :  { %v11407_v44 = vpack.c.bf16 %v7550_v26, %v7543_v16  ;;  %v8662_v16 = vld [vmem:[%s13744_s6 + $0x78] sm:$0xff]  ;;  %v8025_v26 = vand.u32 4294901760, %v8661_v31  ;;  %s12012_s6 = smov [#allocation9]  }
0x154e   :  { %v8028_v63 = vand.u32 4294901760, %v8662_v16  ;;  %s8633_s14 = sshll.u32 %s12012_s6, 4  ;;  %s8634_s14 = int_to_ptr.vmem [resolvable:$true] %s8633_s14 }
0x154f   :  { %11408 = vmatprep.subr.bf16.mxu0 %v11407_v44  ;;  %s11973_s2 = scalar_lea.vmem %s8634_s14, 256  ;;  %p11978_p3 = scmp.lt.s32.totalorder %s8634_s14, %s8634_s14 }
0x1550   :  { %v13661_v43 = vpack.c.bf16 %v8028_v63, %v8025_v26  ;;  %p11974_p2 = scmp.ne.s32.totalorder %s8634_s14, %s11973_s2  ;;  %p11979_p4 = scmp.lt.s32.totalorder %s11973_s2, %s11973_s2 }
0x1552   :  { %p11980_p5 = por %p11979_p4, %p11978_p3 }
0x1554   :  { %p11981_p6 = pnand %p11980_p5, %p11974_p2 }
0x15d1   :  { %v7401_v5 = vpop.xlane.xlu1 %7400 }
0x15d2   :  { %v7403_v12 = vmul.f32 0.03125, %v7401_v5  ;;  %v7398_v47 = vpop.xlane.xlu0 %7397 }
0x15d3   :  { %v7402_v55 = vmul.f32 0.03125, %v7398_v47 }
0x15d4   :  { %v7405_v19 = vsub.f32 %v7395_v23, %v7403_v12 }
0x15d5   :  { %v7404_v56 = vsub.f32 %v7394_v35, %v7402_v55 }
0x15d6   :  { %v7407_v30 = vmul.f32 %v7405_v19, %v7405_v19 }
0x15d7   :  { %v7406_v50 = vmul.f32 %v7404_v56, %v7404_v56 }
0x15d8   :  { %v7411_v22 = vsel %vm61_vm0, %v7407_v30, 0.0 }
0x15d9   :  { %v7408_v57 = vsel %vm61_vm0, %v7406_v50, 0.0 }
0x15da   :  { %7409 = vadd.xlane.f32.xlu0 %v7408_v57 }
0x15de   :  { %7412 = vadd.xlane.f32.xlu0 %v7411_v22 }
0x1667   :  { %v7410_v1 = vpop.xlane.xlu0 %7409 }
0x1668   :  { %v7414_v60 = vmul.f32 0.03125, %v7410_v1 }
0x166a   :  { %v7416_v24 = vadd.f32 1e-12, %v7414_v60 }
0x166b   :  { %v7413_v3 = vpop.xlane.xlu0 %7412 }
0x166c   :  { %11907 = vrsqrt.f32 %v7416_v24  ;;  %v7415_v10 = vmul.f32 0.03125, %v7413_v3  ;;  %v8129_v24 = vsub.f32 %v8659_v33, %v8019_v28  ;;  %v8136_v3 = vsub.f32 %v8660_v11, %v8022_v13 }
0x166e   :  { %v7417_v59 = vadd.f32 1e-12, %v7415_v10  ;;  %v8130_v8 = vand.u32 4294901760, %v8129_v24 }
0x1670   :  { %11909 = vrsqrt.f32 %v7417_v59 }
0x1676   :  { %v11908_v34 = vpop.eup %11907 }
0x1677   :  { %v7420_v32 = vmul.f32 %v11908_v34, %v7404_v56 }
0x1679   :  { %v7426_v49 = vmul.f32 %v7425_v37, %v7420_v32  ;;  %v8131_v32 = vsub.f32 %v8129_v24, %v8130_v8 }
0x167a   :  { %v11910_v39 = vpop.eup %11909 }
0x167b   :  { %v7421_v20 = vmul.f32 %v11910_v39, %v7405_v19  ;;  %v13609_v58 = vadd.f32 %v7431_v54, %v7426_v49  ;;  %v8150_v49 = vsub.f32 %v8662_v16, %v8028_v63 }
0x167d   :  { %v7427_v23 = vmul.f32 %v7425_v37, %v7421_v20  ;;  %v7444_v35 = vsel %vm61_vm0, %v13609_v58, 0  ;;  %v8137_v37 = vand.u32 4294901760, %v8136_v3  ;;  %v8132_v20 = vand.u32 4294901760, %v8131_v32 }
0x167e   :  { %v7518_v36 = vand.u32 4294901760, %v7444_v35 }
0x167f   :  { %v13613_v38 = vadd.f32 %v7431_v54, %v7427_v23  ;;  %v8138_v62 = vsub.f32 %v8136_v3, %v8137_v37  ;;  %v8143_v54 = vsub.f32 %v8661_v31, %v8025_v26  ;;  %v13672_v18 = vpack.c.bf16 %v8137_v37, %v8130_v8 }
0x1680   :  { %v7519_v5 = vsub.f32 %v7444_v35, %v7518_v36 }
0x1681   :  { %v7447_v12 = vsel %vm61_vm0, %v13613_v38, 0  ;;  %v8139_v23 = vand.u32 4294901760, %v8138_v62  ;;  %v8144_v35 = vand.u32 4294901760, %v8143_v54 }
0x1682   :  { %v7520_v47 = vand.u32 4294901760, %v7519_v5  ;;  %v7528_v55 = vand.u32 4294901760, %v7447_v12 }
0x1684   :  { %v7521_v56 = vsub.f32 %v7519_v5, %v7520_v47  ;;  %v7529_v50 = vsub.f32 %v7447_v12, %v7528_v55  ;;  %v8145_v12 = vsub.f32 %v8143_v54, %v8144_v35 }
0x1686   :  { %v7522_v57 = vand.u32 4294901760, %v7521_v56  ;;  %v7530_v30 = vand.u32 4294901760, %v7529_v50 }
0x1688   :  { %10507 = vmatprep.mubr.f32.mxu0 %v7522_v57  ;;  %v7531_v19 = vsub.f32 %v7529_v50, %v7530_v30  ;;  %v11479_v57 = vpack.c.bf16 %v8108_v48, %v8101_v53 }
0x168a   :  { %v7532_v22 = vand.u32 4294901760, %v7531_v19  ;;  %v11487_v19 = vpack.c.bf16 %v8136_v3, %v8129_v24 }
0x168c   :  { %10508 = vmatmul.mubr.f32.vlgmr.msra.gmra.mrb[34].mxu0 %v7532_v22  ;;  %v11491_v22 = vpack.c.bf16 %v8150_v49, %v8143_v54 }
0x168d   :  { %11410 = vmatpush3.bf16.msra.mxu0 %v11407_v44  ;;  %10518 = vmatprep.mubr.f32.mxu0 %v7518_v36  ;;  %v8109_v44 = vand.u32 4294901760, %v8108_v48 }
0x168e   :  { %11412 = vmatprep.subr.bf16.mxu0 %v11411_v9 }
0x168f   :  { %v8110_v46 = vsub.f32 %v8108_v48, %v8109_v44  ;;  %v13668_v61 = vpack.c.bf16 %v8109_v44, %v8102_v51 }
0x1691   :  { %11414 = vmatpush3.bf16.msra.mxu0 %v11411_v9 }
0x1692   :  { %11416 = vmatprep.subr.bf16.mxu0 %v11415_v41 }
0x1694   :  { %10519 = vmatmul.mubr.f32.vlgmr.msra.gmra.mrb[34].mxu0 %v7528_v55 }
0x1695   :  { %11418 = vmatpush3.bf16.msra.mxu0 %v11415_v41  ;;  %10529 = vmatprep.mubr.f32.mxu0 %v7519_v5  ;;  %v8104_v41 = vand.u32 4294901760, %v8103_v0  ;;  %v11471_v5 = vpack.c.bf16 %v8139_v23, %v8132_v20 }
0x1696   :  { %11420 = vmatprep.subr.bf16.mxu0 %v11419_v29 }
0x1699   :  { %11422 = vmatpush3.bf16.msra.mxu0 %v11419_v29  ;;  %v8111_v29 = vand.u32 4294901760, %v8110_v46 }
0x169a   :  { %11424 = vmatprep.subr.bf16.mxu0 %v13595_v6 }
0x169b   :  { %v13665_v1 = vpack.c.bf16 %v8111_v29, %v8104_v41 }
0x169c   :  { %10530 = vmatmul.mubr.f32.vlgmr.msra.gmra.mrb[34].mxu0 %v7529_v50 }
0x169d   :  { %11426 = vmatpush3.bf16.msra.mxu0 %v13595_v6  ;;  %10540 = vmatprep.mubr.f32.mxu0 %v7520_v47 }
0x169e   :  { %11428 = vmatprep.subr.bf16.mxu0 %v13597_v4 }
0x16a1   :  { %11430 = vmatpush3.bf16.msra.mxu0 %v13597_v4 }
0x16a2   :  { %11432 = vmatprep.subr.bf16.mxu0 %v11431_v17 }
0x16a4   :  { %10541 = vmatmul.mubr.f32.vlgmr.msra.gmra.mrb[34].mxu0 %v7530_v30 }
0x16a5   :  { %11434 = vmatpush3.bf16.msra.mxu0 %v11431_v17  ;;  %10551 = vmatprep.mubr.f32.mxu0 %v7518_v36  ;;  %v8116_v17 = vand.u32 4294901760, %v8115_v27 }
0x16a6   :  { %11436 = vmatprep.subr.bf16.mxu0 %v11435_v2 }
0x16a7   :  { %v8117_v60 = vsub.f32 %v8115_v27, %v8116_v17 }
0x16a9   :  { %11438 = vmatpush3.bf16.msra.mxu0 %v11435_v2  ;;  %v8118_v59 = vand.u32 4294901760, %v8117_v60 }
0x16aa   :  { %11440 = vmatprep.subr.bf16.mxu0 %v13595_v6 }
0x16ac   :  { %10552 = vmatmul.mubr.f32.vlgmr.msra.gmra.mrb[34].mxu0 %v7528_v55 }
0x16ad   :  { %11442 = vmatpush3.bf16.msra.mxu0 %v13595_v6  ;;  %10562 = vmatprep.mubr.f32.mxu0 %v7518_v36  ;;  %v8016_v6 = vand.u32 4294901760, %v8658_v25  ;;  %v8151_v36 = vand.u32 4294901760, %v8150_v49 }
0x16ae   :  { %11444 = vmatprep.subr.bf16.mxu0 %v13597_v4 }
0x16af   :  { %v8122_v9 = vsub.f32 %v8658_v25, %v8016_v6  ;;  %v8152_v47 = vsub.f32 %v8150_v49, %v8151_v36  ;;  %v13674_v14 = vpack.c.bf16 %v8151_v36, %v8144_v35  ;;  %v7442_v25 = vrot.slane %v13585_v7, %v13769_v15 }
0x16b1   :  { %11446 = vmatpush3.bf16.msra.mxu0 %v13597_v4  ;;  %v13641_v4 = vpack.c.bf16 %v8016_v6, %v8013_v42  ;;  %v8123_v2 = vand.u32 4294901760, %v8122_v9  ;;  %v8153_v56 = vand.u32 4294901760, %v8152_v47  ;;  %v11483_v30 = vpack.c.bf16 %v8122_v9, %v8115_v27 }
0x16b3   :  { %11452 = vmatprep.subr.bf16.mxu1 %v13641_v4  ;;  %v8124_v10 = vsub.f32 %v8122_v9, %v8123_v2  ;;  %v13670_v21 = vpack.c.bf16 %v8123_v2, %v8116_v17 }
0x16b4   :  { %10563 = vmatmul.mubr.f32.vlgmr.msra.gmra.mrb[34].mxu0 %v7528_v55  ;;  %11454 = vmatpush3.bf16.msra.mxu1 %v13641_v4  ;;  %v8146_v55 = vand.u32 4294901760, %v8145_v12 }
0x16b5   :  { %11456 = vmatprep.subr.bf16.mxu1 %v13651_v40  ;;  %v8125_v34 = vand.u32 4294901760, %v8124_v10 }
0x16b6   :  { %v11475_v50 = vpack.c.bf16 %v8153_v56, %v8146_v55 }
0x16b7   :  { %v11467_v39 = vpack.c.bf16 %v8125_v34, %v8118_v59 }
0x16b8   :  { %11458 = vmatpush3.bf16.msra.mxu1 %v13651_v40 }
0x16b9   :  { %11460 = vmatprep.subr.bf16.mxu1 %v13661_v43 }
0x16bc   :  { %11462 = vmatpush3.bf16.msra.mxu1 %v13661_v43 }
0x16bd   :  { %11464 = vmatprep.subr.bf16.mxu1 %v13665_v1 }
0x1787   :  { %v10564_v42 = vpop.f32.mrb[34].mxu0 }
0x1788   :  { %v11579_v6 = vadd.f32 %v10564_v42, %v7442_v25  ;;  %v7967_v33 = vpop.f32.mrb[35].mxu0 }
0x1789   :  { %v11580_v11 = vadd.f32 %v7967_v33, %v7442_v25 }
0x178a   :  { %v7980_v28 = vmul.f32 0.70710677, %v11579_v6  ;;  %v7978_v31 = vmul.f32 0.5, %v11579_v6 }
0x178b   :  { %v7979_v13 = vmul.f32 0.70710677, %v11580_v11  ;;  %v7977_v26 = vmul.f32 0.5, %v11580_v11 }
0x178c   :  { %11911 = verf.f32 %v7980_v28 }
0x178d   :  { %11913 = verf.f32 %v7979_v13 }
0x1796   :  { %v11912_v53 = vpop.eup %11911 }
0x1797   :  { %v11914_v48 = vpop.eup %11913  ;;  %v7984_v16 = vadd.f32 1.0, %v11912_v53 }
0x1798   :  { %v7983_v63 = vadd.f32 1.0, %v11914_v48 }
0x1799   :  { %v7986_v51 = vmul.f32 %v7984_v16, %v7978_v31 }
0x179a   :  { %v7985_v44 = vmul.f32 %v7983_v63, %v7977_v26 }
0x179b   :  { %v8004_v0 = vsel %vm1584_vm3, %v7986_v51, 0 }
0x179c   :  { %v8089_v46 = vand.u32 4294901760, %v8004_v0  ;;  %v8001_v27 = vsel %vm1584_vm3, %v7985_v44, 0 }
0x179d   :  { %v8079_v9 = vand.u32 4294901760, %v8001_v27 }
0x179e   :  { %v8090_v41 = vsub.f32 %v8004_v0, %v8089_v46 }
0x179f   :  { %v8080_v29 = vsub.f32 %v8001_v27, %v8079_v9 }
0x17a0   :  { %v8091_v17 = vand.u32 4294901760, %v8090_v41 }
0x17a1   :  { %v8081_v2 = vand.u32 4294901760, %v8080_v29 }
0x17a2   :  { %v8092_v60 = vsub.f32 %v8090_v41, %v8091_v17 }
0x17a3   :  { %v8082_v24 = vsub.f32 %v8080_v29, %v8081_v2 }
0x17a4   :  { %v8093_v10 = vand.u32 4294901760, %v8092_v60 }
0x17a5   :  { %v8083_v3 = vand.u32 4294901760, %v8082_v24 }
0x17a7   :  { %10581 = vmatprep.mubr.f32.mxu1 %v8083_v3 }
0x17a8   :  { %10582 = vmatmul.mubr.f32.vlgmr.msra.gmra.mrb[18].mxu1 %v8093_v10 }
0x17a9   :  { %11466 = vmatpush3.bf16.msra.mxu1 %v13665_v1  ;;  %10600 = vmatprep.mubr.f32.mxu1 %v8079_v9  ;;  %v13770_v1 = vsub.s32 3, %v12112_v52 }
0x17aa   :  { %11468 = vmatprep.subr.bf16.mxu1 %v11467_v39 }
0x17ab   :  { %v7999_v59 = vrot.slane %v13585_v7, %v13770_v1 }
0x17ad   :  { %11470 = vmatpush3.bf16.msra.mxu1 %v11467_v39 }
0x17ae   :  { %11472 = vmatprep.subr.bf16.mxu1 %v11471_v5 }
0x17b1   :  { %11474 = vmatpush3.bf16.msra.mxu1 %v11471_v5 }
0x17b2   :  { %11476 = vmatprep.subr.bf16.mxu1 %v11475_v50 }
0x17b5   :  { %11478 = vmatpush3.bf16.msra.mxu1 %v11475_v50 }
0x17b6   :  { %11480 = vmatprep.subr.bf16.mxu1 %v11479_v57 }
0x17b8   :  { %10601 = vmatmul.mubr.f32.vlgmr.msra.gmra.mrb[18].mxu1 %v8089_v46 }
0x17b9   :  { %11482 = vmatpush3.bf16.msra.mxu1 %v11479_v57  ;;  %10619 = vmatprep.mubr.f32.mxu1 %v8080_v29  ;;  %v13771_v57 = vsub.s32 6, %v12112_v52 }
0x17ba   :  { %11484 = vmatprep.subr.bf16.mxu1 %v11483_v30 }
0x17bd   :  { %11486 = vmatpush3.bf16.msra.mxu1 %v11483_v30  ;;  %v8617_v30 = vrot.slane %v13585_v7, %v13771_v57 }
0x17be   :  { %11488 = vmatprep.subr.bf16.mxu1 %v11487_v19 }
0x17c1   :  { %11490 = vmatpush3.bf16.msra.mxu1 %v11487_v19 }
0x17c2   :  { %11492 = vmatprep.subr.bf16.mxu1 %v11491_v22 }
0x17c5   :  { %11494 = vmatpush3.bf16.msra.mxu1 %v11491_v22 }
0x17c6   :  { %11496 = vmatprep.subr.bf16.mxu1 %v13631_v45 }
0x17c8   :  { %10620 = vmatmul.mubr.f32.vlgmr.msra.gmra.mrb[18].mxu1 %v8090_v41 }
0x17c9   :  { %11498 = vmatpush3.bf16.msra.mxu1 %v13631_v45  ;;  %10638 = vmatprep.mubr.f32.mxu1 %v8081_v2 }
0x17ca   :  { %11500 = vmatprep.subr.bf16.mxu1 %v13641_v4 }
0x17cd   :  { %11502 = vmatpush3.bf16.msra.mxu1 %v13641_v4 }
0x17ce   :  { %11504 = vmatprep.subr.bf16.mxu1 %v13651_v40 }
0x17d1   :  { %11506 = vmatpush3.bf16.msra.mxu1 %v13651_v40 }
0x17d2   :  { %11508 = vmatprep.subr.bf16.mxu1 %v13661_v43 }
0x17d5   :  { %11510 = vmatpush3.bf16.msra.mxu1 %v13661_v43 }
0x17d6   :  { %11512 = vmatprep.subr.bf16.mxu1 %v13668_v61 }
0x17d8   :  { %10639 = vmatmul.mubr.f32.vlgmr.msra.gmra.mrb[18].mxu1 %v8091_v17 }
0x17d9   :  { %11514 = vmatpush3.bf16.msra.mxu1 %v13668_v61  ;;  %10657 = vmatprep.mubr.f32.mxu1 %v8079_v9 }
0x17da   :  { %11516 = vmatprep.subr.bf16.mxu1 %v13670_v21 }
0x17dd   :  { %11518 = vmatpush3.bf16.msra.mxu1 %v13670_v21  ;;  %v13772_v21 = vsub.s32 7, %v12112_v52 }
0x17de   :  { %11520 = vmatprep.subr.bf16.mxu1 %v13672_v18 }
0x17e1   :  { %11522 = vmatpush3.bf16.msra.mxu1 %v13672_v18  ;;  %v8623_v18 = vrot.slane %v13585_v7, %v13772_v21 }
0x17e2   :  { %11524 = vmatprep.subr.bf16.mxu1 %v13674_v14 }
0x17e5   :  { %11526 = vmatpush3.bf16.msra.mxu1 %v13674_v14 }
0x17e6   :  { %11528 = vmatprep.subr.bf16.mxu1 %v13631_v45 }
0x17e8   :  { %10658 = vmatmul.mubr.f32.vlgmr.msra.gmra.mrb[18].mxu1 %v8089_v46 }
0x17e9   :  { %11530 = vmatpush3.bf16.msra.mxu1 %v13631_v45  ;;  %10676 = vmatprep.mubr.f32.mxu1 %v8079_v9 }
0x17ea   :  { %11532 = vmatprep.subr.bf16.mxu1 %v13641_v4 }
0x17ed   :  { %11534 = vmatpush3.bf16.msra.mxu1 %v13641_v4 }
0x17ee   :  { %11536 = vmatprep.subr.bf16.mxu1 %v13651_v40 }
0x17f1   :  { %11538 = vmatpush3.bf16.msra.mxu1 %v13651_v40 }
0x17f2   :  { %11540 = vmatprep.subr.bf16.mxu1 %v13661_v43 }
0x17f5   :  { %11542 = vmatpush3.bf16.msra.mxu1 %v13661_v43 }
0x17f8   :  { %10677 = vmatmul.mubr.f32.vlgmr.msra.gmra.mrb[18].mxu1 %v8089_v46 }
0x18cb   :  { %v10678_v8 = vpop.f32.mrb[18].mxu1 }
0x18cc   :  { %v11581_v45 = vadd.f32 %v10678_v8, %v7999_v59  ;;  %v8576_v37 = vpop.f32.mrb[19].mxu1 }
0x18cd   :  { %v11582_v34 = vadd.f32 %v8576_v37, %v7999_v59 }
0x18ce   :  { %v8587_v32 = vadd.f32 %v11581_v45, %v13613_v38 }
0x18cf   :  { %v8586_v4 = vadd.f32 %v11582_v34, %v13609_v58 }
0x18d0   :  { %v8591_v62 = vsel %vm61_vm0, %v8587_v32, 0.0 }
0x18d1   :  { %8592 = vadd.xlane.f32.xlu1 %v8591_v62  ;;  %v8588_v40 = vsel %vm61_vm0, %v8586_v4, 0.0 }
0x18d2   :  { %8589 = vadd.xlane.f32.xlu0 %v8588_v40 }
0x195e   :  { %v8593_v43 = vpop.xlane.xlu1 %8592 }
0x195f   :  { %v8595_v54 = vmul.f32 0.03125, %v8593_v43  ;;  %v8590_v49 = vpop.xlane.xlu0 %8589 }
0x1960   :  { %v8594_v39 = vmul.f32 0.03125, %v8590_v49 }
0x1961   :  { %v8597_v20 = vsub.f32 %v8587_v32, %v8595_v54 }
0x1962   :  { %v8596_v23 = vsub.f32 %v8586_v4, %v8594_v39 }
0x1963   :  { %v8599_v35 = vmul.f32 %v8597_v20, %v8597_v20 }
0x1964   :  { %v8598_v36 = vmul.f32 %v8596_v23, %v8596_v23 }
0x1965   :  { %v8603_v5 = vsel %vm61_vm0, %v8599_v35, 0.0 }
0x1966   :  { %8604 = vadd.xlane.f32.xlu1 %v8603_v5  ;;  %v8600_v38 = vsel %vm61_vm0, %v8598_v36, 0.0 }
0x1967   :  { %8601 = vadd.xlane.f32.xlu0 %v8600_v38 }
0x19f3   :  { %v8605_v58 = vpop.xlane.xlu1 %8604 }
0x19f4   :  { %v8607_v12 = vmul.f32 0.03125, %v8605_v58  ;;  %v8602_v47 = vpop.xlane.xlu0 %8601 }
0x19f5   :  { %v8606_v55 = vmul.f32 0.03125, %v8602_v47 }
0x19f6   :  { %v8609_v56 = vadd.f32 1e-12, %v8607_v12 }
0x19f7   :  { %v8608_v50 = vadd.f32 1e-12, %v8606_v55 }
0x19f8   :  { %11915 = vrsqrt.f32 %v8609_v56 }
0x19f9   :  { %11917 = vrsqrt.f32 %v8608_v50 }
0x1a02   :  { %v11916_v19 = vpop.eup %11915 }
0x1a03   :  { %v11918_v22 = vpop.eup %11917  ;;  %v8613_v61 = vmul.f32 %v11916_v19, %v8597_v20 }
0x1a04   :  { %v8612_v14 = vmul.f32 %v11918_v22, %v8596_v23 }
0x1a05   :  { %v8619_v15 = vmul.f32 %v8617_v30, %v8613_v61 }
0x1a06   :  { %v8618_v25 = vmul.f32 %v8617_v30, %v8612_v14 }
0x1a07   :  { %v8625_v42 = vadd.f32 %v8623_v18, %v8619_v15 }
0x1a08   :  { %v8624_v6 = vadd.f32 %v8623_v18, %v8618_v25 }
0x1a09   :  { %8627 = vst.msk [vmem:[#allocation9 + $0x8] sm:$0xff] %vm61_vm0, %v8625_v42 }
0x1a0a   :  { %8626 = vst.msk [vmem:[#allocation9] sm:$0xff] %vm61_vm0, %v8624_v6 }
0x1a0b   :  { %11984 = shalt.err (!%p11981_p6)
}
0x1a0c   :  { %s11985_s1 = scalar_lea.hbm %s13746_s8, 256 }
0x1a0d   :  { %p11986_p7 = scmp.ne.s32.totalorder %s13746_s8, %s11985_s1  ;;  %p11989_p8 = scmp.lt.u32.totalorder %s11985_s1, %s13746_s8 }
0x1a0f   :  { %p11991_p9 = pnand %p11989_p8, %p11986_p7 }
0x1a11   :  { %11994 = shalt.err (!%p11991_p9)
}
0x1a12   :  { %8639 = dma.vmem_to_hbm [thread:$0]  %s8634_s14, 256, %s13746_s8, [#allocation6], %s12002_s15, %s12002_s15, %s12003_s16  }
0x1a13   :  { %11999 = dma.done.wait [#allocation6], 256  }
0x1a14   :  { %12000 = vsyncadd [#allocation6], 4294967040 }
0x1a15   :  { %8643 = vsyncpa [#allocation5], 1 }
0x1a16   :  { %8644 = vsyncpa [#allocation8], 1 }
0x1a17   :  { %8645 = vsyncpa [#allocation6], 1 }

</bundles_post_ra>
